<compile_context>
chip_gen: v6e
topology: v6e:2x2x1
jax: 0.10.0
libtpu: 0.0.40
codegen_flags: <defaults>
</compile_context>

<pallas_src>
import functools

import jax
import jax.numpy as jnp
from jax.experimental import pallas as pl
from jax.experimental.pallas import tpu as pltpu


def _rup(x, m):
    return (x + m - 1) // m * m


# (dh, kh) taps of ConvTranspose2d(k=4, s=2, p=1) for each output-row parity.
_DECONV_TAPS = (((0, 1), (-1, 3)), ((0, 2), (1, 0)))


# ----------------------------------------------------------------------------
# Fused conv-chain Pallas kernel (one batch element / image per grid step).
# Activation layout inside the kernel: (Q channels [padded], Pp pixels [lanes]).
# ----------------------------------------------------------------------------
def _make_chain_kernel(C, S, Q, Cdp, W, Pp):
    def kernel(x_ref, m_ref, w3_ref, b3_ref, a3_ref, wd_ref, bd_ref, o_ref):
        def tap(x, dh, dw):
            # xs[:, p] = x[:, p + dh*W + dw]; out-of-image sources masked to 0.
            off = dh * W + dw
            if off == 0:
                xs = x
            else:
                xs = pltpu.roll(x, shift=(-off) % Pp, axis=1)
                xs = xs * m_ref[(dh + 1) * 3 + (dw + 1)]
            return xs.astype(jnp.bfloat16)

        def conv3x3(x, ci, residual=None):
            acc = jnp.zeros((Q, Pp), jnp.float32)
            k = 0
            for dh in (-1, 0, 1):
                for dw in (-1, 0, 1):
                    acc = acc + jnp.dot(w3_ref[ci, k], tap(x, dh, dw),
                                        preferred_element_type=jnp.float32)
                    k += 1
            acc = acc + b3_ref[ci]
            if residual is not None:
                acc = acc + residual
            return jnp.where(acc >= 0.0, acc, a3_ref[ci] * acc)   # PReLU

        # rows produced by the side convs = the last S of the C real channels
        row = jax.lax.broadcasted_iota(jnp.int32, (Q, 1), 0)
        keep = ((row < C - S) | (row >= C)).astype(jnp.float32)

        x0 = x_ref[0].astype(jnp.float32)          # (Q, Pp)
        y = conv3x3(x0, 0)                         # convrelu
        res_in = y
        y = conv3x3(y, 1)                          # ResBlock.conv1 + PReLU
        y = y * keep + conv3x3(y, 2)               # side conv2 -> last S channels
        y = conv3x3(y, 3)                          # ResBlock.conv3 + PReLU
        y = y * keep + conv3x3(y, 4)               # side conv4
        y = conv3x3(y, 5, residual=res_in)         # prelu(x + conv5(out))

        # ConvTranspose2d(k=4, s=2, p=1) as 4 sub-pixel phases of 2x2 taps.
        idx = 0
        for r in (0, 1):
            for c in (0, 1):
                acc = jnp.zeros((Cdp, Pp), jnp.float32)
                for dh, _kh in _DECONV_TAPS[r]:
                    for dw, _kw in _DECONV_TAPS[c]:
                        acc = acc + jnp.dot(wd_ref[idx], tap(y, dh, dw),
                                            preferred_element_type=jnp.float32)
                        idx += 1
                o_ref[0, 2 * r + c] = acc + bd_ref[...]

    return kernel


# ----------------------------------------------------------------------------
# Parameter packing: every conv becomes 9 (or 16) tiny (Cout_pad, Cin_pad)
# matrices at a unified padded channel width; padded rows/cols are exact zeros.
# ----------------------------------------------------------------------------
def _pack_params(params, C0, C, S, Cd, Q, Cdp):
    def pack3(w, b, alpha, off):
        cout, cin = w.shape[0], w.shape[1]
        w9 = jnp.transpose(w, (2, 3, 0, 1)).reshape(9, cout, cin)      # k = kh*3+kw
        wp = jnp.zeros((9, Q, Q), jnp.float32)
        wp = wp.at[:, off:off + cout, off:off + cin].set(w9)
        bp = jnp.zeros((Q, 1), jnp.float32).at[off:off + cout, 0].set(b)
        ap = jnp.ones((Q, 1), jnp.float32).at[off:off + cout, 0].set(alpha)
        return wp, bp, ap

    rp = params["res"]
    packed = [
        pack3(params["conv0"][0], params["conv0"][1], params["alpha0"], 0),
        pack3(rp["conv1"][0], rp["conv1"][1], rp["alpha1"], 0),
        pack3(rp["conv2"][0], rp["conv2"][1], rp["alpha2"], C - S),
        pack3(rp["conv3"][0], rp["conv3"][1], rp["alpha3"], 0),
        pack3(rp["conv4"][0], rp["conv4"][1], rp["alpha4"], C - S),
        pack3(rp["conv5"][0], rp["conv5"][1], rp["alpha5"], 0),
    ]
    W3 = jnp.stack([p[0] for p in packed]).astype(jnp.bfloat16)        # (6,9,Q,Q)
    B3 = jnp.stack([p[1] for p in packed])                             # (6,Q,1)
    A3 = jnp.stack([p[2] for p in packed])                             # (6,Q,1)

    wd, bd = params["deconv"]                                          # (C, Cd, 4, 4)
    mats = []
    for r in (0, 1):
        for c in (0, 1):
            for _dh, kh in _DECONV_TAPS[r]:
                for _dw, kw in _DECONV_TAPS[c]:
                    mats.append(wd[:, :, kh, kw].T)                    # (Cd, C)
    WD = jnp.zeros((16, Cdp, Q), jnp.float32).at[:, :Cd, :C].set(jnp.stack(mats))
    WD = WD.astype(jnp.bfloat16)
    BD = jnp.zeros((Cdp, 1), jnp.float32).at[:Cd, 0].set(bd)
    return W3, B3, A3, WD, BD


def fused_conv_chain(params, x):
    """x: (B, C0, H, W) NCHW -> conv chain output (B, 8*num_flows, 2H, 2W)."""
    B, C0, H, W = x.shape
    C = params["conv0"][0].shape[0]            # in_ch * 3
    S = params["res"]["conv2"][0].shape[0]     # side channels
    Cd = params["deconv"][0].shape[1]          # 8 * num_flows
    Q = _rup(max(C0, C), 8)                    # unified padded channel width
    Cdp = _rup(Cd, 8)
    HW = H * W
    Pp = _rup(HW, 128)                         # lane-dense pixel axis

    xk = jnp.pad(x.reshape(B, C0, HW),
                 ((0, 0), (0, Q - C0), (0, Pp - HW))).astype(jnp.bfloat16)

    # Per-tap boundary masks, shared by all 3x3 convs and the deconv phases.
    p = jnp.arange(Pp, dtype=jnp.int32)
    hh, ww = p // W, p % W
    masks = jnp.stack(
        [((hh + dh >= 0) & (hh + dh < H) & (ww + dw >= 0) & (ww + dw < W))
         for dh in (-1, 0, 1) for dw in (-1, 0, 1)]
    ).astype(jnp.float32).reshape(9, 1, Pp)

    W3, B3, A3, WD, BD = _pack_params(params, C0, C, S, Cd, Q, Cdp)

    out = pl.pallas_call(
        _make_chain_kernel(C, S, Q, Cdp, W, Pp),
        out_shape=jax.ShapeDtypeStruct((B, 4, Cdp, Pp), jnp.float32),
        grid_spec=pltpu.PrefetchScalarGridSpec(
            num_scalar_prefetch=0,
            grid=(B,),
            in_specs=[
                pl.BlockSpec((1, Q, Pp), lambda b: (b, 0, 0)),        # activations
                pl.BlockSpec((9, 1, Pp), lambda b: (0, 0, 0)),        # tap masks
                pl.BlockSpec((6, 9, Q, Q), lambda b: (0, 0, 0, 0)),   # 3x3 weights
                pl.BlockSpec((6, Q, 1), lambda b: (0, 0, 0)),         # biases
                pl.BlockSpec((6, Q, 1), lambda b: (0, 0, 0)),         # PReLU alphas
                pl.BlockSpec((16, Cdp, Q), lambda b: (0, 0, 0)),      # deconv weights
                pl.BlockSpec((Cdp, 1), lambda b: (0, 0)),             # deconv bias
            ],
            out_specs=pl.BlockSpec((1, 4, Cdp, Pp), lambda b: (b, 0, 0, 0)),
        ),
        compiler_params=pltpu.CompilerParams(
            dimension_semantics=("parallel",)),
    )(xk, masks, W3, B3, A3, WD, BD)

    # pixel-shuffle the 4 deconv phases back to (B, Cd, 2H, 2W)
    out = out[:, :, :Cd, :HW].reshape(B, 2, 2, Cd, H, W)
    return out.transpose(0, 3, 4, 1, 5, 2).reshape(B, Cd, 2 * H, 2 * W)


# ----------------------------------------------------------------------------
# Pure-lax reference path (used only for the correctness check in __main__).
# ----------------------------------------------------------------------------
def _conv3x3_ref(wb, x, alpha=None, residual=None):
    w, b = wb
    out = jax.lax.conv_general_dilated(
        x, w, (1, 1), [(1, 1), (1, 1)],
        dimension_numbers=("NCHW", "OIHW", "NCHW"))
    out = out + b.reshape(1, -1, 1, 1)
    if residual is not None:
        out = out + residual
    if alpha is not None:
        out = jnp.where(out >= 0.0, out, alpha.reshape(1, -1, 1, 1) * out)
    return out


def _deconv_ref(wb, x):
    w, b = wb
    wc = jnp.transpose(w, (1, 0, 2, 3))[:, :, ::-1, ::-1]
    out = jax.lax.conv_general_dilated(
        x, wc, (1, 1), [(2, 2), (2, 2)], lhs_dilation=(2, 2),
        dimension_numbers=("NCHW", "OIHW", "NCHW"))
    return out + b.reshape(1, -1, 1, 1)


def _resblock_ref(p, x):
    S = p["conv2"][0].shape[0]
    out = _conv3x3_ref(p["conv1"], x, alpha=p["alpha1"])
    side = _conv3x3_ref(p["conv2"], out[:, -S:], alpha=p["alpha2"])
    out = jnp.concatenate([out[:, :-S], side], axis=1)
    out = _conv3x3_ref(p["conv3"], out, alpha=p["alpha3"])
    side = _conv3x3_ref(p["conv4"], out[:, -S:], alpha=p["alpha4"])
    out = jnp.concatenate([out[:, :-S], side], axis=1)
    return _conv3x3_ref(p["conv5"], out, alpha=p["alpha5"], residual=x)


# ----------------------------------------------------------------------------
# warp / resize glue (plain JAX)
# ----------------------------------------------------------------------------
def warp(img, flow):
    """grid_sample(bilinear, border, align_corners=True) with pixel-space flow."""
    B, C, H, W = img.shape
    jj = jnp.arange(W, dtype=jnp.float32)
    ii = jnp.arange(H, dtype=jnp.float32)
    x = jnp.clip(jj[None, None, :] + flow[:, 0], 0.0, W - 1.0)
    y = jnp.clip(ii[None, :, None] + flow[:, 1], 0.0, H - 1.0)
    x0 = jnp.floor(x); x1 = jnp.minimum(x0 + 1.0, W - 1.0)
    y0 = jnp.floor(y); y1 = jnp.minimum(y0 + 1.0, H - 1.0)
    wx = (x - x0)[:, None]; wy = (y - y0)[:, None]
    x0i, x1i = x0.astype(jnp.int32), x1.astype(jnp.int32)
    y0i, y1i = y0.astype(jnp.int32), y1.astype(jnp.int32)
    flat = img.reshape(B, C, H * W)

    def gather(yi, xi):
        idx = (yi * W + xi).reshape(B, 1, H * W)
        idx = jnp.broadcast_to(idx, (B, C, H * W))
        return jnp.take_along_axis(flat, idx, axis=2).reshape(B, C, H, W)

    v00 = gather(y0i, x0i); v01 = gather(y0i, x1i)
    v10 = gather(y1i, x0i); v11 = gather(y1i, x1i)
    top = v00 * (1.0 - wx) + v01 * wx
    bot = v10 * (1.0 - wx) + v11 * wx
    return top * (1.0 - wy) + bot * wy


def resize2x(x):
    """F.interpolate(scale_factor=2, mode='bilinear', align_corners=False)."""
    B, C, H, W = x.shape

    def coords(out_size, in_size):
        d = jnp.arange(out_size, dtype=jnp.float32)
        src = jnp.maximum((d + 0.5) / 2.0 - 0.5, 0.0)
        i0 = jnp.minimum(jnp.floor(src).astype(jnp.int32), in_size - 1)
        i1 = jnp.minimum(i0 + 1, in_size - 1)
        return i0, i1, src - i0.astype(jnp.float32)

    y0, y1, wy = coords(2 * H, H)
    x0, x1, wx = coords(2 * W, W)
    rows = (x[:, :, y0, :] * (1.0 - wy)[None, None, :, None]
            + x[:, :, y1, :] * wy[None, None, :, None])
    return (rows[:, :, :, x0] * (1.0 - wx)[None, None, None, :]
            + rows[:, :, :, x1] * wx[None, None, None, :])


# ----------------------------------------------------------------------------
# MultiFlowDecoder forward
# ----------------------------------------------------------------------------
def multi_flow_decoder_forward(params, ft_, f0, f1, flow0, flow1,
                               num_flows, use_pallas=True):
    n = num_flows
    f0_warp = warp(f0, flow0)
    f1_warp = warp(f1, flow1)
    x = jnp.concatenate([ft_, f0_warp, f1_warp, flow0, flow1], axis=1)

    if use_pallas:
        out = fused_conv_chain(params, x)
    else:
        y = _conv3x3_ref(params["conv0"], x, alpha=params["alpha0"])
        y = _resblock_ref(params["res"], y)
        out = _deconv_ref(params["deconv"], y)

    delta_flow0 = out[:, : 2 * n]
    delta_flow1 = out[:, 2 * n: 4 * n]
    mask = jax.nn.sigmoid(out[:, 4 * n: 5 * n])
    img_res = out[:, 5 * n: 8 * n]

    up0 = 2.0 * jnp.tile(resize2x(flow0), (1, n, 1, 1))
    up1 = 2.0 * jnp.tile(resize2x(flow1), (1, n, 1, 1))
    return delta_flow0 + up0, delta_flow1 + up1, mask, img_res


# ----------------------------------------------------------------------------
# deterministic parameter init (synthetic weights, PyTorch layouts)
# ----------------------------------------------------------------------------
def init_params(key, in_ch, skip_ch, num_flows):
    C = in_ch * 3

    def conv_p(k, cin, cout, ksz=3):
        k1, k2 = jax.random.split(k)
        w = jax.random.normal(k1, (cout, cin, ksz, ksz), jnp.float32) * 0.1
        b = jax.random.normal(k2, (cout,), jnp.float32) * 0.05
        return (w, b)

    keys = jax.random.split(key, 8)
    alpha = lambda c: jnp.full((c,), 0.25, jnp.float32)   # PReLU default init
    return {
        "conv0": conv_p(keys[0], C + 4, C),
        "alpha0": alpha(C),
        "res": {
            "conv1": conv_p(keys[1], C, C), "alpha1": alpha(C),
            "conv2": conv_p(keys[2], skip_ch, skip_ch), "alpha2": alpha(skip_ch),
            "conv3": conv_p(keys[3], C, C), "alpha3": alpha(C),
            "conv4": conv_p(keys[4], skip_ch, skip_ch), "alpha4": alpha(skip_ch),
            "conv5": conv_p(keys[5], C, C), "alpha5": alpha(C),
        },
        "deconv": (
            jax.random.normal(keys[6], (C, 8 * num_flows, 4, 4), jnp.float32) * 0.1,
            jax.random.normal(keys[7], (8 * num_flows,), jnp.float32) * 0.05,
        ),
    }


if __name__ == "__main__":
    B, in_ch, skip_ch, num_flows, H, W = 2, 4, 4, 2, 16, 16

    key = jax.random.PRNGKey(0)
    k_ft, k_f0, k_f1, k_fl0, k_fl1, k_p = jax.random.split(key, 6)
    ft_ = jax.random.normal(k_ft, (B, in_ch, H, W), jnp.float32)
    f0 = jax.random.normal(k_f0, (B, in_ch, H, W), jnp.float32)
    f1 = jax.random.normal(k_f1, (B, in_ch, H, W), jnp.float32)
    flow0 = jax.random.normal(k_fl0, (B, 2, H, W), jnp.float32) * 2.0
    flow1 = jax.random.normal(k_fl1, (B, 2, H, W), jnp.float32) * 2.0

    params = init_params(k_p, in_ch, skip_ch, num_flows)
    fwd = functools.partial(multi_flow_decoder_forward, num_flows=num_flows)

    out_pl = jax.jit(lambda p, a, b_, c, d, e: fwd(p, a, b_, c, d, e, use_pallas=True))(
        params, ft_, f0, f1, flow0, flow1)
    jax.block_until_ready(out_pl)

    # pure-lax reference path to sanity-check the fused Pallas lowering
    out_ref = jax.jit(lambda p, a, b_, c, d, e: fwd(p, a, b_, c, d, e, use_pallas=False))(
        params, ft_, f0, f1, flow0, flow1)
    jax.block_until_ready(out_ref)

    names = ["flow0", "flow1", "mask", "img_res"]
    for name, a, b_ in zip(names, out_pl, out_ref):
        assert a.shape == b_.shape, (name, a.shape, b_.shape)
        err = float(jnp.max(jnp.abs(a - b_)))
        scale = float(jnp.max(jnp.abs(b_)))
        assert err <= 2e-2 + 5e-2 * scale, (name, err, scale)

    print("KERNEL_OK")
</pallas_src>

<mosaic_0001>
module attributes {stable_mosaic.version = 11 : i64} {
  func.func @kernel(%arg0: i32, %arg1: memref<1x16x256xbf16, #tpu.memory_space<vmem>>, %arg2: memref<9x1x256xf32, #tpu.memory_space<vmem>>, %arg3: memref<6x9x16x16xbf16, #tpu.memory_space<vmem>>, %arg4: memref<6x16x1xf32, #tpu.memory_space<vmem>>, %arg5: memref<6x16x1xf32, #tpu.memory_space<vmem>>, %arg6: memref<16x16x16xbf16, #tpu.memory_space<vmem>>, %arg7: memref<16x1xf32, #tpu.memory_space<vmem>>, %arg8: memref<1x4x16x256xf32, #tpu.memory_space<vmem>>) attributes {dimension_semantics = [#tpu.dimension_semantics<parallel>], iteration_bounds = array<i64: 2>, scalar_prefetch = 0 : i64, scratch_operands = 0 : i64, tpu.core_type = #tpu.core_type<tc>, window_params = [{transform_indices = @transform_0, window_bounds = array<i64: 1, 16, 256>}, {pipeline_mode = #tpu.pipeline_mode<synchronous>, transform_indices = @transform_1, window_bounds = array<i64: 9, 1, 256>}, {pipeline_mode = #tpu.pipeline_mode<synchronous>, transform_indices = @transform_2, window_bounds = array<i64: 6, 9, 16, 16>}, {pipeline_mode = #tpu.pipeline_mode<synchronous>, transform_indices = @transform_3, window_bounds = array<i64: 6, 16, 1>}, {pipeline_mode = #tpu.pipeline_mode<synchronous>, transform_indices = @transform_4, window_bounds = array<i64: 6, 16, 1>}, {pipeline_mode = #tpu.pipeline_mode<synchronous>, transform_indices = @transform_5, window_bounds = array<i64: 16, 16, 16>}, {pipeline_mode = #tpu.pipeline_mode<synchronous>, transform_indices = @transform_6, window_bounds = array<i64: 16, 1>}, {transform_indices = @transform_7, window_bounds = array<i64: 1, 4, 16, 256>}]} {
    %0 = tpu.iota {dimensions = array<i32: 0>} : vector<16x1xi32>
    %c8_i32 = arith.constant 8 : i32
    %1 = vector.broadcast %c8_i32 : i32 to vector<16x1xi32>
    %2 = arith.cmpi slt, %0, %1 : vector<16x1xi32>
    %c12_i32 = arith.constant 12 : i32
    %3 = vector.broadcast %c12_i32 : i32 to vector<16x1xi32>
    %4 = arith.cmpi sge, %0, %3 : vector<16x1xi32>
    %5 = arith.ori %2, %4 : vector<16x1xi1>
    %6 = arith.extui %5 : vector<16x1xi1> to vector<16x1xi32>
    %7 = arith.sitofp %6 : vector<16x1xi32> to vector<16x1xf32>
    %c0 = arith.constant 0 : index
    %c0_0 = arith.constant 0 : index
    %c0_1 = arith.constant 0 : index
    %8 = vector.load %arg1[%c0, %c0_0, %c0_1] : memref<1x16x256xbf16, #tpu.memory_space<vmem>>, vector<1x16x256xbf16>
    %9 = vector.shape_cast %8 : vector<1x16x256xbf16> to vector<16x256xbf16>
    %10 = arith.extf %9 : vector<16x256xbf16> to vector<16x256xf32>
    %cst = arith.constant 0.000000e+00 : f32
    %11 = vector.broadcast %cst : f32 to vector<16x256xf32>
    %c0_2 = arith.constant 0 : index
    %c0_3 = arith.constant 0 : index
    %c0_4 = arith.constant 0 : index
    %c0_5 = arith.constant 0 : index
    %12 = vector.load %arg3[%c0_2, %c0_3, %c0_4, %c0_5] : memref<6x9x16x16xbf16, #tpu.memory_space<vmem>>, vector<1x1x16x16xbf16>
    %13 = vector.shape_cast %12 : vector<1x1x16x16xbf16> to vector<16x16xbf16>
    %c17_i32 = arith.constant 17 : i32
    %14 = tpu.dynamic_rotate %10 by %c17_i32 dim 1 : vector<16x256xf32>, i32 -> vector<16x256xf32>
    %c0_6 = arith.constant 0 : index
    %c0_7 = arith.constant 0 : index
    %c0_8 = arith.constant 0 : index
    %15 = vector.load %arg2[%c0_6, %c0_7, %c0_8] : memref<9x1x256xf32, #tpu.memory_space<vmem>>, vector<1x1x256xf32>
    %16 = vector.shape_cast %15 : vector<1x1x256xf32> to vector<1x256xf32>
    %17 = vector.broadcast %16 : vector<1x256xf32> to vector<16x256xf32>
    %18 = arith.mulf %14, %17 : vector<16x256xf32>
    %19 = arith.truncf %18 : vector<16x256xf32> to vector<16x256xbf16>
    %cst_9 = arith.constant dense<0.000000e+00> : vector<16x256xf32>
    %20 = tpu.matmul %13, %19, %cst_9 {dimension_numbers = #tpu.dot_dimension_numbers<[1], [0], [0], [1], [0, 0, 1, 1], [], []>} : vector<16x16xbf16>, vector<16x256xbf16>, vector<16x256xf32> -> vector<16x256xf32>
    %21 = arith.addf %11, %20 : vector<16x256xf32>
    %c0_10 = arith.constant 0 : index
    %c1 = arith.constant 1 : index
    %c0_11 = arith.constant 0 : index
    %c0_12 = arith.constant 0 : index
    %22 = vector.load %arg3[%c0_10, %c1, %c0_11, %c0_12] : memref<6x9x16x16xbf16, #tpu.memory_space<vmem>>, vector<1x1x16x16xbf16>
    %23 = vector.shape_cast %22 : vector<1x1x16x16xbf16> to vector<16x16xbf16>
    %c16_i32 = arith.constant 16 : i32
    %24 = tpu.dynamic_rotate %10 by %c16_i32 dim 1 : vector<16x256xf32>, i32 -> vector<16x256xf32>
    %c1_13 = arith.constant 1 : index
    %c0_14 = arith.constant 0 : index
    %c0_15 = arith.constant 0 : index
    %25 = vector.load %arg2[%c1_13, %c0_14, %c0_15] : memref<9x1x256xf32, #tpu.memory_space<vmem>>, vector<1x1x256xf32>
    %26 = vector.shape_cast %25 : vector<1x1x256xf32> to vector<1x256xf32>
    %27 = vector.broadcast %26 : vector<1x256xf32> to vector<16x256xf32>
    %28 = arith.mulf %24, %27 : vector<16x256xf32>
    %29 = arith.truncf %28 : vector<16x256xf32> to vector<16x256xbf16>
    %cst_16 = arith.constant dense<0.000000e+00> : vector<16x256xf32>
    %30 = tpu.matmul %23, %29, %cst_16 {dimension_numbers = #tpu.dot_dimension_numbers<[1], [0], [0], [1], [0, 0, 1, 1], [], []>} : vector<16x16xbf16>, vector<16x256xbf16>, vector<16x256xf32> -> vector<16x256xf32>
    %31 = arith.addf %21, %30 : vector<16x256xf32>
    %c0_17 = arith.constant 0 : index
    %c2 = arith.constant 2 : index
    %c0_18 = arith.constant 0 : index
    %c0_19 = arith.constant 0 : index
    %32 = vector.load %arg3[%c0_17, %c2, %c0_18, %c0_19] : memref<6x9x16x16xbf16, #tpu.memory_space<vmem>>, vector<1x1x16x16xbf16>
    %33 = vector.shape_cast %32 : vector<1x1x16x16xbf16> to vector<16x16xbf16>
    %c15_i32 = arith.constant 15 : i32
    %34 = tpu.dynamic_rotate %10 by %c15_i32 dim 1 : vector<16x256xf32>, i32 -> vector<16x256xf32>
    %c2_20 = arith.constant 2 : index
    %c0_21 = arith.constant 0 : index
    %c0_22 = arith.constant 0 : index
    %35 = vector.load %arg2[%c2_20, %c0_21, %c0_22] : memref<9x1x256xf32, #tpu.memory_space<vmem>>, vector<1x1x256xf32>
    %36 = vector.shape_cast %35 : vector<1x1x256xf32> to vector<1x256xf32>
    %37 = vector.broadcast %36 : vector<1x256xf32> to vector<16x256xf32>
    %38 = arith.mulf %34, %37 : vector<16x256xf32>
    %39 = arith.truncf %38 : vector<16x256xf32> to vector<16x256xbf16>
    %cst_23 = arith.constant dense<0.000000e+00> : vector<16x256xf32>
    %40 = tpu.matmul %33, %39, %cst_23 {dimension_numbers = #tpu.dot_dimension_numbers<[1], [0], [0], [1], [0, 0, 1, 1], [], []>} : vector<16x16xbf16>, vector<16x256xbf16>, vector<16x256xf32> -> vector<16x256xf32>
    %41 = arith.addf %31, %40 : vector<16x256xf32>
    %c0_24 = arith.constant 0 : index
    %c3 = arith.constant 3 : index
    %c0_25 = arith.constant 0 : index
    %c0_26 = arith.constant 0 : index
    %42 = vector.load %arg3[%c0_24, %c3, %c0_25, %c0_26] : memref<6x9x16x16xbf16, #tpu.memory_space<vmem>>, vector<1x1x16x16xbf16>
    %43 = vector.shape_cast %42 : vector<1x1x16x16xbf16> to vector<16x16xbf16>
    %c1_i32 = arith.constant 1 : i32
    %44 = tpu.dynamic_rotate %10 by %c1_i32 dim 1 : vector<16x256xf32>, i32 -> vector<16x256xf32>
    %c3_27 = arith.constant 3 : index
    %c0_28 = arith.constant 0 : index
    %c0_29 = arith.constant 0 : index
    %45 = vector.load %arg2[%c3_27, %c0_28, %c0_29] : memref<9x1x256xf32, #tpu.memory_space<vmem>>, vector<1x1x256xf32>
    %46 = vector.shape_cast %45 : vector<1x1x256xf32> to vector<1x256xf32>
    %47 = vector.broadcast %46 : vector<1x256xf32> to vector<16x256xf32>
    %48 = arith.mulf %44, %47 : vector<16x256xf32>
    %49 = arith.truncf %48 : vector<16x256xf32> to vector<16x256xbf16>
    %cst_30 = arith.constant dense<0.000000e+00> : vector<16x256xf32>
    %50 = tpu.matmul %43, %49, %cst_30 {dimension_numbers = #tpu.dot_dimension_numbers<[1], [0], [0], [1], [0, 0, 1, 1], [], []>} : vector<16x16xbf16>, vector<16x256xbf16>, vector<16x256xf32> -> vector<16x256xf32>
    %51 = arith.addf %41, %50 : vector<16x256xf32>
    %c0_31 = arith.constant 0 : index
    %c4 = arith.constant 4 : index
    %c0_32 = arith.constant 0 : index
    %c0_33 = arith.constant 0 : index
    %52 = vector.load %arg3[%c0_31, %c4, %c0_32, %c0_33] : memref<6x9x16x16xbf16, #tpu.memory_space<vmem>>, vector<1x1x16x16xbf16>
    %53 = vector.shape_cast %52 : vector<1x1x16x16xbf16> to vector<16x16xbf16>
    %54 = arith.truncf %10 : vector<16x256xf32> to vector<16x256xbf16>
    %cst_34 = arith.constant dense<0.000000e+00> : vector<16x256xf32>
    %55 = tpu.matmul %53, %54, %cst_34 {dimension_numbers = #tpu.dot_dimension_numbers<[1], [0], [0], [1], [0, 0, 1, 1], [], []>} : vector<16x16xbf16>, vector<16x256xbf16>, vector<16x256xf32> -> vector<16x256xf32>
    %56 = arith.addf %51, %55 : vector<16x256xf32>
    %c0_35 = arith.constant 0 : index
    %c5 = arith.constant 5 : index
    %c0_36 = arith.constant 0 : index
    %c0_37 = arith.constant 0 : index
    %57 = vector.load %arg3[%c0_35, %c5, %c0_36, %c0_37] : memref<6x9x16x16xbf16, #tpu.memory_space<vmem>>, vector<1x1x16x16xbf16>
    %58 = vector.shape_cast %57 : vector<1x1x16x16xbf16> to vector<16x16xbf16>
    %c255_i32 = arith.constant 255 : i32
    %59 = tpu.dynamic_rotate %10 by %c255_i32 dim 1 : vector<16x256xf32>, i32 -> vector<16x256xf32>
    %c5_38 = arith.constant 5 : index
    %c0_39 = arith.constant 0 : index
    %c0_40 = arith.constant 0 : index
    %60 = vector.load %arg2[%c5_38, %c0_39, %c0_40] : memref<9x1x256xf32, #tpu.memory_space<vmem>>, vector<1x1x256xf32>
    %61 = vector.shape_cast %60 : vector<1x1x256xf32> to vector<1x256xf32>
    %62 = vector.broadcast %61 : vector<1x256xf32> to vector<16x256xf32>
    %63 = arith.mulf %59, %62 : vector<16x256xf32>
    %64 = arith.truncf %63 : vector<16x256xf32> to vector<16x256xbf16>
    %cst_41 = arith.constant dense<0.000000e+00> : vector<16x256xf32>
    %65 = tpu.matmul %58, %64, %cst_41 {dimension_numbers = #tpu.dot_dimension_numbers<[1], [0], [0], [1], [0, 0, 1, 1], [], []>} : vector<16x16xbf16>, vector<16x256xbf16>, vector<16x256xf32> -> vector<16x256xf32>
    %66 = arith.addf %56, %65 : vector<16x256xf32>
    %c0_42 = arith.constant 0 : index
    %c6 = arith.constant 6 : index
    %c0_43 = arith.constant 0 : index
    %c0_44 = arith.constant 0 : index
    %67 = vector.load %arg3[%c0_42, %c6, %c0_43, %c0_44] : memref<6x9x16x16xbf16, #tpu.memory_space<vmem>>, vector<1x1x16x16xbf16>
    %68 = vector.shape_cast %67 : vector<1x1x16x16xbf16> to vector<16x16xbf16>
    %c241_i32 = arith.constant 241 : i32
    %69 = tpu.dynamic_rotate %10 by %c241_i32 dim 1 : vector<16x256xf32>, i32 -> vector<16x256xf32>
    %c6_45 = arith.constant 6 : index
    %c0_46 = arith.constant 0 : index
    %c0_47 = arith.constant 0 : index
    %70 = vector.load %arg2[%c6_45, %c0_46, %c0_47] : memref<9x1x256xf32, #tpu.memory_space<vmem>>, vector<1x1x256xf32>
    %71 = vector.shape_cast %70 : vector<1x1x256xf32> to vector<1x256xf32>
    %72 = vector.broadcast %71 : vector<1x256xf32> to vector<16x256xf32>
    %73 = arith.mulf %69, %72 : vector<16x256xf32>
    %74 = arith.truncf %73 : vector<16x256xf32> to vector<16x256xbf16>
    %cst_48 = arith.constant dense<0.000000e+00> : vector<16x256xf32>
    %75 = tpu.matmul %68, %74, %cst_48 {dimension_numbers = #tpu.dot_dimension_numbers<[1], [0], [0], [1], [0, 0, 1, 1], [], []>} : vector<16x16xbf16>, vector<16x256xbf16>, vector<16x256xf32> -> vector<16x256xf32>
    %76 = arith.addf %66, %75 : vector<16x256xf32>
    %c0_49 = arith.constant 0 : index
    %c7 = arith.constant 7 : index
    %c0_50 = arith.constant 0 : index
    %c0_51 = arith.constant 0 : index
    %77 = vector.load %arg3[%c0_49, %c7, %c0_50, %c0_51] : memref<6x9x16x16xbf16, #tpu.memory_space<vmem>>, vector<1x1x16x16xbf16>
    %78 = vector.shape_cast %77 : vector<1x1x16x16xbf16> to vector<16x16xbf16>
    %c240_i32 = arith.constant 240 : i32
    %79 = tpu.dynamic_rotate %10 by %c240_i32 dim 1 : vector<16x256xf32>, i32 -> vector<16x256xf32>
    %c7_52 = arith.constant 7 : index
    %c0_53 = arith.constant 0 : index
    %c0_54 = arith.constant 0 : index
    %80 = vector.load %arg2[%c7_52, %c0_53, %c0_54] : memref<9x1x256xf32, #tpu.memory_space<vmem>>, vector<1x1x256xf32>
    %81 = vector.shape_cast %80 : vector<1x1x256xf32> to vector<1x256xf32>
    %82 = vector.broadcast %81 : vector<1x256xf32> to vector<16x256xf32>
    %83 = arith.mulf %79, %82 : vector<16x256xf32>
    %84 = arith.truncf %83 : vector<16x256xf32> to vector<16x256xbf16>
    %cst_55 = arith.constant dense<0.000000e+00> : vector<16x256xf32>
    %85 = tpu.matmul %78, %84, %cst_55 {dimension_numbers = #tpu.dot_dimension_numbers<[1], [0], [0], [1], [0, 0, 1, 1], [], []>} : vector<16x16xbf16>, vector<16x256xbf16>, vector<16x256xf32> -> vector<16x256xf32>
    %86 = arith.addf %76, %85 : vector<16x256xf32>
    %c0_56 = arith.constant 0 : index
    %c8 = arith.constant 8 : index
    %c0_57 = arith.constant 0 : index
    %c0_58 = arith.constant 0 : index
    %87 = vector.load %arg3[%c0_56, %c8, %c0_57, %c0_58] : memref<6x9x16x16xbf16, #tpu.memory_space<vmem>>, vector<1x1x16x16xbf16>
    %88 = vector.shape_cast %87 : vector<1x1x16x16xbf16> to vector<16x16xbf16>
    %c239_i32 = arith.constant 239 : i32
    %89 = tpu.dynamic_rotate %10 by %c239_i32 dim 1 : vector<16x256xf32>, i32 -> vector<16x256xf32>
    %c8_59 = arith.constant 8 : index
    %c0_60 = arith.constant 0 : index
    %c0_61 = arith.constant 0 : index
    %90 = vector.load %arg2[%c8_59, %c0_60, %c0_61] : memref<9x1x256xf32, #tpu.memory_space<vmem>>, vector<1x1x256xf32>
    %91 = vector.shape_cast %90 : vector<1x1x256xf32> to vector<1x256xf32>
    %92 = vector.broadcast %91 : vector<1x256xf32> to vector<16x256xf32>
    %93 = arith.mulf %89, %92 : vector<16x256xf32>
    %94 = arith.truncf %93 : vector<16x256xf32> to vector<16x256xbf16>
    %cst_62 = arith.constant dense<0.000000e+00> : vector<16x256xf32>
    %95 = tpu.matmul %88, %94, %cst_62 {dimension_numbers = #tpu.dot_dimension_numbers<[1], [0], [0], [1], [0, 0, 1, 1], [], []>} : vector<16x16xbf16>, vector<16x256xbf16>, vector<16x256xf32> -> vector<16x256xf32>
    %96 = arith.addf %86, %95 : vector<16x256xf32>
    %c0_63 = arith.constant 0 : index
    %c0_64 = arith.constant 0 : index
    %c0_65 = arith.constant 0 : index
    %97 = vector.load %arg4[%c0_63, %c0_64, %c0_65] : memref<6x16x1xf32, #tpu.memory_space<vmem>>, vector<1x16x1xf32>
    %98 = vector.shape_cast %97 : vector<1x16x1xf32> to vector<16x1xf32>
    %99 = vector.broadcast %98 : vector<16x1xf32> to vector<16x256xf32>
    %100 = arith.addf %96, %99 : vector<16x256xf32>
    %cst_66 = arith.constant 0.000000e+00 : f32
    %101 = vector.broadcast %cst_66 : f32 to vector<16x256xf32>
    %102 = arith.cmpf oge, %100, %101 : vector<16x256xf32>
    %c0_67 = arith.constant 0 : index
    %c0_68 = arith.constant 0 : index
    %c0_69 = arith.constant 0 : index
    %103 = vector.load %arg5[%c0_67, %c0_68, %c0_69] : memref<6x16x1xf32, #tpu.memory_space<vmem>>, vector<1x16x1xf32>
    %104 = vector.shape_cast %103 : vector<1x16x1xf32> to vector<16x1xf32>
    %105 = vector.broadcast %104 : vector<16x1xf32> to vector<16x256xf32>
    %106 = arith.mulf %105, %100 : vector<16x256xf32>
    %107 = arith.select %102, %100, %106 : vector<16x256xi1>, vector<16x256xf32>
    %cst_70 = arith.constant 0.000000e+00 : f32
    %108 = vector.broadcast %cst_70 : f32 to vector<16x256xf32>
    %c1_71 = arith.constant 1 : index
    %c0_72 = arith.constant 0 : index
    %c0_73 = arith.constant 0 : index
    %c0_74 = arith.constant 0 : index
    %109 = vector.load %arg3[%c1_71, %c0_72, %c0_73, %c0_74] : memref<6x9x16x16xbf16, #tpu.memory_space<vmem>>, vector<1x1x16x16xbf16>
    %110 = vector.shape_cast %109 : vector<1x1x16x16xbf16> to vector<16x16xbf16>
    %c17_i32_75 = arith.constant 17 : i32
    %111 = tpu.dynamic_rotate %107 by %c17_i32_75 dim 1 : vector<16x256xf32>, i32 -> vector<16x256xf32>
    %c0_76 = arith.constant 0 : index
    %c0_77 = arith.constant 0 : index
    %c0_78 = arith.constant 0 : index
    %112 = vector.load %arg2[%c0_76, %c0_77, %c0_78] : memref<9x1x256xf32, #tpu.memory_space<vmem>>, vector<1x1x256xf32>
    %113 = vector.shape_cast %112 : vector<1x1x256xf32> to vector<1x256xf32>
    %114 = vector.broadcast %113 : vector<1x256xf32> to vector<16x256xf32>
    %115 = arith.mulf %111, %114 : vector<16x256xf32>
    %116 = arith.truncf %115 : vector<16x256xf32> to vector<16x256xbf16>
    %cst_79 = arith.constant dense<0.000000e+00> : vector<16x256xf32>
    %117 = tpu.matmul %110, %116, %cst_79 {dimension_numbers = #tpu.dot_dimension_numbers<[1], [0], [0], [1], [0, 0, 1, 1], [], []>} : vector<16x16xbf16>, vector<16x256xbf16>, vector<16x256xf32> -> vector<16x256xf32>
    %118 = arith.addf %108, %117 : vector<16x256xf32>
    %c1_80 = arith.constant 1 : index
    %c1_81 = arith.constant 1 : index
    %c0_82 = arith.constant 0 : index
    %c0_83 = arith.constant 0 : index
    %119 = vector.load %arg3[%c1_80, %c1_81, %c0_82, %c0_83] : memref<6x9x16x16xbf16, #tpu.memory_space<vmem>>, vector<1x1x16x16xbf16>
    %120 = vector.shape_cast %119 : vector<1x1x16x16xbf16> to vector<16x16xbf16>
    %c16_i32_84 = arith.constant 16 : i32
    %121 = tpu.dynamic_rotate %107 by %c16_i32_84 dim 1 : vector<16x256xf32>, i32 -> vector<16x256xf32>
    %c1_85 = arith.constant 1 : index
    %c0_86 = arith.constant 0 : index
    %c0_87 = arith.constant 0 : index
    %122 = vector.load %arg2[%c1_85, %c0_86, %c0_87] : memref<9x1x256xf32, #tpu.memory_space<vmem>>, vector<1x1x256xf32>
    %123 = vector.shape_cast %122 : vector<1x1x256xf32> to vector<1x256xf32>
    %124 = vector.broadcast %123 : vector<1x256xf32> to vector<16x256xf32>
    %125 = arith.mulf %121, %124 : vector<16x256xf32>
    %126 = arith.truncf %125 : vector<16x256xf32> to vector<16x256xbf16>
    %cst_88 = arith.constant dense<0.000000e+00> : vector<16x256xf32>
    %127 = tpu.matmul %120, %126, %cst_88 {dimension_numbers = #tpu.dot_dimension_numbers<[1], [0], [0], [1], [0, 0, 1, 1], [], []>} : vector<16x16xbf16>, vector<16x256xbf16>, vector<16x256xf32> -> vector<16x256xf32>
    %128 = arith.addf %118, %127 : vector<16x256xf32>
    %c1_89 = arith.constant 1 : index
    %c2_90 = arith.constant 2 : index
    %c0_91 = arith.constant 0 : index
    %c0_92 = arith.constant 0 : index
    %129 = vector.load %arg3[%c1_89, %c2_90, %c0_91, %c0_92] : memref<6x9x16x16xbf16, #tpu.memory_space<vmem>>, vector<1x1x16x16xbf16>
    %130 = vector.shape_cast %129 : vector<1x1x16x16xbf16> to vector<16x16xbf16>
    %c15_i32_93 = arith.constant 15 : i32
    %131 = tpu.dynamic_rotate %107 by %c15_i32_93 dim 1 : vector<16x256xf32>, i32 -> vector<16x256xf32>
    %c2_94 = arith.constant 2 : index
    %c0_95 = arith.constant 0 : index
    %c0_96 = arith.constant 0 : index
    %132 = vector.load %arg2[%c2_94, %c0_95, %c0_96] : memref<9x1x256xf32, #tpu.memory_space<vmem>>, vector<1x1x256xf32>
    %133 = vector.shape_cast %132 : vector<1x1x256xf32> to vector<1x256xf32>
    %134 = vector.broadcast %133 : vector<1x256xf32> to vector<16x256xf32>
    %135 = arith.mulf %131, %134 : vector<16x256xf32>
    %136 = arith.truncf %135 : vector<16x256xf32> to vector<16x256xbf16>
    %cst_97 = arith.constant dense<0.000000e+00> : vector<16x256xf32>
    %137 = tpu.matmul %130, %136, %cst_97 {dimension_numbers = #tpu.dot_dimension_numbers<[1], [0], [0], [1], [0, 0, 1, 1], [], []>} : vector<16x16xbf16>, vector<16x256xbf16>, vector<16x256xf32> -> vector<16x256xf32>
    %138 = arith.addf %128, %137 : vector<16x256xf32>
    %c1_98 = arith.constant 1 : index
    %c3_99 = arith.constant 3 : index
    %c0_100 = arith.constant 0 : index
    %c0_101 = arith.constant 0 : index
    %139 = vector.load %arg3[%c1_98, %c3_99, %c0_100, %c0_101] : memref<6x9x16x16xbf16, #tpu.memory_space<vmem>>, vector<1x1x16x16xbf16>
    %140 = vector.shape_cast %139 : vector<1x1x16x16xbf16> to vector<16x16xbf16>
    %c1_i32_102 = arith.constant 1 : i32
    %141 = tpu.dynamic_rotate %107 by %c1_i32_102 dim 1 : vector<16x256xf32>, i32 -> vector<16x256xf32>
    %c3_103 = arith.constant 3 : index
    %c0_104 = arith.constant 0 : index
    %c0_105 = arith.constant 0 : index
    %142 = vector.load %arg2[%c3_103, %c0_104, %c0_105] : memref<9x1x256xf32, #tpu.memory_space<vmem>>, vector<1x1x256xf32>
    %143 = vector.shape_cast %142 : vector<1x1x256xf32> to vector<1x256xf32>
    %144 = vector.broadcast %143 : vector<1x256xf32> to vector<16x256xf32>
    %145 = arith.mulf %141, %144 : vector<16x256xf32>
    %146 = arith.truncf %145 : vector<16x256xf32> to vector<16x256xbf16>
    %cst_106 = arith.constant dense<0.000000e+00> : vector<16x256xf32>
    %147 = tpu.matmul %140, %146, %cst_106 {dimension_numbers = #tpu.dot_dimension_numbers<[1], [0], [0], [1], [0, 0, 1, 1], [], []>} : vector<16x16xbf16>, vector<16x256xbf16>, vector<16x256xf32> -> vector<16x256xf32>
    %148 = arith.addf %138, %147 : vector<16x256xf32>
    %c1_107 = arith.constant 1 : index
    %c4_108 = arith.constant 4 : index
    %c0_109 = arith.constant 0 : index
    %c0_110 = arith.constant 0 : index
    %149 = vector.load %arg3[%c1_107, %c4_108, %c0_109, %c0_110] : memref<6x9x16x16xbf16, #tpu.memory_space<vmem>>, vector<1x1x16x16xbf16>
    %150 = vector.shape_cast %149 : vector<1x1x16x16xbf16> to vector<16x16xbf16>
    %151 = arith.truncf %107 : vector<16x256xf32> to vector<16x256xbf16>
    %cst_111 = arith.constant dense<0.000000e+00> : vector<16x256xf32>
    %152 = tpu.matmul %150, %151, %cst_111 {dimension_numbers = #tpu.dot_dimension_numbers<[1], [0], [0], [1], [0, 0, 1, 1], [], []>} : vector<16x16xbf16>, vector<16x256xbf16>, vector<16x256xf32> -> vector<16x256xf32>
    %153 = arith.addf %148, %152 : vector<16x256xf32>
    %c1_112 = arith.constant 1 : index
    %c5_113 = arith.constant 5 : index
    %c0_114 = arith.constant 0 : index
    %c0_115 = arith.constant 0 : index
    %154 = vector.load %arg3[%c1_112, %c5_113, %c0_114, %c0_115] : memref<6x9x16x16xbf16, #tpu.memory_space<vmem>>, vector<1x1x16x16xbf16>
    %155 = vector.shape_cast %154 : vector<1x1x16x16xbf16> to vector<16x16xbf16>
    %c255_i32_116 = arith.constant 255 : i32
    %156 = tpu.dynamic_rotate %107 by %c255_i32_116 dim 1 : vector<16x256xf32>, i32 -> vector<16x256xf32>
    %c5_117 = arith.constant 5 : index
    %c0_118 = arith.constant 0 : index
    %c0_119 = arith.constant 0 : index
    %157 = vector.load %arg2[%c5_117, %c0_118, %c0_119] : memref<9x1x256xf32, #tpu.memory_space<vmem>>, vector<1x1x256xf32>
    %158 = vector.shape_cast %157 : vector<1x1x256xf32> to vector<1x256xf32>
    %159 = vector.broadcast %158 : vector<1x256xf32> to vector<16x256xf32>
    %160 = arith.mulf %156, %159 : vector<16x256xf32>
    %161 = arith.truncf %160 : vector<16x256xf32> to vector<16x256xbf16>
    %cst_120 = arith.constant dense<0.000000e+00> : vector<16x256xf32>
    %162 = tpu.matmul %155, %161, %cst_120 {dimension_numbers = #tpu.dot_dimension_numbers<[1], [0], [0], [1], [0, 0, 1, 1], [], []>} : vector<16x16xbf16>, vector<16x256xbf16>, vector<16x256xf32> -> vector<16x256xf32>
    %163 = arith.addf %153, %162 : vector<16x256xf32>
    %c1_121 = arith.constant 1 : index
    %c6_122 = arith.constant 6 : index
    %c0_123 = arith.constant 0 : index
    %c0_124 = arith.constant 0 : index
    %164 = vector.load %arg3[%c1_121, %c6_122, %c0_123, %c0_124] : memref<6x9x16x16xbf16, #tpu.memory_space<vmem>>, vector<1x1x16x16xbf16>
    %165 = vector.shape_cast %164 : vector<1x1x16x16xbf16> to vector<16x16xbf16>
    %c241_i32_125 = arith.constant 241 : i32
    %166 = tpu.dynamic_rotate %107 by %c241_i32_125 dim 1 : vector<16x256xf32>, i32 -> vector<16x256xf32>
    %c6_126 = arith.constant 6 : index
    %c0_127 = arith.constant 0 : index
    %c0_128 = arith.constant 0 : index
    %167 = vector.load %arg2[%c6_126, %c0_127, %c0_128] : memref<9x1x256xf32, #tpu.memory_space<vmem>>, vector<1x1x256xf32>
    %168 = vector.shape_cast %167 : vector<1x1x256xf32> to vector<1x256xf32>
    %169 = vector.broadcast %168 : vector<1x256xf32> to vector<16x256xf32>
    %170 = arith.mulf %166, %169 : vector<16x256xf32>
    %171 = arith.truncf %170 : vector<16x256xf32> to vector<16x256xbf16>
    %cst_129 = arith.constant dense<0.000000e+00> : vector<16x256xf32>
    %172 = tpu.matmul %165, %171, %cst_129 {dimension_numbers = #tpu.dot_dimension_numbers<[1], [0], [0], [1], [0, 0, 1, 1], [], []>} : vector<16x16xbf16>, vector<16x256xbf16>, vector<16x256xf32> -> vector<16x256xf32>
    %173 = arith.addf %163, %172 : vector<16x256xf32>
    %c1_130 = arith.constant 1 : index
    %c7_131 = arith.constant 7 : index
    %c0_132 = arith.constant 0 : index
    %c0_133 = arith.constant 0 : index
    %174 = vector.load %arg3[%c1_130, %c7_131, %c0_132, %c0_133] : memref<6x9x16x16xbf16, #tpu.memory_space<vmem>>, vector<1x1x16x16xbf16>
    %175 = vector.shape_cast %174 : vector<1x1x16x16xbf16> to vector<16x16xbf16>
    %c240_i32_134 = arith.constant 240 : i32
    %176 = tpu.dynamic_rotate %107 by %c240_i32_134 dim 1 : vector<16x256xf32>, i32 -> vector<16x256xf32>
    %c7_135 = arith.constant 7 : index
    %c0_136 = arith.constant 0 : index
    %c0_137 = arith.constant 0 : index
    %177 = vector.load %arg2[%c7_135, %c0_136, %c0_137] : memref<9x1x256xf32, #tpu.memory_space<vmem>>, vector<1x1x256xf32>
    %178 = vector.shape_cast %177 : vector<1x1x256xf32> to vector<1x256xf32>
    %179 = vector.broadcast %178 : vector<1x256xf32> to vector<16x256xf32>
    %180 = arith.mulf %176, %179 : vector<16x256xf32>
    %181 = arith.truncf %180 : vector<16x256xf32> to vector<16x256xbf16>
    %cst_138 = arith.constant dense<0.000000e+00> : vector<16x256xf32>
    %182 = tpu.matmul %175, %181, %cst_138 {dimension_numbers = #tpu.dot_dimension_numbers<[1], [0], [0], [1], [0, 0, 1, 1], [], []>} : vector<16x16xbf16>, vector<16x256xbf16>, vector<16x256xf32> -> vector<16x256xf32>
    %183 = arith.addf %173, %182 : vector<16x256xf32>
    %c1_139 = arith.constant 1 : index
    %c8_140 = arith.constant 8 : index
    %c0_141 = arith.constant 0 : index
    %c0_142 = arith.constant 0 : index
    %184 = vector.load %arg3[%c1_139, %c8_140, %c0_141, %c0_142] : memref<6x9x16x16xbf16, #tpu.memory_space<vmem>>, vector<1x1x16x16xbf16>
    %185 = vector.shape_cast %184 : vector<1x1x16x16xbf16> to vector<16x16xbf16>
    %c239_i32_143 = arith.constant 239 : i32
    %186 = tpu.dynamic_rotate %107 by %c239_i32_143 dim 1 : vector<16x256xf32>, i32 -> vector<16x256xf32>
    %c8_144 = arith.constant 8 : index
    %c0_145 = arith.constant 0 : index
    %c0_146 = arith.constant 0 : index
    %187 = vector.load %arg2[%c8_144, %c0_145, %c0_146] : memref<9x1x256xf32, #tpu.memory_space<vmem>>, vector<1x1x256xf32>
    %188 = vector.shape_cast %187 : vector<1x1x256xf32> to vector<1x256xf32>
    %189 = vector.broadcast %188 : vector<1x256xf32> to vector<16x256xf32>
    %190 = arith.mulf %186, %189 : vector<16x256xf32>
    %191 = arith.truncf %190 : vector<16x256xf32> to vector<16x256xbf16>
    %cst_147 = arith.constant dense<0.000000e+00> : vector<16x256xf32>
    %192 = tpu.matmul %185, %191, %cst_147 {dimension_numbers = #tpu.dot_dimension_numbers<[1], [0], [0], [1], [0, 0, 1, 1], [], []>} : vector<16x16xbf16>, vector<16x256xbf16>, vector<16x256xf32> -> vector<16x256xf32>
    %193 = arith.addf %183, %192 : vector<16x256xf32>
    %c1_148 = arith.constant 1 : index
    %c0_149 = arith.constant 0 : index
    %c0_150 = arith.constant 0 : index
    %194 = vector.load %arg4[%c1_148, %c0_149, %c0_150] : memref<6x16x1xf32, #tpu.memory_space<vmem>>, vector<1x16x1xf32>
    %195 = vector.shape_cast %194 : vector<1x16x1xf32> to vector<16x1xf32>
    %196 = vector.broadcast %195 : vector<16x1xf32> to vector<16x256xf32>
    %197 = arith.addf %193, %196 : vector<16x256xf32>
    %cst_151 = arith.constant 0.000000e+00 : f32
    %198 = vector.broadcast %cst_151 : f32 to vector<16x256xf32>
    %199 = arith.cmpf oge, %197, %198 : vector<16x256xf32>
    %c1_152 = arith.constant 1 : index
    %c0_153 = arith.constant 0 : index
    %c0_154 = arith.constant 0 : index
    %200 = vector.load %arg5[%c1_152, %c0_153, %c0_154] : memref<6x16x1xf32, #tpu.memory_space<vmem>>, vector<1x16x1xf32>
    %201 = vector.shape_cast %200 : vector<1x16x1xf32> to vector<16x1xf32>
    %202 = vector.broadcast %201 : vector<16x1xf32> to vector<16x256xf32>
    %203 = arith.mulf %202, %197 : vector<16x256xf32>
    %204 = arith.select %199, %197, %203 : vector<16x256xi1>, vector<16x256xf32>
    %205 = vector.broadcast %7 : vector<16x1xf32> to vector<16x256xf32>
    %206 = arith.mulf %204, %205 : vector<16x256xf32>
    %cst_155 = arith.constant 0.000000e+00 : f32
    %207 = vector.broadcast %cst_155 : f32 to vector<16x256xf32>
    %c2_156 = arith.constant 2 : index
    %c0_157 = arith.constant 0 : index
    %c0_158 = arith.constant 0 : index
    %c0_159 = arith.constant 0 : index
    %208 = vector.load %arg3[%c2_156, %c0_157, %c0_158, %c0_159] : memref<6x9x16x16xbf16, #tpu.memory_space<vmem>>, vector<1x1x16x16xbf16>
    %209 = vector.shape_cast %208 : vector<1x1x16x16xbf16> to vector<16x16xbf16>
    %c17_i32_160 = arith.constant 17 : i32
    %210 = tpu.dynamic_rotate %204 by %c17_i32_160 dim 1 : vector<16x256xf32>, i32 -> vector<16x256xf32>
    %c0_161 = arith.constant 0 : index
    %c0_162 = arith.constant 0 : index
    %c0_163 = arith.constant 0 : index
    %211 = vector.load %arg2[%c0_161, %c0_162, %c0_163] : memref<9x1x256xf32, #tpu.memory_space<vmem>>, vector<1x1x256xf32>
    %212 = vector.shape_cast %211 : vector<1x1x256xf32> to vector<1x256xf32>
    %213 = vector.broadcast %212 : vector<1x256xf32> to vector<16x256xf32>
    %214 = arith.mulf %210, %213 : vector<16x256xf32>
    %215 = arith.truncf %214 : vector<16x256xf32> to vector<16x256xbf16>
    %cst_164 = arith.constant dense<0.000000e+00> : vector<16x256xf32>
    %216 = tpu.matmul %209, %215, %cst_164 {dimension_numbers = #tpu.dot_dimension_numbers<[1], [0], [0], [1], [0, 0, 1, 1], [], []>} : vector<16x16xbf16>, vector<16x256xbf16>, vector<16x256xf32> -> vector<16x256xf32>
    %217 = arith.addf %207, %216 : vector<16x256xf32>
    %c2_165 = arith.constant 2 : index
    %c1_166 = arith.constant 1 : index
    %c0_167 = arith.constant 0 : index
    %c0_168 = arith.constant 0 : index
    %218 = vector.load %arg3[%c2_165, %c1_166, %c0_167, %c0_168] : memref<6x9x16x16xbf16, #tpu.memory_space<vmem>>, vector<1x1x16x16xbf16>
    %219 = vector.shape_cast %218 : vector<1x1x16x16xbf16> to vector<16x16xbf16>
    %c16_i32_169 = arith.constant 16 : i32
    %220 = tpu.dynamic_rotate %204 by %c16_i32_169 dim 1 : vector<16x256xf32>, i32 -> vector<16x256xf32>
    %c1_170 = arith.constant 1 : index
    %c0_171 = arith.constant 0 : index
    %c0_172 = arith.constant 0 : index
    %221 = vector.load %arg2[%c1_170, %c0_171, %c0_172] : memref<9x1x256xf32, #tpu.memory_space<vmem>>, vector<1x1x256xf32>
    %222 = vector.shape_cast %221 : vector<1x1x256xf32> to vector<1x256xf32>
    %223 = vector.broadcast %222 : vector<1x256xf32> to vector<16x256xf32>
    %224 = arith.mulf %220, %223 : vector<16x256xf32>
    %225 = arith.truncf %224 : vector<16x256xf32> to vector<16x256xbf16>
    %cst_173 = arith.constant dense<0.000000e+00> : vector<16x256xf32>
    %226 = tpu.matmul %219, %225, %cst_173 {dimension_numbers = #tpu.dot_dimension_numbers<[1], [0], [0], [1], [0, 0, 1, 1], [], []>} : vector<16x16xbf16>, vector<16x256xbf16>, vector<16x256xf32> -> vector<16x256xf32>
    %227 = arith.addf %217, %226 : vector<16x256xf32>
    %c2_174 = arith.constant 2 : index
    %c2_175 = arith.constant 2 : index
    %c0_176 = arith.constant 0 : index
    %c0_177 = arith.constant 0 : index
    %228 = vector.load %arg3[%c2_174, %c2_175, %c0_176, %c0_177] : memref<6x9x16x16xbf16, #tpu.memory_space<vmem>>, vector<1x1x16x16xbf16>
    %229 = vector.shape_cast %228 : vector<1x1x16x16xbf16> to vector<16x16xbf16>
    %c15_i32_178 = arith.constant 15 : i32
    %230 = tpu.dynamic_rotate %204 by %c15_i32_178 dim 1 : vector<16x256xf32>, i32 -> vector<16x256xf32>
    %c2_179 = arith.constant 2 : index
    %c0_180 = arith.constant 0 : index
    %c0_181 = arith.constant 0 : index
    %231 = vector.load %arg2[%c2_179, %c0_180, %c0_181] : memref<9x1x256xf32, #tpu.memory_space<vmem>>, vector<1x1x256xf32>
    %232 = vector.shape_cast %231 : vector<1x1x256xf32> to vector<1x256xf32>
    %233 = vector.broadcast %232 : vector<1x256xf32> to vector<16x256xf32>
    %234 = arith.mulf %230, %233 : vector<16x256xf32>
    %235 = arith.truncf %234 : vector<16x256xf32> to vector<16x256xbf16>
    %cst_182 = arith.constant dense<0.000000e+00> : vector<16x256xf32>
    %236 = tpu.matmul %229, %235, %cst_182 {dimension_numbers = #tpu.dot_dimension_numbers<[1], [0], [0], [1], [0, 0, 1, 1], [], []>} : vector<16x16xbf16>, vector<16x256xbf16>, vector<16x256xf32> -> vector<16x256xf32>
    %237 = arith.addf %227, %236 : vector<16x256xf32>
    %c2_183 = arith.constant 2 : index
    %c3_184 = arith.constant 3 : index
    %c0_185 = arith.constant 0 : index
    %c0_186 = arith.constant 0 : index
    %238 = vector.load %arg3[%c2_183, %c3_184, %c0_185, %c0_186] : memref<6x9x16x16xbf16, #tpu.memory_space<vmem>>, vector<1x1x16x16xbf16>
    %239 = vector.shape_cast %238 : vector<1x1x16x16xbf16> to vector<16x16xbf16>
    %c1_i32_187 = arith.constant 1 : i32
    %240 = tpu.dynamic_rotate %204 by %c1_i32_187 dim 1 : vector<16x256xf32>, i32 -> vector<16x256xf32>
    %c3_188 = arith.constant 3 : index
    %c0_189 = arith.constant 0 : index
    %c0_190 = arith.constant 0 : index
    %241 = vector.load %arg2[%c3_188, %c0_189, %c0_190] : memref<9x1x256xf32, #tpu.memory_space<vmem>>, vector<1x1x256xf32>
    %242 = vector.shape_cast %241 : vector<1x1x256xf32> to vector<1x256xf32>
    %243 = vector.broadcast %242 : vector<1x256xf32> to vector<16x256xf32>
    %244 = arith.mulf %240, %243 : vector<16x256xf32>
    %245 = arith.truncf %244 : vector<16x256xf32> to vector<16x256xbf16>
    %cst_191 = arith.constant dense<0.000000e+00> : vector<16x256xf32>
    %246 = tpu.matmul %239, %245, %cst_191 {dimension_numbers = #tpu.dot_dimension_numbers<[1], [0], [0], [1], [0, 0, 1, 1], [], []>} : vector<16x16xbf16>, vector<16x256xbf16>, vector<16x256xf32> -> vector<16x256xf32>
    %247 = arith.addf %237, %246 : vector<16x256xf32>
    %c2_192 = arith.constant 2 : index
    %c4_193 = arith.constant 4 : index
    %c0_194 = arith.constant 0 : index
    %c0_195 = arith.constant 0 : index
    %248 = vector.load %arg3[%c2_192, %c4_193, %c0_194, %c0_195] : memref<6x9x16x16xbf16, #tpu.memory_space<vmem>>, vector<1x1x16x16xbf16>
    %249 = vector.shape_cast %248 : vector<1x1x16x16xbf16> to vector<16x16xbf16>
    %250 = arith.truncf %204 : vector<16x256xf32> to vector<16x256xbf16>
    %cst_196 = arith.constant dense<0.000000e+00> : vector<16x256xf32>
    %251 = tpu.matmul %249, %250, %cst_196 {dimension_numbers = #tpu.dot_dimension_numbers<[1], [0], [0], [1], [0, 0, 1, 1], [], []>} : vector<16x16xbf16>, vector<16x256xbf16>, vector<16x256xf32> -> vector<16x256xf32>
    %252 = arith.addf %247, %251 : vector<16x256xf32>
    %c2_197 = arith.constant 2 : index
    %c5_198 = arith.constant 5 : index
    %c0_199 = arith.constant 0 : index
    %c0_200 = arith.constant 0 : index
    %253 = vector.load %arg3[%c2_197, %c5_198, %c0_199, %c0_200] : memref<6x9x16x16xbf16, #tpu.memory_space<vmem>>, vector<1x1x16x16xbf16>
    %254 = vector.shape_cast %253 : vector<1x1x16x16xbf16> to vector<16x16xbf16>
    %c255_i32_201 = arith.constant 255 : i32
    %255 = tpu.dynamic_rotate %204 by %c255_i32_201 dim 1 : vector<16x256xf32>, i32 -> vector<16x256xf32>
    %c5_202 = arith.constant 5 : index
    %c0_203 = arith.constant 0 : index
    %c0_204 = arith.constant 0 : index
    %256 = vector.load %arg2[%c5_202, %c0_203, %c0_204] : memref<9x1x256xf32, #tpu.memory_space<vmem>>, vector<1x1x256xf32>
    %257 = vector.shape_cast %256 : vector<1x1x256xf32> to vector<1x256xf32>
    %258 = vector.broadcast %257 : vector<1x256xf32> to vector<16x256xf32>
    %259 = arith.mulf %255, %258 : vector<16x256xf32>
    %260 = arith.truncf %259 : vector<16x256xf32> to vector<16x256xbf16>
    %cst_205 = arith.constant dense<0.000000e+00> : vector<16x256xf32>
    %261 = tpu.matmul %254, %260, %cst_205 {dimension_numbers = #tpu.dot_dimension_numbers<[1], [0], [0], [1], [0, 0, 1, 1], [], []>} : vector<16x16xbf16>, vector<16x256xbf16>, vector<16x256xf32> -> vector<16x256xf32>
    %262 = arith.addf %252, %261 : vector<16x256xf32>
    %c2_206 = arith.constant 2 : index
    %c6_207 = arith.constant 6 : index
    %c0_208 = arith.constant 0 : index
    %c0_209 = arith.constant 0 : index
    %263 = vector.load %arg3[%c2_206, %c6_207, %c0_208, %c0_209] : memref<6x9x16x16xbf16, #tpu.memory_space<vmem>>, vector<1x1x16x16xbf16>
    %264 = vector.shape_cast %263 : vector<1x1x16x16xbf16> to vector<16x16xbf16>
    %c241_i32_210 = arith.constant 241 : i32
    %265 = tpu.dynamic_rotate %204 by %c241_i32_210 dim 1 : vector<16x256xf32>, i32 -> vector<16x256xf32>
    %c6_211 = arith.constant 6 : index
    %c0_212 = arith.constant 0 : index
    %c0_213 = arith.constant 0 : index
    %266 = vector.load %arg2[%c6_211, %c0_212, %c0_213] : memref<9x1x256xf32, #tpu.memory_space<vmem>>, vector<1x1x256xf32>
    %267 = vector.shape_cast %266 : vector<1x1x256xf32> to vector<1x256xf32>
    %268 = vector.broadcast %267 : vector<1x256xf32> to vector<16x256xf32>
    %269 = arith.mulf %265, %268 : vector<16x256xf32>
    %270 = arith.truncf %269 : vector<16x256xf32> to vector<16x256xbf16>
    %cst_214 = arith.constant dense<0.000000e+00> : vector<16x256xf32>
    %271 = tpu.matmul %264, %270, %cst_214 {dimension_numbers = #tpu.dot_dimension_numbers<[1], [0], [0], [1], [0, 0, 1, 1], [], []>} : vector<16x16xbf16>, vector<16x256xbf16>, vector<16x256xf32> -> vector<16x256xf32>
    %272 = arith.addf %262, %271 : vector<16x256xf32>
    %c2_215 = arith.constant 2 : index
    %c7_216 = arith.constant 7 : index
    %c0_217 = arith.constant 0 : index
    %c0_218 = arith.constant 0 : index
    %273 = vector.load %arg3[%c2_215, %c7_216, %c0_217, %c0_218] : memref<6x9x16x16xbf16, #tpu.memory_space<vmem>>, vector<1x1x16x16xbf16>
    %274 = vector.shape_cast %273 : vector<1x1x16x16xbf16> to vector<16x16xbf16>
    %c240_i32_219 = arith.constant 240 : i32
    %275 = tpu.dynamic_rotate %204 by %c240_i32_219 dim 1 : vector<16x256xf32>, i32 -> vector<16x256xf32>
    %c7_220 = arith.constant 7 : index
    %c0_221 = arith.constant 0 : index
    %c0_222 = arith.constant 0 : index
    %276 = vector.load %arg2[%c7_220, %c0_221, %c0_222] : memref<9x1x256xf32, #tpu.memory_space<vmem>>, vector<1x1x256xf32>
    %277 = vector.shape_cast %276 : vector<1x1x256xf32> to vector<1x256xf32>
    %278 = vector.broadcast %277 : vector<1x256xf32> to vector<16x256xf32>
    %279 = arith.mulf %275, %278 : vector<16x256xf32>
    %280 = arith.truncf %279 : vector<16x256xf32> to vector<16x256xbf16>
    %cst_223 = arith.constant dense<0.000000e+00> : vector<16x256xf32>
    %281 = tpu.matmul %274, %280, %cst_223 {dimension_numbers = #tpu.dot_dimension_numbers<[1], [0], [0], [1], [0, 0, 1, 1], [], []>} : vector<16x16xbf16>, vector<16x256xbf16>, vector<16x256xf32> -> vector<16x256xf32>
    %282 = arith.addf %272, %281 : vector<16x256xf32>
    %c2_224 = arith.constant 2 : index
    %c8_225 = arith.constant 8 : index
    %c0_226 = arith.constant 0 : index
    %c0_227 = arith.constant 0 : index
    %283 = vector.load %arg3[%c2_224, %c8_225, %c0_226, %c0_227] : memref<6x9x16x16xbf16, #tpu.memory_space<vmem>>, vector<1x1x16x16xbf16>
    %284 = vector.shape_cast %283 : vector<1x1x16x16xbf16> to vector<16x16xbf16>
    %c239_i32_228 = arith.constant 239 : i32
    %285 = tpu.dynamic_rotate %204 by %c239_i32_228 dim 1 : vector<16x256xf32>, i32 -> vector<16x256xf32>
    %c8_229 = arith.constant 8 : index
    %c0_230 = arith.constant 0 : index
    %c0_231 = arith.constant 0 : index
    %286 = vector.load %arg2[%c8_229, %c0_230, %c0_231] : memref<9x1x256xf32, #tpu.memory_space<vmem>>, vector<1x1x256xf32>
    %287 = vector.shape_cast %286 : vector<1x1x256xf32> to vector<1x256xf32>
    %288 = vector.broadcast %287 : vector<1x256xf32> to vector<16x256xf32>
    %289 = arith.mulf %285, %288 : vector<16x256xf32>
    %290 = arith.truncf %289 : vector<16x256xf32> to vector<16x256xbf16>
    %cst_232 = arith.constant dense<0.000000e+00> : vector<16x256xf32>
    %291 = tpu.matmul %284, %290, %cst_232 {dimension_numbers = #tpu.dot_dimension_numbers<[1], [0], [0], [1], [0, 0, 1, 1], [], []>} : vector<16x16xbf16>, vector<16x256xbf16>, vector<16x256xf32> -> vector<16x256xf32>
    %292 = arith.addf %282, %291 : vector<16x256xf32>
    %c2_233 = arith.constant 2 : index
    %c0_234 = arith.constant 0 : index
    %c0_235 = arith.constant 0 : index
    %293 = vector.load %arg4[%c2_233, %c0_234, %c0_235] : memref<6x16x1xf32, #tpu.memory_space<vmem>>, vector<1x16x1xf32>
    %294 = vector.shape_cast %293 : vector<1x16x1xf32> to vector<16x1xf32>
    %295 = vector.broadcast %294 : vector<16x1xf32> to vector<16x256xf32>
    %296 = arith.addf %292, %295 : vector<16x256xf32>
    %cst_236 = arith.constant 0.000000e+00 : f32
    %297 = vector.broadcast %cst_236 : f32 to vector<16x256xf32>
    %298 = arith.cmpf oge, %296, %297 : vector<16x256xf32>
    %c2_237 = arith.constant 2 : index
    %c0_238 = arith.constant 0 : index
    %c0_239 = arith.constant 0 : index
    %299 = vector.load %arg5[%c2_237, %c0_238, %c0_239] : memref<6x16x1xf32, #tpu.memory_space<vmem>>, vector<1x16x1xf32>
    %300 = vector.shape_cast %299 : vector<1x16x1xf32> to vector<16x1xf32>
    %301 = vector.broadcast %300 : vector<16x1xf32> to vector<16x256xf32>
    %302 = arith.mulf %301, %296 : vector<16x256xf32>
    %303 = arith.select %298, %296, %302 : vector<16x256xi1>, vector<16x256xf32>
    %304 = arith.addf %206, %303 : vector<16x256xf32>
    %cst_240 = arith.constant 0.000000e+00 : f32
    %305 = vector.broadcast %cst_240 : f32 to vector<16x256xf32>
    %c3_241 = arith.constant 3 : index
    %c0_242 = arith.constant 0 : index
    %c0_243 = arith.constant 0 : index
    %c0_244 = arith.constant 0 : index
    %306 = vector.load %arg3[%c3_241, %c0_242, %c0_243, %c0_244] : memref<6x9x16x16xbf16, #tpu.memory_space<vmem>>, vector<1x1x16x16xbf16>
    %307 = vector.shape_cast %306 : vector<1x1x16x16xbf16> to vector<16x16xbf16>
    %c17_i32_245 = arith.constant 17 : i32
    %308 = tpu.dynamic_rotate %304 by %c17_i32_245 dim 1 : vector<16x256xf32>, i32 -> vector<16x256xf32>
    %c0_246 = arith.constant 0 : index
    %c0_247 = arith.constant 0 : index
    %c0_248 = arith.constant 0 : index
    %309 = vector.load %arg2[%c0_246, %c0_247, %c0_248] : memref<9x1x256xf32, #tpu.memory_space<vmem>>, vector<1x1x256xf32>
    %310 = vector.shape_cast %309 : vector<1x1x256xf32> to vector<1x256xf32>
    %311 = vector.broadcast %310 : vector<1x256xf32> to vector<16x256xf32>
    %312 = arith.mulf %308, %311 : vector<16x256xf32>
    %313 = arith.truncf %312 : vector<16x256xf32> to vector<16x256xbf16>
    %cst_249 = arith.constant dense<0.000000e+00> : vector<16x256xf32>
    %314 = tpu.matmul %307, %313, %cst_249 {dimension_numbers = #tpu.dot_dimension_numbers<[1], [0], [0], [1], [0, 0, 1, 1], [], []>} : vector<16x16xbf16>, vector<16x256xbf16>, vector<16x256xf32> -> vector<16x256xf32>
    %315 = arith.addf %305, %314 : vector<16x256xf32>
    %c3_250 = arith.constant 3 : index
    %c1_251 = arith.constant 1 : index
    %c0_252 = arith.constant 0 : index
    %c0_253 = arith.constant 0 : index
    %316 = vector.load %arg3[%c3_250, %c1_251, %c0_252, %c0_253] : memref<6x9x16x16xbf16, #tpu.memory_space<vmem>>, vector<1x1x16x16xbf16>
    %317 = vector.shape_cast %316 : vector<1x1x16x16xbf16> to vector<16x16xbf16>
    %c16_i32_254 = arith.constant 16 : i32
    %318 = tpu.dynamic_rotate %304 by %c16_i32_254 dim 1 : vector<16x256xf32>, i32 -> vector<16x256xf32>
    %c1_255 = arith.constant 1 : index
    %c0_256 = arith.constant 0 : index
    %c0_257 = arith.constant 0 : index
    %319 = vector.load %arg2[%c1_255, %c0_256, %c0_257] : memref<9x1x256xf32, #tpu.memory_space<vmem>>, vector<1x1x256xf32>
    %320 = vector.shape_cast %319 : vector<1x1x256xf32> to vector<1x256xf32>
    %321 = vector.broadcast %320 : vector<1x256xf32> to vector<16x256xf32>
    %322 = arith.mulf %318, %321 : vector<16x256xf32>
    %323 = arith.truncf %322 : vector<16x256xf32> to vector<16x256xbf16>
    %cst_258 = arith.constant dense<0.000000e+00> : vector<16x256xf32>
    %324 = tpu.matmul %317, %323, %cst_258 {dimension_numbers = #tpu.dot_dimension_numbers<[1], [0], [0], [1], [0, 0, 1, 1], [], []>} : vector<16x16xbf16>, vector<16x256xbf16>, vector<16x256xf32> -> vector<16x256xf32>
    %325 = arith.addf %315, %324 : vector<16x256xf32>
    %c3_259 = arith.constant 3 : index
    %c2_260 = arith.constant 2 : index
    %c0_261 = arith.constant 0 : index
    %c0_262 = arith.constant 0 : index
    %326 = vector.load %arg3[%c3_259, %c2_260, %c0_261, %c0_262] : memref<6x9x16x16xbf16, #tpu.memory_space<vmem>>, vector<1x1x16x16xbf16>
    %327 = vector.shape_cast %326 : vector<1x1x16x16xbf16> to vector<16x16xbf16>
    %c15_i32_263 = arith.constant 15 : i32
    %328 = tpu.dynamic_rotate %304 by %c15_i32_263 dim 1 : vector<16x256xf32>, i32 -> vector<16x256xf32>
    %c2_264 = arith.constant 2 : index
    %c0_265 = arith.constant 0 : index
    %c0_266 = arith.constant 0 : index
    %329 = vector.load %arg2[%c2_264, %c0_265, %c0_266] : memref<9x1x256xf32, #tpu.memory_space<vmem>>, vector<1x1x256xf32>
    %330 = vector.shape_cast %329 : vector<1x1x256xf32> to vector<1x256xf32>
    %331 = vector.broadcast %330 : vector<1x256xf32> to vector<16x256xf32>
    %332 = arith.mulf %328, %331 : vector<16x256xf32>
    %333 = arith.truncf %332 : vector<16x256xf32> to vector<16x256xbf16>
    %cst_267 = arith.constant dense<0.000000e+00> : vector<16x256xf32>
    %334 = tpu.matmul %327, %333, %cst_267 {dimension_numbers = #tpu.dot_dimension_numbers<[1], [0], [0], [1], [0, 0, 1, 1], [], []>} : vector<16x16xbf16>, vector<16x256xbf16>, vector<16x256xf32> -> vector<16x256xf32>
    %335 = arith.addf %325, %334 : vector<16x256xf32>
    %c3_268 = arith.constant 3 : index
    %c3_269 = arith.constant 3 : index
    %c0_270 = arith.constant 0 : index
    %c0_271 = arith.constant 0 : index
    %336 = vector.load %arg3[%c3_268, %c3_269, %c0_270, %c0_271] : memref<6x9x16x16xbf16, #tpu.memory_space<vmem>>, vector<1x1x16x16xbf16>
    %337 = vector.shape_cast %336 : vector<1x1x16x16xbf16> to vector<16x16xbf16>
    %c1_i32_272 = arith.constant 1 : i32
    %338 = tpu.dynamic_rotate %304 by %c1_i32_272 dim 1 : vector<16x256xf32>, i32 -> vector<16x256xf32>
    %c3_273 = arith.constant 3 : index
    %c0_274 = arith.constant 0 : index
    %c0_275 = arith.constant 0 : index
    %339 = vector.load %arg2[%c3_273, %c0_274, %c0_275] : memref<9x1x256xf32, #tpu.memory_space<vmem>>, vector<1x1x256xf32>
    %340 = vector.shape_cast %339 : vector<1x1x256xf32> to vector<1x256xf32>
    %341 = vector.broadcast %340 : vector<1x256xf32> to vector<16x256xf32>
    %342 = arith.mulf %338, %341 : vector<16x256xf32>
    %343 = arith.truncf %342 : vector<16x256xf32> to vector<16x256xbf16>
    %cst_276 = arith.constant dense<0.000000e+00> : vector<16x256xf32>
    %344 = tpu.matmul %337, %343, %cst_276 {dimension_numbers = #tpu.dot_dimension_numbers<[1], [0], [0], [1], [0, 0, 1, 1], [], []>} : vector<16x16xbf16>, vector<16x256xbf16>, vector<16x256xf32> -> vector<16x256xf32>
    %345 = arith.addf %335, %344 : vector<16x256xf32>
    %c3_277 = arith.constant 3 : index
    %c4_278 = arith.constant 4 : index
    %c0_279 = arith.constant 0 : index
    %c0_280 = arith.constant 0 : index
    %346 = vector.load %arg3[%c3_277, %c4_278, %c0_279, %c0_280] : memref<6x9x16x16xbf16, #tpu.memory_space<vmem>>, vector<1x1x16x16xbf16>
    %347 = vector.shape_cast %346 : vector<1x1x16x16xbf16> to vector<16x16xbf16>
    %348 = arith.truncf %304 : vector<16x256xf32> to vector<16x256xbf16>
    %cst_281 = arith.constant dense<0.000000e+00> : vector<16x256xf32>
    %349 = tpu.matmul %347, %348, %cst_281 {dimension_numbers = #tpu.dot_dimension_numbers<[1], [0], [0], [1], [0, 0, 1, 1], [], []>} : vector<16x16xbf16>, vector<16x256xbf16>, vector<16x256xf32> -> vector<16x256xf32>
    %350 = arith.addf %345, %349 : vector<16x256xf32>
    %c3_282 = arith.constant 3 : index
    %c5_283 = arith.constant 5 : index
    %c0_284 = arith.constant 0 : index
    %c0_285 = arith.constant 0 : index
    %351 = vector.load %arg3[%c3_282, %c5_283, %c0_284, %c0_285] : memref<6x9x16x16xbf16, #tpu.memory_space<vmem>>, vector<1x1x16x16xbf16>
    %352 = vector.shape_cast %351 : vector<1x1x16x16xbf16> to vector<16x16xbf16>
    %c255_i32_286 = arith.constant 255 : i32
    %353 = tpu.dynamic_rotate %304 by %c255_i32_286 dim 1 : vector<16x256xf32>, i32 -> vector<16x256xf32>
    %c5_287 = arith.constant 5 : index
    %c0_288 = arith.constant 0 : index
    %c0_289 = arith.constant 0 : index
    %354 = vector.load %arg2[%c5_287, %c0_288, %c0_289] : memref<9x1x256xf32, #tpu.memory_space<vmem>>, vector<1x1x256xf32>
    %355 = vector.shape_cast %354 : vector<1x1x256xf32> to vector<1x256xf32>
    %356 = vector.broadcast %355 : vector<1x256xf32> to vector<16x256xf32>
    %357 = arith.mulf %353, %356 : vector<16x256xf32>
    %358 = arith.truncf %357 : vector<16x256xf32> to vector<16x256xbf16>
    %cst_290 = arith.constant dense<0.000000e+00> : vector<16x256xf32>
    %359 = tpu.matmul %352, %358, %cst_290 {dimension_numbers = #tpu.dot_dimension_numbers<[1], [0], [0], [1], [0, 0, 1, 1], [], []>} : vector<16x16xbf16>, vector<16x256xbf16>, vector<16x256xf32> -> vector<16x256xf32>
    %360 = arith.addf %350, %359 : vector<16x256xf32>
    %c3_291 = arith.constant 3 : index
    %c6_292 = arith.constant 6 : index
    %c0_293 = arith.constant 0 : index
    %c0_294 = arith.constant 0 : index
    %361 = vector.load %arg3[%c3_291, %c6_292, %c0_293, %c0_294] : memref<6x9x16x16xbf16, #tpu.memory_space<vmem>>, vector<1x1x16x16xbf16>
    %362 = vector.shape_cast %361 : vector<1x1x16x16xbf16> to vector<16x16xbf16>
    %c241_i32_295 = arith.constant 241 : i32
    %363 = tpu.dynamic_rotate %304 by %c241_i32_295 dim 1 : vector<16x256xf32>, i32 -> vector<16x256xf32>
    %c6_296 = arith.constant 6 : index
    %c0_297 = arith.constant 0 : index
    %c0_298 = arith.constant 0 : index
    %364 = vector.load %arg2[%c6_296, %c0_297, %c0_298] : memref<9x1x256xf32, #tpu.memory_space<vmem>>, vector<1x1x256xf32>
    %365 = vector.shape_cast %364 : vector<1x1x256xf32> to vector<1x256xf32>
    %366 = vector.broadcast %365 : vector<1x256xf32> to vector<16x256xf32>
    %367 = arith.mulf %363, %366 : vector<16x256xf32>
    %368 = arith.truncf %367 : vector<16x256xf32> to vector<16x256xbf16>
    %cst_299 = arith.constant dense<0.000000e+00> : vector<16x256xf32>
    %369 = tpu.matmul %362, %368, %cst_299 {dimension_numbers = #tpu.dot_dimension_numbers<[1], [0], [0], [1], [0, 0, 1, 1], [], []>} : vector<16x16xbf16>, vector<16x256xbf16>, vector<16x256xf32> -> vector<16x256xf32>
    %370 = arith.addf %360, %369 : vector<16x256xf32>
    %c3_300 = arith.constant 3 : index
    %c7_301 = arith.constant 7 : index
    %c0_302 = arith.constant 0 : index
    %c0_303 = arith.constant 0 : index
    %371 = vector.load %arg3[%c3_300, %c7_301, %c0_302, %c0_303] : memref<6x9x16x16xbf16, #tpu.memory_space<vmem>>, vector<1x1x16x16xbf16>
    %372 = vector.shape_cast %371 : vector<1x1x16x16xbf16> to vector<16x16xbf16>
    %c240_i32_304 = arith.constant 240 : i32
    %373 = tpu.dynamic_rotate %304 by %c240_i32_304 dim 1 : vector<16x256xf32>, i32 -> vector<16x256xf32>
    %c7_305 = arith.constant 7 : index
    %c0_306 = arith.constant 0 : index
    %c0_307 = arith.constant 0 : index
    %374 = vector.load %arg2[%c7_305, %c0_306, %c0_307] : memref<9x1x256xf32, #tpu.memory_space<vmem>>, vector<1x1x256xf32>
    %375 = vector.shape_cast %374 : vector<1x1x256xf32> to vector<1x256xf32>
    %376 = vector.broadcast %375 : vector<1x256xf32> to vector<16x256xf32>
    %377 = arith.mulf %373, %376 : vector<16x256xf32>
    %378 = arith.truncf %377 : vector<16x256xf32> to vector<16x256xbf16>
    %cst_308 = arith.constant dense<0.000000e+00> : vector<16x256xf32>
    %379 = tpu.matmul %372, %378, %cst_308 {dimension_numbers = #tpu.dot_dimension_numbers<[1], [0], [0], [1], [0, 0, 1, 1], [], []>} : vector<16x16xbf16>, vector<16x256xbf16>, vector<16x256xf32> -> vector<16x256xf32>
    %380 = arith.addf %370, %379 : vector<16x256xf32>
    %c3_309 = arith.constant 3 : index
    %c8_310 = arith.constant 8 : index
    %c0_311 = arith.constant 0 : index
    %c0_312 = arith.constant 0 : index
    %381 = vector.load %arg3[%c3_309, %c8_310, %c0_311, %c0_312] : memref<6x9x16x16xbf16, #tpu.memory_space<vmem>>, vector<1x1x16x16xbf16>
    %382 = vector.shape_cast %381 : vector<1x1x16x16xbf16> to vector<16x16xbf16>
    %c239_i32_313 = arith.constant 239 : i32
    %383 = tpu.dynamic_rotate %304 by %c239_i32_313 dim 1 : vector<16x256xf32>, i32 -> vector<16x256xf32>
    %c8_314 = arith.constant 8 : index
    %c0_315 = arith.constant 0 : index
    %c0_316 = arith.constant 0 : index
    %384 = vector.load %arg2[%c8_314, %c0_315, %c0_316] : memref<9x1x256xf32, #tpu.memory_space<vmem>>, vector<1x1x256xf32>
    %385 = vector.shape_cast %384 : vector<1x1x256xf32> to vector<1x256xf32>
    %386 = vector.broadcast %385 : vector<1x256xf32> to vector<16x256xf32>
    %387 = arith.mulf %383, %386 : vector<16x256xf32>
    %388 = arith.truncf %387 : vector<16x256xf32> to vector<16x256xbf16>
    %cst_317 = arith.constant dense<0.000000e+00> : vector<16x256xf32>
    %389 = tpu.matmul %382, %388, %cst_317 {dimension_numbers = #tpu.dot_dimension_numbers<[1], [0], [0], [1], [0, 0, 1, 1], [], []>} : vector<16x16xbf16>, vector<16x256xbf16>, vector<16x256xf32> -> vector<16x256xf32>
    %390 = arith.addf %380, %389 : vector<16x256xf32>
    %c3_318 = arith.constant 3 : index
    %c0_319 = arith.constant 0 : index
    %c0_320 = arith.constant 0 : index
    %391 = vector.load %arg4[%c3_318, %c0_319, %c0_320] : memref<6x16x1xf32, #tpu.memory_space<vmem>>, vector<1x16x1xf32>
    %392 = vector.shape_cast %391 : vector<1x16x1xf32> to vector<16x1xf32>
    %393 = vector.broadcast %392 : vector<16x1xf32> to vector<16x256xf32>
    %394 = arith.addf %390, %393 : vector<16x256xf32>
    %cst_321 = arith.constant 0.000000e+00 : f32
    %395 = vector.broadcast %cst_321 : f32 to vector<16x256xf32>
    %396 = arith.cmpf oge, %394, %395 : vector<16x256xf32>
    %c3_322 = arith.constant 3 : index
    %c0_323 = arith.constant 0 : index
    %c0_324 = arith.constant 0 : index
    %397 = vector.load %arg5[%c3_322, %c0_323, %c0_324] : memref<6x16x1xf32, #tpu.memory_space<vmem>>, vector<1x16x1xf32>
    %398 = vector.shape_cast %397 : vector<1x16x1xf32> to vector<16x1xf32>
    %399 = vector.broadcast %398 : vector<16x1xf32> to vector<16x256xf32>
    %400 = arith.mulf %399, %394 : vector<16x256xf32>
    %401 = arith.select %396, %394, %400 : vector<16x256xi1>, vector<16x256xf32>
    %402 = vector.broadcast %7 : vector<16x1xf32> to vector<16x256xf32>
    %403 = arith.mulf %401, %402 : vector<16x256xf32>
    %cst_325 = arith.constant 0.000000e+00 : f32
    %404 = vector.broadcast %cst_325 : f32 to vector<16x256xf32>
    %c4_326 = arith.constant 4 : index
    %c0_327 = arith.constant 0 : index
    %c0_328 = arith.constant 0 : index
    %c0_329 = arith.constant 0 : index
    %405 = vector.load %arg3[%c4_326, %c0_327, %c0_328, %c0_329] : memref<6x9x16x16xbf16, #tpu.memory_space<vmem>>, vector<1x1x16x16xbf16>
    %406 = vector.shape_cast %405 : vector<1x1x16x16xbf16> to vector<16x16xbf16>
    %c17_i32_330 = arith.constant 17 : i32
    %407 = tpu.dynamic_rotate %401 by %c17_i32_330 dim 1 : vector<16x256xf32>, i32 -> vector<16x256xf32>
    %c0_331 = arith.constant 0 : index
    %c0_332 = arith.constant 0 : index
    %c0_333 = arith.constant 0 : index
    %408 = vector.load %arg2[%c0_331, %c0_332, %c0_333] : memref<9x1x256xf32, #tpu.memory_space<vmem>>, vector<1x1x256xf32>
    %409 = vector.shape_cast %408 : vector<1x1x256xf32> to vector<1x256xf32>
    %410 = vector.broadcast %409 : vector<1x256xf32> to vector<16x256xf32>
    %411 = arith.mulf %407, %410 : vector<16x256xf32>
    %412 = arith.truncf %411 : vector<16x256xf32> to vector<16x256xbf16>
    %cst_334 = arith.constant dense<0.000000e+00> : vector<16x256xf32>
    %413 = tpu.matmul %406, %412, %cst_334 {dimension_numbers = #tpu.dot_dimension_numbers<[1], [0], [0], [1], [0, 0, 1, 1], [], []>} : vector<16x16xbf16>, vector<16x256xbf16>, vector<16x256xf32> -> vector<16x256xf32>
    %414 = arith.addf %404, %413 : vector<16x256xf32>
    %c4_335 = arith.constant 4 : index
    %c1_336 = arith.constant 1 : index
    %c0_337 = arith.constant 0 : index
    %c0_338 = arith.constant 0 : index
    %415 = vector.load %arg3[%c4_335, %c1_336, %c0_337, %c0_338] : memref<6x9x16x16xbf16, #tpu.memory_space<vmem>>, vector<1x1x16x16xbf16>
    %416 = vector.shape_cast %415 : vector<1x1x16x16xbf16> to vector<16x16xbf16>
    %c16_i32_339 = arith.constant 16 : i32
    %417 = tpu.dynamic_rotate %401 by %c16_i32_339 dim 1 : vector<16x256xf32>, i32 -> vector<16x256xf32>
    %c1_340 = arith.constant 1 : index
    %c0_341 = arith.constant 0 : index
    %c0_342 = arith.constant 0 : index
    %418 = vector.load %arg2[%c1_340, %c0_341, %c0_342] : memref<9x1x256xf32, #tpu.memory_space<vmem>>, vector<1x1x256xf32>
    %419 = vector.shape_cast %418 : vector<1x1x256xf32> to vector<1x256xf32>
    %420 = vector.broadcast %419 : vector<1x256xf32> to vector<16x256xf32>
    %421 = arith.mulf %417, %420 : vector<16x256xf32>
    %422 = arith.truncf %421 : vector<16x256xf32> to vector<16x256xbf16>
    %cst_343 = arith.constant dense<0.000000e+00> : vector<16x256xf32>
    %423 = tpu.matmul %416, %422, %cst_343 {dimension_numbers = #tpu.dot_dimension_numbers<[1], [0], [0], [1], [0, 0, 1, 1], [], []>} : vector<16x16xbf16>, vector<16x256xbf16>, vector<16x256xf32> -> vector<16x256xf32>
    %424 = arith.addf %414, %423 : vector<16x256xf32>
    %c4_344 = arith.constant 4 : index
    %c2_345 = arith.constant 2 : index
    %c0_346 = arith.constant 0 : index
    %c0_347 = arith.constant 0 : index
    %425 = vector.load %arg3[%c4_344, %c2_345, %c0_346, %c0_347] : memref<6x9x16x16xbf16, #tpu.memory_space<vmem>>, vector<1x1x16x16xbf16>
    %426 = vector.shape_cast %425 : vector<1x1x16x16xbf16> to vector<16x16xbf16>
    %c15_i32_348 = arith.constant 15 : i32
    %427 = tpu.dynamic_rotate %401 by %c15_i32_348 dim 1 : vector<16x256xf32>, i32 -> vector<16x256xf32>
    %c2_349 = arith.constant 2 : index
    %c0_350 = arith.constant 0 : index
    %c0_351 = arith.constant 0 : index
    %428 = vector.load %arg2[%c2_349, %c0_350, %c0_351] : memref<9x1x256xf32, #tpu.memory_space<vmem>>, vector<1x1x256xf32>
    %429 = vector.shape_cast %428 : vector<1x1x256xf32> to vector<1x256xf32>
    %430 = vector.broadcast %429 : vector<1x256xf32> to vector<16x256xf32>
    %431 = arith.mulf %427, %430 : vector<16x256xf32>
    %432 = arith.truncf %431 : vector<16x256xf32> to vector<16x256xbf16>
    %cst_352 = arith.constant dense<0.000000e+00> : vector<16x256xf32>
    %433 = tpu.matmul %426, %432, %cst_352 {dimension_numbers = #tpu.dot_dimension_numbers<[1], [0], [0], [1], [0, 0, 1, 1], [], []>} : vector<16x16xbf16>, vector<16x256xbf16>, vector<16x256xf32> -> vector<16x256xf32>
    %434 = arith.addf %424, %433 : vector<16x256xf32>
    %c4_353 = arith.constant 4 : index
    %c3_354 = arith.constant 3 : index
    %c0_355 = arith.constant 0 : index
    %c0_356 = arith.constant 0 : index
    %435 = vector.load %arg3[%c4_353, %c3_354, %c0_355, %c0_356] : memref<6x9x16x16xbf16, #tpu.memory_space<vmem>>, vector<1x1x16x16xbf16>
    %436 = vector.shape_cast %435 : vector<1x1x16x16xbf16> to vector<16x16xbf16>
    %c1_i32_357 = arith.constant 1 : i32
    %437 = tpu.dynamic_rotate %401 by %c1_i32_357 dim 1 : vector<16x256xf32>, i32 -> vector<16x256xf32>
    %c3_358 = arith.constant 3 : index
    %c0_359 = arith.constant 0 : index
    %c0_360 = arith.constant 0 : index
    %438 = vector.load %arg2[%c3_358, %c0_359, %c0_360] : memref<9x1x256xf32, #tpu.memory_space<vmem>>, vector<1x1x256xf32>
    %439 = vector.shape_cast %438 : vector<1x1x256xf32> to vector<1x256xf32>
    %440 = vector.broadcast %439 : vector<1x256xf32> to vector<16x256xf32>
    %441 = arith.mulf %437, %440 : vector<16x256xf32>
    %442 = arith.truncf %441 : vector<16x256xf32> to vector<16x256xbf16>
    %cst_361 = arith.constant dense<0.000000e+00> : vector<16x256xf32>
    %443 = tpu.matmul %436, %442, %cst_361 {dimension_numbers = #tpu.dot_dimension_numbers<[1], [0], [0], [1], [0, 0, 1, 1], [], []>} : vector<16x16xbf16>, vector<16x256xbf16>, vector<16x256xf32> -> vector<16x256xf32>
    %444 = arith.addf %434, %443 : vector<16x256xf32>
    %c4_362 = arith.constant 4 : index
    %c4_363 = arith.constant 4 : index
    %c0_364 = arith.constant 0 : index
    %c0_365 = arith.constant 0 : index
    %445 = vector.load %arg3[%c4_362, %c4_363, %c0_364, %c0_365] : memref<6x9x16x16xbf16, #tpu.memory_space<vmem>>, vector<1x1x16x16xbf16>
    %446 = vector.shape_cast %445 : vector<1x1x16x16xbf16> to vector<16x16xbf16>
    %447 = arith.truncf %401 : vector<16x256xf32> to vector<16x256xbf16>
    %cst_366 = arith.constant dense<0.000000e+00> : vector<16x256xf32>
    %448 = tpu.matmul %446, %447, %cst_366 {dimension_numbers = #tpu.dot_dimension_numbers<[1], [0], [0], [1], [0, 0, 1, 1], [], []>} : vector<16x16xbf16>, vector<16x256xbf16>, vector<16x256xf32> -> vector<16x256xf32>
    %449 = arith.addf %444, %448 : vector<16x256xf32>
    %c4_367 = arith.constant 4 : index
    %c5_368 = arith.constant 5 : index
    %c0_369 = arith.constant 0 : index
    %c0_370 = arith.constant 0 : index
    %450 = vector.load %arg3[%c4_367, %c5_368, %c0_369, %c0_370] : memref<6x9x16x16xbf16, #tpu.memory_space<vmem>>, vector<1x1x16x16xbf16>
    %451 = vector.shape_cast %450 : vector<1x1x16x16xbf16> to vector<16x16xbf16>
    %c255_i32_371 = arith.constant 255 : i32
    %452 = tpu.dynamic_rotate %401 by %c255_i32_371 dim 1 : vector<16x256xf32>, i32 -> vector<16x256xf32>
    %c5_372 = arith.constant 5 : index
    %c0_373 = arith.constant 0 : index
    %c0_374 = arith.constant 0 : index
    %453 = vector.load %arg2[%c5_372, %c0_373, %c0_374] : memref<9x1x256xf32, #tpu.memory_space<vmem>>, vector<1x1x256xf32>
    %454 = vector.shape_cast %453 : vector<1x1x256xf32> to vector<1x256xf32>
    %455 = vector.broadcast %454 : vector<1x256xf32> to vector<16x256xf32>
    %456 = arith.mulf %452, %455 : vector<16x256xf32>
    %457 = arith.truncf %456 : vector<16x256xf32> to vector<16x256xbf16>
    %cst_375 = arith.constant dense<0.000000e+00> : vector<16x256xf32>
    %458 = tpu.matmul %451, %457, %cst_375 {dimension_numbers = #tpu.dot_dimension_numbers<[1], [0], [0], [1], [0, 0, 1, 1], [], []>} : vector<16x16xbf16>, vector<16x256xbf16>, vector<16x256xf32> -> vector<16x256xf32>
    %459 = arith.addf %449, %458 : vector<16x256xf32>
    %c4_376 = arith.constant 4 : index
    %c6_377 = arith.constant 6 : index
    %c0_378 = arith.constant 0 : index
    %c0_379 = arith.constant 0 : index
    %460 = vector.load %arg3[%c4_376, %c6_377, %c0_378, %c0_379] : memref<6x9x16x16xbf16, #tpu.memory_space<vmem>>, vector<1x1x16x16xbf16>
    %461 = vector.shape_cast %460 : vector<1x1x16x16xbf16> to vector<16x16xbf16>
    %c241_i32_380 = arith.constant 241 : i32
    %462 = tpu.dynamic_rotate %401 by %c241_i32_380 dim 1 : vector<16x256xf32>, i32 -> vector<16x256xf32>
    %c6_381 = arith.constant 6 : index
    %c0_382 = arith.constant 0 : index
    %c0_383 = arith.constant 0 : index
    %463 = vector.load %arg2[%c6_381, %c0_382, %c0_383] : memref<9x1x256xf32, #tpu.memory_space<vmem>>, vector<1x1x256xf32>
    %464 = vector.shape_cast %463 : vector<1x1x256xf32> to vector<1x256xf32>
    %465 = vector.broadcast %464 : vector<1x256xf32> to vector<16x256xf32>
    %466 = arith.mulf %462, %465 : vector<16x256xf32>
    %467 = arith.truncf %466 : vector<16x256xf32> to vector<16x256xbf16>
    %cst_384 = arith.constant dense<0.000000e+00> : vector<16x256xf32>
    %468 = tpu.matmul %461, %467, %cst_384 {dimension_numbers = #tpu.dot_dimension_numbers<[1], [0], [0], [1], [0, 0, 1, 1], [], []>} : vector<16x16xbf16>, vector<16x256xbf16>, vector<16x256xf32> -> vector<16x256xf32>
    %469 = arith.addf %459, %468 : vector<16x256xf32>
    %c4_385 = arith.constant 4 : index
    %c7_386 = arith.constant 7 : index
    %c0_387 = arith.constant 0 : index
    %c0_388 = arith.constant 0 : index
    %470 = vector.load %arg3[%c4_385, %c7_386, %c0_387, %c0_388] : memref<6x9x16x16xbf16, #tpu.memory_space<vmem>>, vector<1x1x16x16xbf16>
    %471 = vector.shape_cast %470 : vector<1x1x16x16xbf16> to vector<16x16xbf16>
    %c240_i32_389 = arith.constant 240 : i32
    %472 = tpu.dynamic_rotate %401 by %c240_i32_389 dim 1 : vector<16x256xf32>, i32 -> vector<16x256xf32>
    %c7_390 = arith.constant 7 : index
    %c0_391 = arith.constant 0 : index
    %c0_392 = arith.constant 0 : index
    %473 = vector.load %arg2[%c7_390, %c0_391, %c0_392] : memref<9x1x256xf32, #tpu.memory_space<vmem>>, vector<1x1x256xf32>
    %474 = vector.shape_cast %473 : vector<1x1x256xf32> to vector<1x256xf32>
    %475 = vector.broadcast %474 : vector<1x256xf32> to vector<16x256xf32>
    %476 = arith.mulf %472, %475 : vector<16x256xf32>
    %477 = arith.truncf %476 : vector<16x256xf32> to vector<16x256xbf16>
    %cst_393 = arith.constant dense<0.000000e+00> : vector<16x256xf32>
    %478 = tpu.matmul %471, %477, %cst_393 {dimension_numbers = #tpu.dot_dimension_numbers<[1], [0], [0], [1], [0, 0, 1, 1], [], []>} : vector<16x16xbf16>, vector<16x256xbf16>, vector<16x256xf32> -> vector<16x256xf32>
    %479 = arith.addf %469, %478 : vector<16x256xf32>
    %c4_394 = arith.constant 4 : index
    %c8_395 = arith.constant 8 : index
    %c0_396 = arith.constant 0 : index
    %c0_397 = arith.constant 0 : index
    %480 = vector.load %arg3[%c4_394, %c8_395, %c0_396, %c0_397] : memref<6x9x16x16xbf16, #tpu.memory_space<vmem>>, vector<1x1x16x16xbf16>
    %481 = vector.shape_cast %480 : vector<1x1x16x16xbf16> to vector<16x16xbf16>
    %c239_i32_398 = arith.constant 239 : i32
    %482 = tpu.dynamic_rotate %401 by %c239_i32_398 dim 1 : vector<16x256xf32>, i32 -> vector<16x256xf32>
    %c8_399 = arith.constant 8 : index
    %c0_400 = arith.constant 0 : index
    %c0_401 = arith.constant 0 : index
    %483 = vector.load %arg2[%c8_399, %c0_400, %c0_401] : memref<9x1x256xf32, #tpu.memory_space<vmem>>, vector<1x1x256xf32>
    %484 = vector.shape_cast %483 : vector<1x1x256xf32> to vector<1x256xf32>
    %485 = vector.broadcast %484 : vector<1x256xf32> to vector<16x256xf32>
    %486 = arith.mulf %482, %485 : vector<16x256xf32>
    %487 = arith.truncf %486 : vector<16x256xf32> to vector<16x256xbf16>
    %cst_402 = arith.constant dense<0.000000e+00> : vector<16x256xf32>
    %488 = tpu.matmul %481, %487, %cst_402 {dimension_numbers = #tpu.dot_dimension_numbers<[1], [0], [0], [1], [0, 0, 1, 1], [], []>} : vector<16x16xbf16>, vector<16x256xbf16>, vector<16x256xf32> -> vector<16x256xf32>
    %489 = arith.addf %479, %488 : vector<16x256xf32>
    %c4_403 = arith.constant 4 : index
    %c0_404 = arith.constant 0 : index
    %c0_405 = arith.constant 0 : index
    %490 = vector.load %arg4[%c4_403, %c0_404, %c0_405] : memref<6x16x1xf32, #tpu.memory_space<vmem>>, vector<1x16x1xf32>
    %491 = vector.shape_cast %490 : vector<1x16x1xf32> to vector<16x1xf32>
    %492 = vector.broadcast %491 : vector<16x1xf32> to vector<16x256xf32>
    %493 = arith.addf %489, %492 : vector<16x256xf32>
    %cst_406 = arith.constant 0.000000e+00 : f32
    %494 = vector.broadcast %cst_406 : f32 to vector<16x256xf32>
    %495 = arith.cmpf oge, %493, %494 : vector<16x256xf32>
    %c4_407 = arith.constant 4 : index
    %c0_408 = arith.constant 0 : index
    %c0_409 = arith.constant 0 : index
    %496 = vector.load %arg5[%c4_407, %c0_408, %c0_409] : memref<6x16x1xf32, #tpu.memory_space<vmem>>, vector<1x16x1xf32>
    %497 = vector.shape_cast %496 : vector<1x16x1xf32> to vector<16x1xf32>
    %498 = vector.broadcast %497 : vector<16x1xf32> to vector<16x256xf32>
    %499 = arith.mulf %498, %493 : vector<16x256xf32>
    %500 = arith.select %495, %493, %499 : vector<16x256xi1>, vector<16x256xf32>
    %501 = arith.addf %403, %500 : vector<16x256xf32>
    %cst_410 = arith.constant 0.000000e+00 : f32
    %502 = vector.broadcast %cst_410 : f32 to vector<16x256xf32>
    %c5_411 = arith.constant 5 : index
    %c0_412 = arith.constant 0 : index
    %c0_413 = arith.constant 0 : index
    %c0_414 = arith.constant 0 : index
    %503 = vector.load %arg3[%c5_411, %c0_412, %c0_413, %c0_414] : memref<6x9x16x16xbf16, #tpu.memory_space<vmem>>, vector<1x1x16x16xbf16>
    %504 = vector.shape_cast %503 : vector<1x1x16x16xbf16> to vector<16x16xbf16>
    %c17_i32_415 = arith.constant 17 : i32
    %505 = tpu.dynamic_rotate %501 by %c17_i32_415 dim 1 : vector<16x256xf32>, i32 -> vector<16x256xf32>
    %c0_416 = arith.constant 0 : index
    %c0_417 = arith.constant 0 : index
    %c0_418 = arith.constant 0 : index
    %506 = vector.load %arg2[%c0_416, %c0_417, %c0_418] : memref<9x1x256xf32, #tpu.memory_space<vmem>>, vector<1x1x256xf32>
    %507 = vector.shape_cast %506 : vector<1x1x256xf32> to vector<1x256xf32>
    %508 = vector.broadcast %507 : vector<1x256xf32> to vector<16x256xf32>
    %509 = arith.mulf %505, %508 : vector<16x256xf32>
    %510 = arith.truncf %509 : vector<16x256xf32> to vector<16x256xbf16>
    %cst_419 = arith.constant dense<0.000000e+00> : vector<16x256xf32>
    %511 = tpu.matmul %504, %510, %cst_419 {dimension_numbers = #tpu.dot_dimension_numbers<[1], [0], [0], [1], [0, 0, 1, 1], [], []>} : vector<16x16xbf16>, vector<16x256xbf16>, vector<16x256xf32> -> vector<16x256xf32>
    %512 = arith.addf %502, %511 : vector<16x256xf32>
    %c5_420 = arith.constant 5 : index
    %c1_421 = arith.constant 1 : index
    %c0_422 = arith.constant 0 : index
    %c0_423 = arith.constant 0 : index
    %513 = vector.load %arg3[%c5_420, %c1_421, %c0_422, %c0_423] : memref<6x9x16x16xbf16, #tpu.memory_space<vmem>>, vector<1x1x16x16xbf16>
    %514 = vector.shape_cast %513 : vector<1x1x16x16xbf16> to vector<16x16xbf16>
    %c16_i32_424 = arith.constant 16 : i32
    %515 = tpu.dynamic_rotate %501 by %c16_i32_424 dim 1 : vector<16x256xf32>, i32 -> vector<16x256xf32>
    %c1_425 = arith.constant 1 : index
    %c0_426 = arith.constant 0 : index
    %c0_427 = arith.constant 0 : index
    %516 = vector.load %arg2[%c1_425, %c0_426, %c0_427] : memref<9x1x256xf32, #tpu.memory_space<vmem>>, vector<1x1x256xf32>
    %517 = vector.shape_cast %516 : vector<1x1x256xf32> to vector<1x256xf32>
    %518 = vector.broadcast %517 : vector<1x256xf32> to vector<16x256xf32>
    %519 = arith.mulf %515, %518 : vector<16x256xf32>
    %520 = arith.truncf %519 : vector<16x256xf32> to vector<16x256xbf16>
    %cst_428 = arith.constant dense<0.000000e+00> : vector<16x256xf32>
    %521 = tpu.matmul %514, %520, %cst_428 {dimension_numbers = #tpu.dot_dimension_numbers<[1], [0], [0], [1], [0, 0, 1, 1], [], []>} : vector<16x16xbf16>, vector<16x256xbf16>, vector<16x256xf32> -> vector<16x256xf32>
    %522 = arith.addf %512, %521 : vector<16x256xf32>
    %c5_429 = arith.constant 5 : index
    %c2_430 = arith.constant 2 : index
    %c0_431 = arith.constant 0 : index
    %c0_432 = arith.constant 0 : index
    %523 = vector.load %arg3[%c5_429, %c2_430, %c0_431, %c0_432] : memref<6x9x16x16xbf16, #tpu.memory_space<vmem>>, vector<1x1x16x16xbf16>
    %524 = vector.shape_cast %523 : vector<1x1x16x16xbf16> to vector<16x16xbf16>
    %c15_i32_433 = arith.constant 15 : i32
    %525 = tpu.dynamic_rotate %501 by %c15_i32_433 dim 1 : vector<16x256xf32>, i32 -> vector<16x256xf32>
    %c2_434 = arith.constant 2 : index
    %c0_435 = arith.constant 0 : index
    %c0_436 = arith.constant 0 : index
    %526 = vector.load %arg2[%c2_434, %c0_435, %c0_436] : memref<9x1x256xf32, #tpu.memory_space<vmem>>, vector<1x1x256xf32>
    %527 = vector.shape_cast %526 : vector<1x1x256xf32> to vector<1x256xf32>
    %528 = vector.broadcast %527 : vector<1x256xf32> to vector<16x256xf32>
    %529 = arith.mulf %525, %528 : vector<16x256xf32>
    %530 = arith.truncf %529 : vector<16x256xf32> to vector<16x256xbf16>
    %cst_437 = arith.constant dense<0.000000e+00> : vector<16x256xf32>
    %531 = tpu.matmul %524, %530, %cst_437 {dimension_numbers = #tpu.dot_dimension_numbers<[1], [0], [0], [1], [0, 0, 1, 1], [], []>} : vector<16x16xbf16>, vector<16x256xbf16>, vector<16x256xf32> -> vector<16x256xf32>
    %532 = arith.addf %522, %531 : vector<16x256xf32>
    %c5_438 = arith.constant 5 : index
    %c3_439 = arith.constant 3 : index
    %c0_440 = arith.constant 0 : index
    %c0_441 = arith.constant 0 : index
    %533 = vector.load %arg3[%c5_438, %c3_439, %c0_440, %c0_441] : memref<6x9x16x16xbf16, #tpu.memory_space<vmem>>, vector<1x1x16x16xbf16>
    %534 = vector.shape_cast %533 : vector<1x1x16x16xbf16> to vector<16x16xbf16>
    %c1_i32_442 = arith.constant 1 : i32
    %535 = tpu.dynamic_rotate %501 by %c1_i32_442 dim 1 : vector<16x256xf32>, i32 -> vector<16x256xf32>
    %c3_443 = arith.constant 3 : index
    %c0_444 = arith.constant 0 : index
    %c0_445 = arith.constant 0 : index
    %536 = vector.load %arg2[%c3_443, %c0_444, %c0_445] : memref<9x1x256xf32, #tpu.memory_space<vmem>>, vector<1x1x256xf32>
    %537 = vector.shape_cast %536 : vector<1x1x256xf32> to vector<1x256xf32>
    %538 = vector.broadcast %537 : vector<1x256xf32> to vector<16x256xf32>
    %539 = arith.mulf %535, %538 : vector<16x256xf32>
    %540 = arith.truncf %539 : vector<16x256xf32> to vector<16x256xbf16>
    %cst_446 = arith.constant dense<0.000000e+00> : vector<16x256xf32>
    %541 = tpu.matmul %534, %540, %cst_446 {dimension_numbers = #tpu.dot_dimension_numbers<[1], [0], [0], [1], [0, 0, 1, 1], [], []>} : vector<16x16xbf16>, vector<16x256xbf16>, vector<16x256xf32> -> vector<16x256xf32>
    %542 = arith.addf %532, %541 : vector<16x256xf32>
    %c5_447 = arith.constant 5 : index
    %c4_448 = arith.constant 4 : index
    %c0_449 = arith.constant 0 : index
    %c0_450 = arith.constant 0 : index
    %543 = vector.load %arg3[%c5_447, %c4_448, %c0_449, %c0_450] : memref<6x9x16x16xbf16, #tpu.memory_space<vmem>>, vector<1x1x16x16xbf16>
    %544 = vector.shape_cast %543 : vector<1x1x16x16xbf16> to vector<16x16xbf16>
    %545 = arith.truncf %501 : vector<16x256xf32> to vector<16x256xbf16>
    %cst_451 = arith.constant dense<0.000000e+00> : vector<16x256xf32>
    %546 = tpu.matmul %544, %545, %cst_451 {dimension_numbers = #tpu.dot_dimension_numbers<[1], [0], [0], [1], [0, 0, 1, 1], [], []>} : vector<16x16xbf16>, vector<16x256xbf16>, vector<16x256xf32> -> vector<16x256xf32>
    %547 = arith.addf %542, %546 : vector<16x256xf32>
    %c5_452 = arith.constant 5 : index
    %c5_453 = arith.constant 5 : index
    %c0_454 = arith.constant 0 : index
    %c0_455 = arith.constant 0 : index
    %548 = vector.load %arg3[%c5_452, %c5_453, %c0_454, %c0_455] : memref<6x9x16x16xbf16, #tpu.memory_space<vmem>>, vector<1x1x16x16xbf16>
    %549 = vector.shape_cast %548 : vector<1x1x16x16xbf16> to vector<16x16xbf16>
    %c255_i32_456 = arith.constant 255 : i32
    %550 = tpu.dynamic_rotate %501 by %c255_i32_456 dim 1 : vector<16x256xf32>, i32 -> vector<16x256xf32>
    %c5_457 = arith.constant 5 : index
    %c0_458 = arith.constant 0 : index
    %c0_459 = arith.constant 0 : index
    %551 = vector.load %arg2[%c5_457, %c0_458, %c0_459] : memref<9x1x256xf32, #tpu.memory_space<vmem>>, vector<1x1x256xf32>
    %552 = vector.shape_cast %551 : vector<1x1x256xf32> to vector<1x256xf32>
    %553 = vector.broadcast %552 : vector<1x256xf32> to vector<16x256xf32>
    %554 = arith.mulf %550, %553 : vector<16x256xf32>
    %555 = arith.truncf %554 : vector<16x256xf32> to vector<16x256xbf16>
    %cst_460 = arith.constant dense<0.000000e+00> : vector<16x256xf32>
    %556 = tpu.matmul %549, %555, %cst_460 {dimension_numbers = #tpu.dot_dimension_numbers<[1], [0], [0], [1], [0, 0, 1, 1], [], []>} : vector<16x16xbf16>, vector<16x256xbf16>, vector<16x256xf32> -> vector<16x256xf32>
    %557 = arith.addf %547, %556 : vector<16x256xf32>
    %c5_461 = arith.constant 5 : index
    %c6_462 = arith.constant 6 : index
    %c0_463 = arith.constant 0 : index
    %c0_464 = arith.constant 0 : index
    %558 = vector.load %arg3[%c5_461, %c6_462, %c0_463, %c0_464] : memref<6x9x16x16xbf16, #tpu.memory_space<vmem>>, vector<1x1x16x16xbf16>
    %559 = vector.shape_cast %558 : vector<1x1x16x16xbf16> to vector<16x16xbf16>
    %c241_i32_465 = arith.constant 241 : i32
    %560 = tpu.dynamic_rotate %501 by %c241_i32_465 dim 1 : vector<16x256xf32>, i32 -> vector<16x256xf32>
    %c6_466 = arith.constant 6 : index
    %c0_467 = arith.constant 0 : index
    %c0_468 = arith.constant 0 : index
    %561 = vector.load %arg2[%c6_466, %c0_467, %c0_468] : memref<9x1x256xf32, #tpu.memory_space<vmem>>, vector<1x1x256xf32>
    %562 = vector.shape_cast %561 : vector<1x1x256xf32> to vector<1x256xf32>
    %563 = vector.broadcast %562 : vector<1x256xf32> to vector<16x256xf32>
    %564 = arith.mulf %560, %563 : vector<16x256xf32>
    %565 = arith.truncf %564 : vector<16x256xf32> to vector<16x256xbf16>
    %cst_469 = arith.constant dense<0.000000e+00> : vector<16x256xf32>
    %566 = tpu.matmul %559, %565, %cst_469 {dimension_numbers = #tpu.dot_dimension_numbers<[1], [0], [0], [1], [0, 0, 1, 1], [], []>} : vector<16x16xbf16>, vector<16x256xbf16>, vector<16x256xf32> -> vector<16x256xf32>
    %567 = arith.addf %557, %566 : vector<16x256xf32>
    %c5_470 = arith.constant 5 : index
    %c7_471 = arith.constant 7 : index
    %c0_472 = arith.constant 0 : index
    %c0_473 = arith.constant 0 : index
    %568 = vector.load %arg3[%c5_470, %c7_471, %c0_472, %c0_473] : memref<6x9x16x16xbf16, #tpu.memory_space<vmem>>, vector<1x1x16x16xbf16>
    %569 = vector.shape_cast %568 : vector<1x1x16x16xbf16> to vector<16x16xbf16>
    %c240_i32_474 = arith.constant 240 : i32
    %570 = tpu.dynamic_rotate %501 by %c240_i32_474 dim 1 : vector<16x256xf32>, i32 -> vector<16x256xf32>
    %c7_475 = arith.constant 7 : index
    %c0_476 = arith.constant 0 : index
    %c0_477 = arith.constant 0 : index
    %571 = vector.load %arg2[%c7_475, %c0_476, %c0_477] : memref<9x1x256xf32, #tpu.memory_space<vmem>>, vector<1x1x256xf32>
    %572 = vector.shape_cast %571 : vector<1x1x256xf32> to vector<1x256xf32>
    %573 = vector.broadcast %572 : vector<1x256xf32> to vector<16x256xf32>
    %574 = arith.mulf %570, %573 : vector<16x256xf32>
    %575 = arith.truncf %574 : vector<16x256xf32> to vector<16x256xbf16>
    %cst_478 = arith.constant dense<0.000000e+00> : vector<16x256xf32>
    %576 = tpu.matmul %569, %575, %cst_478 {dimension_numbers = #tpu.dot_dimension_numbers<[1], [0], [0], [1], [0, 0, 1, 1], [], []>} : vector<16x16xbf16>, vector<16x256xbf16>, vector<16x256xf32> -> vector<16x256xf32>
    %577 = arith.addf %567, %576 : vector<16x256xf32>
    %c5_479 = arith.constant 5 : index
    %c8_480 = arith.constant 8 : index
    %c0_481 = arith.constant 0 : index
    %c0_482 = arith.constant 0 : index
    %578 = vector.load %arg3[%c5_479, %c8_480, %c0_481, %c0_482] : memref<6x9x16x16xbf16, #tpu.memory_space<vmem>>, vector<1x1x16x16xbf16>
    %579 = vector.shape_cast %578 : vector<1x1x16x16xbf16> to vector<16x16xbf16>
    %c239_i32_483 = arith.constant 239 : i32
    %580 = tpu.dynamic_rotate %501 by %c239_i32_483 dim 1 : vector<16x256xf32>, i32 -> vector<16x256xf32>
    %c8_484 = arith.constant 8 : index
    %c0_485 = arith.constant 0 : index
    %c0_486 = arith.constant 0 : index
    %581 = vector.load %arg2[%c8_484, %c0_485, %c0_486] : memref<9x1x256xf32, #tpu.memory_space<vmem>>, vector<1x1x256xf32>
    %582 = vector.shape_cast %581 : vector<1x1x256xf32> to vector<1x256xf32>
    %583 = vector.broadcast %582 : vector<1x256xf32> to vector<16x256xf32>
    %584 = arith.mulf %580, %583 : vector<16x256xf32>
    %585 = arith.truncf %584 : vector<16x256xf32> to vector<16x256xbf16>
    %cst_487 = arith.constant dense<0.000000e+00> : vector<16x256xf32>
    %586 = tpu.matmul %579, %585, %cst_487 {dimension_numbers = #tpu.dot_dimension_numbers<[1], [0], [0], [1], [0, 0, 1, 1], [], []>} : vector<16x16xbf16>, vector<16x256xbf16>, vector<16x256xf32> -> vector<16x256xf32>
    %587 = arith.addf %577, %586 : vector<16x256xf32>
    %c5_488 = arith.constant 5 : index
    %c0_489 = arith.constant 0 : index
    %c0_490 = arith.constant 0 : index
    %588 = vector.load %arg4[%c5_488, %c0_489, %c0_490] : memref<6x16x1xf32, #tpu.memory_space<vmem>>, vector<1x16x1xf32>
    %589 = vector.shape_cast %588 : vector<1x16x1xf32> to vector<16x1xf32>
    %590 = vector.broadcast %589 : vector<16x1xf32> to vector<16x256xf32>
    %591 = arith.addf %587, %590 : vector<16x256xf32>
    %592 = arith.addf %591, %107 : vector<16x256xf32>
    %cst_491 = arith.constant 0.000000e+00 : f32
    %593 = vector.broadcast %cst_491 : f32 to vector<16x256xf32>
    %594 = arith.cmpf oge, %592, %593 : vector<16x256xf32>
    %c5_492 = arith.constant 5 : index
    %c0_493 = arith.constant 0 : index
    %c0_494 = arith.constant 0 : index
    %595 = vector.load %arg5[%c5_492, %c0_493, %c0_494] : memref<6x16x1xf32, #tpu.memory_space<vmem>>, vector<1x16x1xf32>
    %596 = vector.shape_cast %595 : vector<1x16x1xf32> to vector<16x1xf32>
    %597 = vector.broadcast %596 : vector<16x1xf32> to vector<16x256xf32>
    %598 = arith.mulf %597, %592 : vector<16x256xf32>
    %599 = arith.select %594, %592, %598 : vector<16x256xi1>, vector<16x256xf32>
    %cst_495 = arith.constant 0.000000e+00 : f32
    %600 = vector.broadcast %cst_495 : f32 to vector<16x256xf32>
    %c0_496 = arith.constant 0 : index
    %c0_497 = arith.constant 0 : index
    %c0_498 = arith.constant 0 : index
    %601 = vector.load %arg6[%c0_496, %c0_497, %c0_498] : memref<16x16x16xbf16, #tpu.memory_space<vmem>>, vector<1x16x16xbf16>
    %602 = vector.shape_cast %601 : vector<1x16x16xbf16> to vector<16x16xbf16>
    %603 = arith.truncf %599 : vector<16x256xf32> to vector<16x256xbf16>
    %cst_499 = arith.constant dense<0.000000e+00> : vector<16x256xf32>
    %604 = tpu.matmul %602, %603, %cst_499 {dimension_numbers = #tpu.dot_dimension_numbers<[1], [0], [0], [1], [0, 0, 1, 1], [], []>} : vector<16x16xbf16>, vector<16x256xbf16>, vector<16x256xf32> -> vector<16x256xf32>
    %605 = arith.addf %600, %604 : vector<16x256xf32>
    %c1_500 = arith.constant 1 : index
    %c0_501 = arith.constant 0 : index
    %c0_502 = arith.constant 0 : index
    %606 = vector.load %arg6[%c1_500, %c0_501, %c0_502] : memref<16x16x16xbf16, #tpu.memory_space<vmem>>, vector<1x16x16xbf16>
    %607 = vector.shape_cast %606 : vector<1x16x16xbf16> to vector<16x16xbf16>
    %c1_i32_503 = arith.constant 1 : i32
    %608 = tpu.dynamic_rotate %599 by %c1_i32_503 dim 1 : vector<16x256xf32>, i32 -> vector<16x256xf32>
    %c3_504 = arith.constant 3 : index
    %c0_505 = arith.constant 0 : index
    %c0_506 = arith.constant 0 : index
    %609 = vector.load %arg2[%c3_504, %c0_505, %c0_506] : memref<9x1x256xf32, #tpu.memory_space<vmem>>, vector<1x1x256xf32>
    %610 = vector.shape_cast %609 : vector<1x1x256xf32> to vector<1x256xf32>
    %611 = vector.broadcast %610 : vector<1x256xf32> to vector<16x256xf32>
    %612 = arith.mulf %608, %611 : vector<16x256xf32>
    %613 = arith.truncf %612 : vector<16x256xf32> to vector<16x256xbf16>
    %cst_507 = arith.constant dense<0.000000e+00> : vector<16x256xf32>
    %614 = tpu.matmul %607, %613, %cst_507 {dimension_numbers = #tpu.dot_dimension_numbers<[1], [0], [0], [1], [0, 0, 1, 1], [], []>} : vector<16x16xbf16>, vector<16x256xbf16>, vector<16x256xf32> -> vector<16x256xf32>
    %615 = arith.addf %605, %614 : vector<16x256xf32>
    %c2_508 = arith.constant 2 : index
    %c0_509 = arith.constant 0 : index
    %c0_510 = arith.constant 0 : index
    %616 = vector.load %arg6[%c2_508, %c0_509, %c0_510] : memref<16x16x16xbf16, #tpu.memory_space<vmem>>, vector<1x16x16xbf16>
    %617 = vector.shape_cast %616 : vector<1x16x16xbf16> to vector<16x16xbf16>
    %c16_i32_511 = arith.constant 16 : i32
    %618 = tpu.dynamic_rotate %599 by %c16_i32_511 dim 1 : vector<16x256xf32>, i32 -> vector<16x256xf32>
    %c1_512 = arith.constant 1 : index
    %c0_513 = arith.constant 0 : index
    %c0_514 = arith.constant 0 : index
    %619 = vector.load %arg2[%c1_512, %c0_513, %c0_514] : memref<9x1x256xf32, #tpu.memory_space<vmem>>, vector<1x1x256xf32>
    %620 = vector.shape_cast %619 : vector<1x1x256xf32> to vector<1x256xf32>
    %621 = vector.broadcast %620 : vector<1x256xf32> to vector<16x256xf32>
    %622 = arith.mulf %618, %621 : vector<16x256xf32>
    %623 = arith.truncf %622 : vector<16x256xf32> to vector<16x256xbf16>
    %cst_515 = arith.constant dense<0.000000e+00> : vector<16x256xf32>
    %624 = tpu.matmul %617, %623, %cst_515 {dimension_numbers = #tpu.dot_dimension_numbers<[1], [0], [0], [1], [0, 0, 1, 1], [], []>} : vector<16x16xbf16>, vector<16x256xbf16>, vector<16x256xf32> -> vector<16x256xf32>
    %625 = arith.addf %615, %624 : vector<16x256xf32>
    %c3_516 = arith.constant 3 : index
    %c0_517 = arith.constant 0 : index
    %c0_518 = arith.constant 0 : index
    %626 = vector.load %arg6[%c3_516, %c0_517, %c0_518] : memref<16x16x16xbf16, #tpu.memory_space<vmem>>, vector<1x16x16xbf16>
    %627 = vector.shape_cast %626 : vector<1x16x16xbf16> to vector<16x16xbf16>
    %c17_i32_519 = arith.constant 17 : i32
    %628 = tpu.dynamic_rotate %599 by %c17_i32_519 dim 1 : vector<16x256xf32>, i32 -> vector<16x256xf32>
    %c0_520 = arith.constant 0 : index
    %c0_521 = arith.constant 0 : index
    %c0_522 = arith.constant 0 : index
    %629 = vector.load %arg2[%c0_520, %c0_521, %c0_522] : memref<9x1x256xf32, #tpu.memory_space<vmem>>, vector<1x1x256xf32>
    %630 = vector.shape_cast %629 : vector<1x1x256xf32> to vector<1x256xf32>
    %631 = vector.broadcast %630 : vector<1x256xf32> to vector<16x256xf32>
    %632 = arith.mulf %628, %631 : vector<16x256xf32>
    %633 = arith.truncf %632 : vector<16x256xf32> to vector<16x256xbf16>
    %cst_523 = arith.constant dense<0.000000e+00> : vector<16x256xf32>
    %634 = tpu.matmul %627, %633, %cst_523 {dimension_numbers = #tpu.dot_dimension_numbers<[1], [0], [0], [1], [0, 0, 1, 1], [], []>} : vector<16x16xbf16>, vector<16x256xbf16>, vector<16x256xf32> -> vector<16x256xf32>
    %635 = arith.addf %625, %634 : vector<16x256xf32>
    %c0_524 = arith.constant 0 : index
    %c0_525 = arith.constant 0 : index
    %636 = vector.load %arg7[%c0_524, %c0_525] : memref<16x1xf32, #tpu.memory_space<vmem>>, vector<16x1xf32>
    %637 = vector.broadcast %636 : vector<16x1xf32> to vector<16x256xf32>
    %638 = arith.addf %635, %637 : vector<16x256xf32>
    %c0_526 = arith.constant 0 : index
    %c0_527 = arith.constant 0 : index
    %c0_528 = arith.constant 0 : index
    %c0_529 = arith.constant 0 : index
    %639 = vector.load %arg8[%c0_526, %c0_527, %c0_528, %c0_529] : memref<1x4x16x256xf32, #tpu.memory_space<vmem>>, vector<1x1x16x256xf32>
    %640 = vector.shape_cast %639 : vector<1x1x16x256xf32> to vector<16x256xf32>
    %641 = vector.shape_cast %638 : vector<16x256xf32> to vector<1x1x16x256xf32>
    tpu.vector_store %arg8[%c0_526, %c0_527, %c0_528, %c0_529], %641 {strides = array<i32>} : memref<1x4x16x256xf32, #tpu.memory_space<vmem>>, vector<1x1x16x256xf32>,
    %cst_530 = arith.constant 0.000000e+00 : f32
    %642 = vector.broadcast %cst_530 : f32 to vector<16x256xf32>
    %c4_531 = arith.constant 4 : index
    %c0_532 = arith.constant 0 : index
    %c0_533 = arith.constant 0 : index
    %643 = vector.load %arg6[%c4_531, %c0_532, %c0_533] : memref<16x16x16xbf16, #tpu.memory_space<vmem>>, vector<1x16x16xbf16>
    %644 = vector.shape_cast %643 : vector<1x16x16xbf16> to vector<16x16xbf16>
    %645 = arith.truncf %599 : vector<16x256xf32> to vector<16x256xbf16>
    %cst_534 = arith.constant dense<0.000000e+00> : vector<16x256xf32>
    %646 = tpu.matmul %644, %645, %cst_534 {dimension_numbers = #tpu.dot_dimension_numbers<[1], [0], [0], [1], [0, 0, 1, 1], [], []>} : vector<16x16xbf16>, vector<16x256xbf16>, vector<16x256xf32> -> vector<16x256xf32>
    %647 = arith.addf %642, %646 : vector<16x256xf32>
    %c5_535 = arith.constant 5 : index
    %c0_536 = arith.constant 0 : index
    %c0_537 = arith.constant 0 : index
    %648 = vector.load %arg6[%c5_535, %c0_536, %c0_537] : memref<16x16x16xbf16, #tpu.memory_space<vmem>>, vector<1x16x16xbf16>
    %649 = vector.shape_cast %648 : vector<1x16x16xbf16> to vector<16x16xbf16>
    %c255_i32_538 = arith.constant 255 : i32
    %650 = tpu.dynamic_rotate %599 by %c255_i32_538 dim 1 : vector<16x256xf32>, i32 -> vector<16x256xf32>
    %c5_539 = arith.constant 5 : index
    %c0_540 = arith.constant 0 : index
    %c0_541 = arith.constant 0 : index
    %651 = vector.load %arg2[%c5_539, %c0_540, %c0_541] : memref<9x1x256xf32, #tpu.memory_space<vmem>>, vector<1x1x256xf32>
    %652 = vector.shape_cast %651 : vector<1x1x256xf32> to vector<1x256xf32>
    %653 = vector.broadcast %652 : vector<1x256xf32> to vector<16x256xf32>
    %654 = arith.mulf %650, %653 : vector<16x256xf32>
    %655 = arith.truncf %654 : vector<16x256xf32> to vector<16x256xbf16>
    %cst_542 = arith.constant dense<0.000000e+00> : vector<16x256xf32>
    %656 = tpu.matmul %649, %655, %cst_542 {dimension_numbers = #tpu.dot_dimension_numbers<[1], [0], [0], [1], [0, 0, 1, 1], [], []>} : vector<16x16xbf16>, vector<16x256xbf16>, vector<16x256xf32> -> vector<16x256xf32>
    %657 = arith.addf %647, %656 : vector<16x256xf32>
    %c6_543 = arith.constant 6 : index
    %c0_544 = arith.constant 0 : index
    %c0_545 = arith.constant 0 : index
    %658 = vector.load %arg6[%c6_543, %c0_544, %c0_545] : memref<16x16x16xbf16, #tpu.memory_space<vmem>>, vector<1x16x16xbf16>
    %659 = vector.shape_cast %658 : vector<1x16x16xbf16> to vector<16x16xbf16>
    %c16_i32_546 = arith.constant 16 : i32
    %660 = tpu.dynamic_rotate %599 by %c16_i32_546 dim 1 : vector<16x256xf32>, i32 -> vector<16x256xf32>
    %c1_547 = arith.constant 1 : index
    %c0_548 = arith.constant 0 : index
    %c0_549 = arith.constant 0 : index
    %661 = vector.load %arg2[%c1_547, %c0_548, %c0_549] : memref<9x1x256xf32, #tpu.memory_space<vmem>>, vector<1x1x256xf32>
    %662 = vector.shape_cast %661 : vector<1x1x256xf32> to vector<1x256xf32>
    %663 = vector.broadcast %662 : vector<1x256xf32> to vector<16x256xf32>
    %664 = arith.mulf %660, %663 : vector<16x256xf32>
    %665 = arith.truncf %664 : vector<16x256xf32> to vector<16x256xbf16>
    %cst_550 = arith.constant dense<0.000000e+00> : vector<16x256xf32>
    %666 = tpu.matmul %659, %665, %cst_550 {dimension_numbers = #tpu.dot_dimension_numbers<[1], [0], [0], [1], [0, 0, 1, 1], [], []>} : vector<16x16xbf16>, vector<16x256xbf16>, vector<16x256xf32> -> vector<16x256xf32>
    %667 = arith.addf %657, %666 : vector<16x256xf32>
    %c7_551 = arith.constant 7 : index
    %c0_552 = arith.constant 0 : index
    %c0_553 = arith.constant 0 : index
    %668 = vector.load %arg6[%c7_551, %c0_552, %c0_553] : memref<16x16x16xbf16, #tpu.memory_space<vmem>>, vector<1x16x16xbf16>
    %669 = vector.shape_cast %668 : vector<1x16x16xbf16> to vector<16x16xbf16>
    %c15_i32_554 = arith.constant 15 : i32
    %670 = tpu.dynamic_rotate %599 by %c15_i32_554 dim 1 : vector<16x256xf32>, i32 -> vector<16x256xf32>
    %c2_555 = arith.constant 2 : index
    %c0_556 = arith.constant 0 : index
    %c0_557 = arith.constant 0 : index
    %671 = vector.load %arg2[%c2_555, %c0_556, %c0_557] : memref<9x1x256xf32, #tpu.memory_space<vmem>>, vector<1x1x256xf32>
    %672 = vector.shape_cast %671 : vector<1x1x256xf32> to vector<1x256xf32>
    %673 = vector.broadcast %672 : vector<1x256xf32> to vector<16x256xf32>
    %674 = arith.mulf %670, %673 : vector<16x256xf32>
    %675 = arith.truncf %674 : vector<16x256xf32> to vector<16x256xbf16>
    %cst_558 = arith.constant dense<0.000000e+00> : vector<16x256xf32>
    %676 = tpu.matmul %669, %675, %cst_558 {dimension_numbers = #tpu.dot_dimension_numbers<[1], [0], [0], [1], [0, 0, 1, 1], [], []>} : vector<16x16xbf16>, vector<16x256xbf16>, vector<16x256xf32> -> vector<16x256xf32>
    %677 = arith.addf %667, %676 : vector<16x256xf32>
    %c0_559 = arith.constant 0 : index
    %c0_560 = arith.constant 0 : index
    %678 = vector.load %arg7[%c0_559, %c0_560] : memref<16x1xf32, #tpu.memory_space<vmem>>, vector<16x1xf32>
    %679 = vector.broadcast %678 : vector<16x1xf32> to vector<16x256xf32>
    %680 = arith.addf %677, %679 : vector<16x256xf32>
    %c0_561 = arith.constant 0 : index
    %c1_562 = arith.constant 1 : index
    %c0_563 = arith.constant 0 : index
    %c0_564 = arith.constant 0 : index
    %681 = vector.load %arg8[%c0_561, %c1_562, %c0_563, %c0_564] : memref<1x4x16x256xf32, #tpu.memory_space<vmem>>, vector<1x1x16x256xf32>
    %682 = vector.shape_cast %681 : vector<1x1x16x256xf32> to vector<16x256xf32>
    %683 = vector.shape_cast %680 : vector<16x256xf32> to vector<1x1x16x256xf32>
    tpu.vector_store %arg8[%c0_561, %c1_562, %c0_563, %c0_564], %683 {strides = array<i32>} : memref<1x4x16x256xf32, #tpu.memory_space<vmem>>, vector<1x1x16x256xf32>,
    %cst_565 = arith.constant 0.000000e+00 : f32
    %684 = vector.broadcast %cst_565 : f32 to vector<16x256xf32>
    %c8_566 = arith.constant 8 : index
    %c0_567 = arith.constant 0 : index
    %c0_568 = arith.constant 0 : index
    %685 = vector.load %arg6[%c8_566, %c0_567, %c0_568] : memref<16x16x16xbf16, #tpu.memory_space<vmem>>, vector<1x16x16xbf16>
    %686 = vector.shape_cast %685 : vector<1x16x16xbf16> to vector<16x16xbf16>
    %687 = arith.truncf %599 : vector<16x256xf32> to vector<16x256xbf16>
    %cst_569 = arith.constant dense<0.000000e+00> : vector<16x256xf32>
    %688 = tpu.matmul %686, %687, %cst_569 {dimension_numbers = #tpu.dot_dimension_numbers<[1], [0], [0], [1], [0, 0, 1, 1], [], []>} : vector<16x16xbf16>, vector<16x256xbf16>, vector<16x256xf32> -> vector<16x256xf32>
    %689 = arith.addf %684, %688 : vector<16x256xf32>
    %c9 = arith.constant 9 : index
    %c0_570 = arith.constant 0 : index
    %c0_571 = arith.constant 0 : index
    %690 = vector.load %arg6[%c9, %c0_570, %c0_571] : memref<16x16x16xbf16, #tpu.memory_space<vmem>>, vector<1x16x16xbf16>
    %691 = vector.shape_cast %690 : vector<1x16x16xbf16> to vector<16x16xbf16>
    %c1_i32_572 = arith.constant 1 : i32
    %692 = tpu.dynamic_rotate %599 by %c1_i32_572 dim 1 : vector<16x256xf32>, i32 -> vector<16x256xf32>
    %c3_573 = arith.constant 3 : index
    %c0_574 = arith.constant 0 : index
    %c0_575 = arith.constant 0 : index
    %693 = vector.load %arg2[%c3_573, %c0_574, %c0_575] : memref<9x1x256xf32, #tpu.memory_space<vmem>>, vector<1x1x256xf32>
    %694 = vector.shape_cast %693 : vector<1x1x256xf32> to vector<1x256xf32>
    %695 = vector.broadcast %694 : vector<1x256xf32> to vector<16x256xf32>
    %696 = arith.mulf %692, %695 : vector<16x256xf32>
    %697 = arith.truncf %696 : vector<16x256xf32> to vector<16x256xbf16>
    %cst_576 = arith.constant dense<0.000000e+00> : vector<16x256xf32>
    %698 = tpu.matmul %691, %697, %cst_576 {dimension_numbers = #tpu.dot_dimension_numbers<[1], [0], [0], [1], [0, 0, 1, 1], [], []>} : vector<16x16xbf16>, vector<16x256xbf16>, vector<16x256xf32> -> vector<16x256xf32>
    %699 = arith.addf %689, %698 : vector<16x256xf32>
    %c10 = arith.constant 10 : index
    %c0_577 = arith.constant 0 : index
    %c0_578 = arith.constant 0 : index
    %700 = vector.load %arg6[%c10, %c0_577, %c0_578] : memref<16x16x16xbf16, #tpu.memory_space<vmem>>, vector<1x16x16xbf16>
    %701 = vector.shape_cast %700 : vector<1x16x16xbf16> to vector<16x16xbf16>
    %c240_i32_579 = arith.constant 240 : i32
    %702 = tpu.dynamic_rotate %599 by %c240_i32_579 dim 1 : vector<16x256xf32>, i32 -> vector<16x256xf32>
    %c7_580 = arith.constant 7 : index
    %c0_581 = arith.constant 0 : index
    %c0_582 = arith.constant 0 : index
    %703 = vector.load %arg2[%c7_580, %c0_581, %c0_582] : memref<9x1x256xf32, #tpu.memory_space<vmem>>, vector<1x1x256xf32>
    %704 = vector.shape_cast %703 : vector<1x1x256xf32> to vector<1x256xf32>
    %705 = vector.broadcast %704 : vector<1x256xf32> to vector<16x256xf32>
    %706 = arith.mulf %702, %705 : vector<16x256xf32>
    %707 = arith.truncf %706 : vector<16x256xf32> to vector<16x256xbf16>
    %cst_583 = arith.constant dense<0.000000e+00> : vector<16x256xf32>
    %708 = tpu.matmul %701, %707, %cst_583 {dimension_numbers = #tpu.dot_dimension_numbers<[1], [0], [0], [1], [0, 0, 1, 1], [], []>} : vector<16x16xbf16>, vector<16x256xbf16>, vector<16x256xf32> -> vector<16x256xf32>
    %709 = arith.addf %699, %708 : vector<16x256xf32>
    %c11 = arith.constant 11 : index
    %c0_584 = arith.constant 0 : index
    %c0_585 = arith.constant 0 : index
    %710 = vector.load %arg6[%c11, %c0_584, %c0_585] : memref<16x16x16xbf16, #tpu.memory_space<vmem>>, vector<1x16x16xbf16>
    %711 = vector.shape_cast %710 : vector<1x16x16xbf16> to vector<16x16xbf16>
    %c241_i32_586 = arith.constant 241 : i32
    %712 = tpu.dynamic_rotate %599 by %c241_i32_586 dim 1 : vector<16x256xf32>, i32 -> vector<16x256xf32>
    %c6_587 = arith.constant 6 : index
    %c0_588 = arith.constant 0 : index
    %c0_589 = arith.constant 0 : index
    %713 = vector.load %arg2[%c6_587, %c0_588, %c0_589] : memref<9x1x256xf32, #tpu.memory_space<vmem>>, vector<1x1x256xf32>
    %714 = vector.shape_cast %713 : vector<1x1x256xf32> to vector<1x256xf32>
    %715 = vector.broadcast %714 : vector<1x256xf32> to vector<16x256xf32>
    %716 = arith.mulf %712, %715 : vector<16x256xf32>
    %717 = arith.truncf %716 : vector<16x256xf32> to vector<16x256xbf16>
    %cst_590 = arith.constant dense<0.000000e+00> : vector<16x256xf32>
    %718 = tpu.matmul %711, %717, %cst_590 {dimension_numbers = #tpu.dot_dimension_numbers<[1], [0], [0], [1], [0, 0, 1, 1], [], []>} : vector<16x16xbf16>, vector<16x256xbf16>, vector<16x256xf32> -> vector<16x256xf32>
    %719 = arith.addf %709, %718 : vector<16x256xf32>
    %c0_591 = arith.constant 0 : index
    %c0_592 = arith.constant 0 : index
    %720 = vector.load %arg7[%c0_591, %c0_592] : memref<16x1xf32, #tpu.memory_space<vmem>>, vector<16x1xf32>
    %721 = vector.broadcast %720 : vector<16x1xf32> to vector<16x256xf32>
    %722 = arith.addf %719, %721 : vector<16x256xf32>
    %c0_593 = arith.constant 0 : index
    %c2_594 = arith.constant 2 : index
    %c0_595 = arith.constant 0 : index
    %c0_596 = arith.constant 0 : index
    %723 = vector.load %arg8[%c0_593, %c2_594, %c0_595, %c0_596] : memref<1x4x16x256xf32, #tpu.memory_space<vmem>>, vector<1x1x16x256xf32>
    %724 = vector.shape_cast %723 : vector<1x1x16x256xf32> to vector<16x256xf32>
    %725 = vector.shape_cast %722 : vector<16x256xf32> to vector<1x1x16x256xf32>
    tpu.vector_store %arg8[%c0_593, %c2_594, %c0_595, %c0_596], %725 {strides = array<i32>} : memref<1x4x16x256xf32, #tpu.memory_space<vmem>>, vector<1x1x16x256xf32>,
    %cst_597 = arith.constant 0.000000e+00 : f32
    %726 = vector.broadcast %cst_597 : f32 to vector<16x256xf32>
    %c12 = arith.constant 12 : index
    %c0_598 = arith.constant 0 : index
    %c0_599 = arith.constant 0 : index
    %727 = vector.load %arg6[%c12, %c0_598, %c0_599] : memref<16x16x16xbf16, #tpu.memory_space<vmem>>, vector<1x16x16xbf16>
    %728 = vector.shape_cast %727 : vector<1x16x16xbf16> to vector<16x16xbf16>
    %729 = arith.truncf %599 : vector<16x256xf32> to vector<16x256xbf16>
    %cst_600 = arith.constant dense<0.000000e+00> : vector<16x256xf32>
    %730 = tpu.matmul %728, %729, %cst_600 {dimension_numbers = #tpu.dot_dimension_numbers<[1], [0], [0], [1], [0, 0, 1, 1], [], []>} : vector<16x16xbf16>, vector<16x256xbf16>, vector<16x256xf32> -> vector<16x256xf32>
    %731 = arith.addf %726, %730 : vector<16x256xf32>
    %c13 = arith.constant 13 : index
    %c0_601 = arith.constant 0 : index
    %c0_602 = arith.constant 0 : index
    %732 = vector.load %arg6[%c13, %c0_601, %c0_602] : memref<16x16x16xbf16, #tpu.memory_space<vmem>>, vector<1x16x16xbf16>
    %733 = vector.shape_cast %732 : vector<1x16x16xbf16> to vector<16x16xbf16>
    %c255_i32_603 = arith.constant 255 : i32
    %734 = tpu.dynamic_rotate %599 by %c255_i32_603 dim 1 : vector<16x256xf32>, i32 -> vector<16x256xf32>
    %c5_604 = arith.constant 5 : index
    %c0_605 = arith.constant 0 : index
    %c0_606 = arith.constant 0 : index
    %735 = vector.load %arg2[%c5_604, %c0_605, %c0_606] : memref<9x1x256xf32, #tpu.memory_space<vmem>>, vector<1x1x256xf32>
    %736 = vector.shape_cast %735 : vector<1x1x256xf32> to vector<1x256xf32>
    %737 = vector.broadcast %736 : vector<1x256xf32> to vector<16x256xf32>
    %738 = arith.mulf %734, %737 : vector<16x256xf32>
    %739 = arith.truncf %738 : vector<16x256xf32> to vector<16x256xbf16>
    %cst_607 = arith.constant dense<0.000000e+00> : vector<16x256xf32>
    %740 = tpu.matmul %733, %739, %cst_607 {dimension_numbers = #tpu.dot_dimension_numbers<[1], [0], [0], [1], [0, 0, 1, 1], [], []>} : vector<16x16xbf16>, vector<16x256xbf16>, vector<16x256xf32> -> vector<16x256xf32>
    %741 = arith.addf %731, %740 : vector<16x256xf32>
    %c14 = arith.constant 14 : index
    %c0_608 = arith.constant 0 : index
    %c0_609 = arith.constant 0 : index
    %742 = vector.load %arg6[%c14, %c0_608, %c0_609] : memref<16x16x16xbf16, #tpu.memory_space<vmem>>, vector<1x16x16xbf16>
    %743 = vector.shape_cast %742 : vector<1x16x16xbf16> to vector<16x16xbf16>
    %c240_i32_610 = arith.constant 240 : i32
    %744 = tpu.dynamic_rotate %599 by %c240_i32_610 dim 1 : vector<16x256xf32>, i32 -> vector<16x256xf32>
    %c7_611 = arith.constant 7 : index
    %c0_612 = arith.constant 0 : index
    %c0_613 = arith.constant 0 : index
    %745 = vector.load %arg2[%c7_611, %c0_612, %c0_613] : memref<9x1x256xf32, #tpu.memory_space<vmem>>, vector<1x1x256xf32>
    %746 = vector.shape_cast %745 : vector<1x1x256xf32> to vector<1x256xf32>
    %747 = vector.broadcast %746 : vector<1x256xf32> to vector<16x256xf32>
    %748 = arith.mulf %744, %747 : vector<16x256xf32>
    %749 = arith.truncf %748 : vector<16x256xf32> to vector<16x256xbf16>
    %cst_614 = arith.constant dense<0.000000e+00> : vector<16x256xf32>
    %750 = tpu.matmul %743, %749, %cst_614 {dimension_numbers = #tpu.dot_dimension_numbers<[1], [0], [0], [1], [0, 0, 1, 1], [], []>} : vector<16x16xbf16>, vector<16x256xbf16>, vector<16x256xf32> -> vector<16x256xf32>
    %751 = arith.addf %741, %750 : vector<16x256xf32>
    %c15 = arith.constant 15 : index
    %c0_615 = arith.constant 0 : index
    %c0_616 = arith.constant 0 : index
    %752 = vector.load %arg6[%c15, %c0_615, %c0_616] : memref<16x16x16xbf16, #tpu.memory_space<vmem>>, vector<1x16x16xbf16>
    %753 = vector.shape_cast %752 : vector<1x16x16xbf16> to vector<16x16xbf16>
    %c239_i32_617 = arith.constant 239 : i32
    %754 = tpu.dynamic_rotate %599 by %c239_i32_617 dim 1 : vector<16x256xf32>, i32 -> vector<16x256xf32>
    %c8_618 = arith.constant 8 : index
    %c0_619 = arith.constant 0 : index
    %c0_620 = arith.constant 0 : index
    %755 = vector.load %arg2[%c8_618, %c0_619, %c0_620] : memref<9x1x256xf32, #tpu.memory_space<vmem>>, vector<1x1x256xf32>
    %756 = vector.shape_cast %755 : vector<1x1x256xf32> to vector<1x256xf32>
    %757 = vector.broadcast %756 : vector<1x256xf32> to vector<16x256xf32>
    %758 = arith.mulf %754, %757 : vector<16x256xf32>
    %759 = arith.truncf %758 : vector<16x256xf32> to vector<16x256xbf16>
    %cst_621 = arith.constant dense<0.000000e+00> : vector<16x256xf32>
    %760 = tpu.matmul %753, %759, %cst_621 {dimension_numbers = #tpu.dot_dimension_numbers<[1], [0], [0], [1], [0, 0, 1, 1], [], []>} : vector<16x16xbf16>, vector<16x256xbf16>, vector<16x256xf32> -> vector<16x256xf32>
    %761 = arith.addf %751, %760 : vector<16x256xf32>
    %c0_622 = arith.constant 0 : index
    %c0_623 = arith.constant 0 : index
    %762 = vector.load %arg7[%c0_622, %c0_623] : memref<16x1xf32, #tpu.memory_space<vmem>>, vector<16x1xf32>
    %763 = vector.broadcast %762 : vector<16x1xf32> to vector<16x256xf32>
    %764 = arith.addf %761, %763 : vector<16x256xf32>
    %c0_624 = arith.constant 0 : index
    %c3_625 = arith.constant 3 : index
    %c0_626 = arith.constant 0 : index
    %c0_627 = arith.constant 0 : index
    %765 = vector.load %arg8[%c0_624, %c3_625, %c0_626, %c0_627] : memref<1x4x16x256xf32, #tpu.memory_space<vmem>>, vector<1x1x16x256xf32>
    %766 = vector.shape_cast %765 : vector<1x1x16x256xf32> to vector<16x256xf32>
    %767 = vector.shape_cast %764 : vector<16x256xf32> to vector<1x1x16x256xf32>
    tpu.vector_store %arg8[%c0_624, %c3_625, %c0_626, %c0_627], %767 {strides = array<i32>} : memref<1x4x16x256xf32, #tpu.memory_space<vmem>>, vector<1x1x16x256xf32>,
    return
  }
  func.func @transform_0(%arg0: i32) -> (i32, i32, i32) {
    %c0_i32 = arith.constant 0 : i32
    %c0_i32_0 = arith.constant 0 : i32
    %c0_i32_1 = arith.constant 0 : i32
    return %arg0, %c0_i32, %c0_i32_0 : i32, i32, i32
  }
  func.func @transform_1(%arg0: i32) -> (i32, i32, i32) {
    %c0_i32 = arith.constant 0 : i32
    %c0_i32_0 = arith.constant 0 : i32
    %c0_i32_1 = arith.constant 0 : i32
    %c0_i32_2 = arith.constant 0 : i32
    return %c0_i32, %c0_i32_0, %c0_i32_1 : i32, i32, i32
  }
  func.func @transform_2(%arg0: i32) -> (i32, i32, i32, i32) {
    %c0_i32 = arith.constant 0 : i32
    %c0_i32_0 = arith.constant 0 : i32
    %c0_i32_1 = arith.constant 0 : i32
    %c0_i32_2 = arith.constant 0 : i32
    %c0_i32_3 = arith.constant 0 : i32
    return %c0_i32, %c0_i32_0, %c0_i32_1, %c0_i32_2 : i32, i32, i32, i32
  }
  func.func @transform_3(%arg0: i32) -> (i32, i32, i32) {
    %c0_i32 = arith.constant 0 : i32
    %c0_i32_0 = arith.constant 0 : i32
    %c0_i32_1 = arith.constant 0 : i32
    %c0_i32_2 = arith.constant 0 : i32
    return %c0_i32, %c0_i32_0, %c0_i32_1 : i32, i32, i32
  }
  func.func @transform_4(%arg0: i32) -> (i32, i32, i32) {
    %c0_i32 = arith.constant 0 : i32
    %c0_i32_0 = arith.constant 0 : i32
    %c0_i32_1 = arith.constant 0 : i32
    %c0_i32_2 = arith.constant 0 : i32
    return %c0_i32, %c0_i32_0, %c0_i32_1 : i32, i32, i32
  }
  func.func @transform_5(%arg0: i32) -> (i32, i32, i32) {
    %c0_i32 = arith.constant 0 : i32
    %c0_i32_0 = arith.constant 0 : i32
    %c0_i32_1 = arith.constant 0 : i32
    %c0_i32_2 = arith.constant 0 : i32
    return %c0_i32, %c0_i32_0, %c0_i32_1 : i32, i32, i32
  }
  func.func @transform_6(%arg0: i32) -> (i32, i32) {
    %c0_i32 = arith.constant 0 : i32
    %c0_i32_0 = arith.constant 0 : i32
    %c0_i32_1 = arith.constant 0 : i32
    return %c0_i32, %c0_i32_0 : i32, i32
  }
  func.func @transform_7(%arg0: i32) -> (i32, i32, i32, i32) {
    %c0_i32 = arith.constant 0 : i32
    %c0_i32_0 = arith.constant 0 : i32
    %c0_i32_1 = arith.constant 0 : i32
    %c0_i32_2 = arith.constant 0 : i32
    return %arg0, %c0_i32, %c0_i32_0, %c0_i32_1 : i32, i32, i32, i32
  }
}

</mosaic_0001>

<bundles_post_ra>
// kernel: _lambda_.1
= control target key start
LH: loop header
LB: loop body
LE: loop exit
PB: predicated region body
PF: predicated region fallthrough
CT: control target
= control target key end

     0   :  { %s6531_s24 = smov 0   ;;  %s8502_s0 = inlined_call_operand.vmem [shape: bf16[2,16,256], index: 0, kind: input, shape index: {}]   ;;  %s8503_s1 = inlined_call_operand.vmem [shape: f32[9,1,256], index: 1, kind: input, shape index: {}]   ;;  %s8504_s2 = inlined_call_operand.vmem [shape: bf16[6,9,16,16], index: 2, kind: input, shape index: {}]   ;;  %s8505_s3 = inlined_call_operand.vmem [shape: f32[6,16,1], index: 3, kind: input, shape index: {}]   ;;  %s8506_s4 = inlined_call_operand.vmem [shape: f32[6,16,1], index: 4, kind: input, shape index: {}]   ;;  %s8507_s5 = inlined_call_operand.vmem [shape: bf16[16,16,16], index: 5, kind: input, shape index: {}]   ;;  %s8508_s6 = inlined_call_operand.vmem [shape: f32[16,1], index: 6, kind: input, shape index: {}]   ;;  %s8509_s7 = inlined_call_operand.vmem [shape: f32[2,4,16,256], index: 7, kind: output, shape index: {}]  }
   0x1 LB: > { %s5961_s25 = sadd.s32 4294967295, %s6479_s24   ;;  %p5965_p0 = scmp.ge.s32.totalorder %s6479_s24, 1  ;;  %s6479_s24 = sphi %s6531_s24, %s17_s24  }
   0x2   : > { %p237_p1 = scmp.lt.s32.totalorder %s6479_s24, 3 }
   0x4   : > { %p238_p2 = pnand %p5965_p0, %p237_p1 }
   0x6   : > { %241 = sbr.rel (%p238_p2) target bundleno = 2736 (0xab0), region = 48 }
   0xb   : > { %p269_p3 = scmp.lt.s32.totalorder %s5961_s25, 1  ;;  %s6481_s30 = smov 17   ;;  %v8510_v8 = vmov 0   ;;  %v1081_v11 = vld [vmem:[%s8505_s3 + $0x8] sm:$0xff]  ;;  %v1080_v12 = vld [vmem:[%s8505_s3] sm:$0xff]  ;;  %v280_v15 = vlaneseq  ;;  %vm374_vm4 = vcmask 130048  }
   0xc   : > { %s6482_s8 = smov 16   ;;  %410 = vmatprep.mubr.bf16.mxu0 %v8510_v8  ;;  %461 = vmatprep.mubr.bf16.mxu1 %v8510_v8  ;;  %s6484_s9 = smov 15   ;;  %v1100_v13 = vld [vmem:[%s8506_s4] sm:$0xff]  ;;  %v1101_v14 = vld [vmem:[%s8506_s4 + $0x8] sm:$0xff] }
   0xd   : > { %s8525_s25 = smov (!%p269_p3, %s5961_s25), 1  ;;  %6400 = vset.pattern.permute.xlu1 %v8510_v8  ;;  %6399 = vset.pattern.permute.xlu0 %v8510_v8  ;;  %s6485_s10 = smov 1   ;;  %v6589_v16 = vshrl.u32 %v280_v15, 7  ;;  %v6591_v17 = vand.u32 127, %v280_v15  ;;  %v316_v20 = vld [vmem:[%s8503_s1] sm:$0x3] }
   0xe   : > { %s6299_s26 = sshll.u32 %s8525_s25, 4  ;;  %s6486_s11 = smov 127   ;;  %v5973_v21 = vld [vmem:[%s8503_s1 + $0x2] sm:$0x3]  ;;  %v5980_v24 = vld [vmem:[%s8503_s1 + $0x4] sm:$0x3] }
   0xf   : > { %s273_s29 = scalar_lea.vmem %s8502_s0, %s6299_s26  ;;  %s6487_s12 = smov 113   ;;  %v6594_v18 = vsub.s32 0, %v6589_v16  ;;  %v6597_v19 = vsub.s32 1, %v6589_v16  ;;  %v5985_v25 = vld [vmem:[%s8503_s1 + $0x6] sm:$0x3]  ;;  %vm311_vm0 = vcmp.lt.s32.totalorder %v6591_v17, 17 }
  0x10   : > { %v6545_v0 = vld [vmem:[%s273_s29] sm:$0xff]  ;;  %v6547_v1 = vld [vmem:[%s273_s29 + $0x8] sm:$0xff]  ;;  %s6488_s13 = smov 112   ;;  %s6489_s14 = smov 111   ;;  %vm345_vm1 = vcmp.lt.s32.totalorder %v6591_v17, 16  ;;  %vm483_vm2 = vcmp.lt.s32.totalorder %v6591_v17, 15 }
  0x11   : > { %v295_v2 = vunpack.c.l.bf16 %v6545_v0  ;;  %v297_v3 = vunpack.c.l.bf16 %v6547_v1  ;;  %v296_v4 = vunpack.c.h.bf16 %v6545_v0  ;;  %v298_v5 = vunpack.c.h.bf16 %v6547_v1  ;;  %8517 = vst [vmem:[#allocation2_spill] sm:$0xff] %v6594_v18  ;;  %8518 = vst [vmem:[#allocation3_spill] sm:$0xff] %v6597_v19  ;;  %v5996_v33 = vld [vmem:[%s8503_s1 + $0xa] sm:$0x3]  ;;  %v6639_v34 = vld [vmem:[%s8503_s1 + $0xc] sm:$0x3] }
  0x12   : > { %v5992_v9 = vcombine.high %v6545_v0, %v6547_v1  ;;  %v5991_v10 = vcombine.low %v6545_v0, %v6547_v1  ;;  %v6617_v26 = vrot.slane %v316_v20, %v6597_v19  ;;  %v6620_v27 = vrot.slane %v5973_v21, %v6597_v19  ;;  %s6300_s22 = sshll.u32 %s8525_s25, 7 }
  0x13   : > { %v6329_v6 = vpack.i.bf16 %v297_v3, %v295_v2  ;;  %v6334_v7 = vpack.i.bf16 %v298_v5, %v296_v4  ;;  %v6623_v28 = vrot.slane %v5973_v21, %v6594_v18  ;;  %v6628_v31 = vrot.slane %v5980_v24, %v6594_v18  ;;  %s8481_s27 = scalar_lea.vmem %s8509_s7, %s6300_s22 }
  0x14   : > { %v6631_v32 = vrot.slane %v5985_v25, %v6594_v18  ;;  %vm573_vm3 = vcmp.lt.s32.totalorder %v6591_v17, 1  ;;  %v6643_v39 = vrot.slane %v316_v20, %v6594_v18  ;;  %v6646_v40 = vrot.slane %v5980_v24, %v6597_v19 }
  0x15   : > { %6330 = vrot.lane.b32.xlu1 %v6329_v6, %s6481_s30  ;;  %6320 = vrot.lane.b32.xlu0 %v6329_v6, %s6482_s8  ;;  %v6649_v45 = vrot.slane %v5996_v33, %v6594_v18  ;;  %v6652_v46 = vrot.slane %v5985_v25, %v6597_v19  ;;  %v6656_v47 = vrot.slane %v6639_v34, %v6594_v18  ;;  %vm731_vm5 = vcmp.lt.s32.totalorder %v6591_v17, 127 }
  0x16   : > { %v6659_v48 = vrot.slane %v5996_v33, %v6597_v19  ;;  %vm821_vm6 = vcmp.lt.s32.totalorder %v6591_v17, 113  ;;  %vm911_vm7 = vcmp.lt.s32.totalorder %v6591_v17, 112  ;;  %vm1001_vm8 = vcmp.lt.s32.totalorder %v6591_v17, 111 }
  0x19   : > { %6335 = vrot.lane.b32.xlu1 %v6334_v7, %s6481_s30  ;;  %6325 = vrot.lane.b32.xlu0 %v6334_v7, %s6482_s8 }
  0x1d   : > { %6345 = vrot.lane.b32.xlu1 %v6334_v7, %s6484_s9  ;;  %6340 = vrot.lane.b32.xlu0 %v6329_v6, %s6484_s9 }
  0x21   : > { %6355 = vrot.lane.b32.xlu1 %v6334_v7, %s6485_s10  ;;  %6350 = vrot.lane.b32.xlu0 %v6329_v6, %s6485_s10 }
  0x25   : > { %6365 = vrot.lane.b32.xlu1 %v6334_v7, %s6486_s11  ;;  %6360 = vrot.lane.b32.xlu0 %v6329_v6, %s6486_s11 }
  0x29   : > { %6375 = vrot.lane.b32.xlu1 %v6334_v7, %s6487_s12  ;;  %6370 = vrot.lane.b32.xlu0 %v6329_v6, %s6487_s12 }
  0x2d   : > { %6385 = vrot.lane.b32.xlu1 %v6334_v7, %s6488_s13  ;;  %6380 = vrot.lane.b32.xlu0 %v6329_v6, %s6488_s13 }
  0x31   : > { %6395 = vrot.lane.b32.xlu1 %v6334_v7, %s6489_s14  ;;  %6390 = vrot.lane.b32.xlu0 %v6329_v6, %s6489_s14 }
  0x35   : > { %1089 = vperm.xlu1 %6400, %v1081_v11   ;;  %1084 = vperm.xlu0 %6399, %v1080_v12  }
  0x39   : > { %1104 = vperm.xlu1 %6400, %v1100_v13   ;;  %1109 = vperm.xlu0 %6399, %v1101_v14  }
  0x87   : > { %v6605_v22 = vpop.permute.xlu1 %6330  ;;  %v6321_v23 = vpop.permute.xlu0 %6320 }
  0x88   : > { %v6333_v29 = vunpack.i.h.bf16 %v6605_v22  ;;  %v6332_v30 = vunpack.i.l.bf16 %v6605_v22  ;;  %v6323_v35 = vunpack.i.h.bf16 %v6321_v23  ;;  %v6322_v36 = vunpack.i.l.bf16 %v6321_v23 }
  0x8b   : > { %v6336_v37 = vpop.permute.xlu1 %6335  ;;  %v6326_v38 = vpop.permute.xlu0 %6325 }
  0x8c   : > { %v6338_v41 = vunpack.i.h.bf16 %v6336_v37  ;;  %v6337_v42 = vunpack.i.l.bf16 %v6336_v37  ;;  %v6328_v43 = vunpack.i.h.bf16 %v6326_v38  ;;  %v6327_v44 = vunpack.i.l.bf16 %v6326_v38 }
  0x8e   : > { %v312_v49 = vsel %vm311_vm0, %v6332_v30, %v6337_v42  ;;  %v313_v50 = vsel %vm311_vm0, %v6333_v29, %v6338_v41  ;;  %v346_v51 = vsel %vm345_vm1, %v6322_v36, %v6327_v44  ;;  %v347_v52 = vsel %vm345_vm1, %v6323_v35, %v6328_v43 }
  0x8f   : > { %v6346_v53 = vpop.permute.xlu1 %6345  ;;  %v6341_v54 = vpop.permute.xlu0 %6340  ;;  %v329_v55 = vmul.f32 %v6617_v26, %v312_v49  ;;  %v331_v56 = vmul.f32 %v6617_v26, %v313_v50  ;;  %v364_v57 = vmul.f32 %v6620_v27, %v346_v51  ;;  %v366_v58 = vmul.f32 %v6620_v27, %v347_v52  ;;  %v6006_v52 = vld [vmem:[%s8503_s1 + $0xe] sm:$0x3] }
  0x90   : > { %v6348_v59 = vunpack.i.h.bf16 %v6346_v53  ;;  %v6347_v60 = vunpack.i.l.bf16 %v6346_v53  ;;  %v6343_v61 = vunpack.i.h.bf16 %v6341_v54  ;;  %v6342_v62 = vunpack.i.l.bf16 %v6341_v54 }
  0x91   : > { %v333_v63 = vpack.c.bf16 %v331_v56, %v329_v55  ;;  %v368_v2 = vpack.c.bf16 %v366_v58, %v364_v57  ;;  %v348_v3 = vsel %vm345_vm1, %v6327_v44, %v6322_v36  ;;  %v349_v4 = vsel %vm345_vm1, %v6328_v43, %v6323_v35  ;;  %v6402_v57 = vld [vmem:[%s8504_s2] sm:$0xff]  }
  0x92   : > { %v487_v5 = vsel %vm483_vm2, %v6348_v59, %v6343_v61  ;;  %v486_v6 = vsel %vm483_vm2, %v6347_v60, %v6342_v62  ;;  %v363_v7 = vmul.f32 %v6623_v28, %v348_v3  ;;  %v365_v11 = vmul.f32 %v6623_v28, %v349_v4 }
  0x93   : > { %v503_v12 = vmul.f32 %v6628_v31, %v487_v5  ;;  %v501_v13 = vmul.f32 %v6628_v31, %v486_v6  ;;  %v6356_v14 = vpop.permute.xlu1 %6355  ;;  %443 = vmatprep.subr.bf16.mxu1 %v333_v63  ;;  %v6351_v15 = vpop.permute.xlu0 %6350  ;;  %392 = vmatprep.subr.bf16.mxu0 %v368_v2  ;;  %v314_v20 = vsel %vm311_vm0, %v6337_v42, %v6332_v30  ;;  %v6401_v42 = vld [vmem:[%s8504_s2 + $0x8] sm:$0xff]  }
  0x94   : > { %v6358_v21 = vunpack.i.h.bf16 %v6356_v14  ;;  %v6357_v22 = vunpack.i.l.bf16 %v6356_v14  ;;  %v6353_v23 = vunpack.i.h.bf16 %v6351_v15  ;;  %v6352_v24 = vunpack.i.l.bf16 %v6351_v15 }
  0x95   : > { %v367_v25 = vpack.c.bf16 %v365_v11, %v363_v7  ;;  %v315_v33 = vsel %vm311_vm0, %v6338_v41, %v6333_v29  ;;  %v328_v35 = vmul.f32 %v6643_v39, %v314_v20  ;;  %v484_v36 = vsel %vm483_vm2, %v6342_v62, %v6347_v60 }
  0x96   : > { %v577_v30 = vsel %vm573_vm3, %v6358_v21, %v6353_v23  ;;  %v576_v37 = vsel %vm573_vm3, %v6357_v22, %v6352_v24  ;;  %v330_v38 = vmul.f32 %v6643_v39, %v315_v33  ;;  %v485_v29 = vsel %vm483_vm2, %v6343_v61, %v6348_v59 }
  0x97   : > { %v593_v41 = vmul.f32 %v6631_v32, %v577_v30  ;;  %v591_v43 = vmul.f32 %v6631_v32, %v576_v37  ;;  %393 = vmatpush1.bf16.msra.mxu0 %v367_v25  ;;  %v502_v44 = vmul.f32 %v6646_v40, %v484_v36  ;;  %v504_v49 = vmul.f32 %v6646_v40, %v485_v29  ;;  %v6366_v50 = vpop.permute.xlu1 %6365  ;;  %v6361_v51 = vpop.permute.xlu0 %6360  ;;  %v6403_v25 = vld [vmem:[%s8504_s2 + $0x10] sm:$0xff]  }
  0x98   : > { %v332_v53 = vpack.c.bf16 %v330_v38, %v328_v35  ;;  %v6368_v54 = vunpack.i.h.bf16 %v6366_v50  ;;  %v6367_v55 = vunpack.i.l.bf16 %v6366_v50  ;;  %v6363_v56 = vunpack.i.h.bf16 %v6361_v51 }
  0x99   : > { %v506_v58 = vpack.c.bf16 %v504_v49, %v502_v44  ;;  %v6362_v59 = vunpack.i.l.bf16 %v6361_v51  ;;  %v505_v60 = vpack.c.bf16 %v503_v12, %v501_v13  ;;  %v574_v61 = vsel %vm573_vm3, %v6352_v24, %v6357_v22  ;;  %v6404_v49 = vld [vmem:[%s8504_s2 + $0x18] sm:$0xff]  }
  0x9a   : > { %444 = vmatpush1.bf16.msra.mxu1 %v332_v53  ;;  %5975 = vmatmul.mubr.msk.bf16.vlgmr.msra.gmra.mxu0 %vm374_vm4, %v6401_v42  ;;  %v575_v62 = vsel %vm573_vm3, %v6353_v23, %v6358_v21  ;;  %v592_v63 = vmul.f32 %v6652_v46, %v574_v61  ;;  %v6722_v2 = vrot.slane %v6006_v52, %v6594_v18  ;;  %v6011_v53 = vld [vmem:[%s8503_s1 + $0x10] sm:$0x3] }
  0x9b   : > { %529 = vmatprep.subr.bf16.mxu0 %v506_v58  ;;  %v733_v3 = vsel %vm731_vm5, %v6363_v56, %v6368_v54  ;;  %v732_v4 = vsel %vm731_vm5, %v6362_v59, %v6367_v55  ;;  %v594_v5 = vmul.f32 %v6652_v46, %v575_v62  ;;  %v6376_v6 = vpop.permute.xlu1 %6375  ;;  %v6371_v7 = vpop.permute.xlu0 %6370  ;;  %v6731_v11 = vrot.slane %v6639_v34, %v6597_v19 }
  0x9c   : > { %530 = vmatpush1.bf16.msra.mxu0 %v505_v60  ;;  %v595_v12 = vpack.c.bf16 %v593_v41, %v591_v43  ;;  %547 = vmatprep.mubr.bf16.mxu0 %v8510_v8  ;;  %v6378_v13 = vunpack.i.h.bf16 %v6376_v6  ;;  %v6377_v14 = vunpack.i.l.bf16 %v6376_v6  ;;  %v6373_v15 = vunpack.i.h.bf16 %v6371_v7 }
  0x9d   : > { %5977 = vmatmul.mubr.msk.bf16.vlgmr.msra.gmra.mxu1 %vm374_vm4, %v6402_v57  ;;  %v596_v20 = vpack.c.bf16 %v594_v5, %v592_v63  ;;  %v6372_v21 = vunpack.i.l.bf16 %v6371_v7  ;;  %687 = vmatprep.subr.bf16.mxu0 %v5992_v9  ;;  %v734_v22 = vsel %vm731_vm5, %v6367_v55, %v6362_v59  ;;  %v735_v34 = vsel %vm731_vm5, %v6368_v54, %v6363_v56 }
  0x9e   : > { %v751_v23 = vmul.f32 %v6649_v45, %v733_v3  ;;  %v749_v24 = vmul.f32 %v6649_v45, %v732_v4  ;;  %637 = vmatprep.mubr.bf16.mxu1 %v8510_v8  ;;  %v750_v33 = vmul.f32 %v6659_v48, %v734_v22  ;;  %v752_v9 = vmul.f32 %v6659_v48, %v735_v34 }
  0x9f   : > { %619 = vmatprep.subr.bf16.mxu1 %v596_v20  ;;  %v823_v35 = vsel %vm821_vm6, %v6373_v15, %v6378_v13  ;;  %v822_v36 = vsel %vm821_vm6, %v6372_v21, %v6377_v14  ;;  %v6386_v30 = vpop.permute.xlu1 %6385  ;;  %v6381_v37 = vpop.permute.xlu0 %6380  ;;  %v824_v38 = vsel %vm821_vm6, %v6377_v14, %v6372_v21  ;;  %v825_v42 = vsel %vm821_vm6, %v6378_v13, %v6373_v15  ;;  %v6407_v14 = vld [vmem:[%s8504_s2 + $0x20] sm:$0xff]  }
  0xa0   : > { %620 = vmatpush1.bf16.msra.mxu1 %v595_v12  ;;  %v6388_v29 = vunpack.i.h.bf16 %v6386_v30  ;;  %v6387_v41 = vunpack.i.l.bf16 %v6386_v30  ;;  %v6383_v43 = vunpack.i.h.bf16 %v6381_v37  ;;  %v6759_v44 = vrot.slane %v6006_v52, %v6597_v19 }
  0xa1   : > { %v6382_v50 = vunpack.i.l.bf16 %v6381_v37  ;;  %v754_v51 = vpack.c.bf16 %v752_v9, %v750_v33  ;;  %v840_v54 = vmul.f32 %v6731_v11, %v824_v38  ;;  %v842_v55 = vmul.f32 %v6731_v11, %v825_v42  ;;  %v6408_v9 = vld [vmem:[%s8504_s2 + $0x28] sm:$0xff]   ;;  %v6409_v38 = vld [vmem:[%s8504_s2 + $0x30] sm:$0xff]  }
  0xa2   : > { %v841_v56 = vmul.f32 %v6656_v47, %v823_v35  ;;  %v839_v57 = vmul.f32 %v6656_v47, %v822_v36  ;;  %5982 = vmatmul.mubr.msk.bf16.vlgmr.msra.gmra.mxu0 %vm374_vm4, %v6403_v25  ;;  %v753_v52 = vpack.c.bf16 %v751_v23, %v749_v24  ;;  %v915_v58 = vsel %vm911_vm7, %v6388_v29, %v6383_v43 }
  0xa3   : > { %v913_v59 = vsel %vm911_vm7, %v6383_v43, %v6388_v29  ;;  %v912_v60 = vsel %vm911_vm7, %v6382_v50, %v6387_v41  ;;  %777 = vmatprep.subr.bf16.mxu1 %v754_v51  ;;  %688 = vmatpush1.bf16.msra.mxu0 %v5991_v10  ;;  %v6396_v61 = vpop.permute.xlu1 %6395  ;;  %v6391_v62 = vpop.permute.xlu0 %6390  ;;  %v844_v63 = vpack.c.bf16 %v842_v55, %v840_v54  ;;  %v6410_v29 = vld [vmem:[%s8504_s2 + $0x38] sm:$0xff]  }
  0xa4   : > { %705 = vmatprep.mubr.bf16.mxu0 %v8510_v8  ;;  %v6398_v3 = vunpack.i.h.bf16 %v6396_v61  ;;  %v6397_v4 = vunpack.i.l.bf16 %v6396_v61  ;;  %v6393_v5 = vunpack.i.h.bf16 %v6391_v62  ;;  %v6784_v6 = vrot.slane %v6011_v53, %v6597_v19 }
  0xa5   : > { %5987 = vmatmul.mubr.msk.bf16.vlgmr.msra.gmra.mxu1 %vm374_vm4, %v6404_v49  ;;  %v6788_v7 = vrot.slane %v6011_v53, %v6594_v18  ;;  %v6392_v0 = vunpack.i.l.bf16 %v6391_v62  ;;  %867 = vmatprep.subr.bf16.mxu0 %v844_v63  ;;  %v914_v1 = vsel %vm911_vm7, %v6387_v41, %v6382_v50  ;;  %v932_v10 = vmul.f32 %v6759_v44, %v915_v58  ;;  %v6411_v41 = vld [vmem:[%s8504_s2 + $0x40] sm:$0xff]  }
  0xa6   : > { %v931_v12 = vmul.f32 %v6722_v2, %v913_v59  ;;  %v929_v13 = vmul.f32 %v6722_v2, %v912_v60  ;;  %778 = vmatpush1.bf16.msra.mxu1 %v753_v52  ;;  %795 = vmatprep.mubr.bf16.mxu1 %v8510_v8  ;;  %v930_v15 = vmul.f32 %v6759_v44, %v914_v1 }
  0xa7   : > { %v1003_v20 = vsel %vm1001_vm8, %v6393_v5, %v6398_v3  ;;  %v843_v21 = vpack.c.bf16 %v841_v56, %v839_v57  ;;  %v1004_v22 = vsel %vm1001_vm8, %v6397_v4, %v6392_v0  ;;  %v1005_v34 = vsel %vm1001_vm8, %v6398_v3, %v6393_v5 }
  0xa8   : > { %v1002_v23 = vsel %vm1001_vm8, %v6392_v0, %v6397_v4  ;;  %v934_v24 = vpack.c.bf16 %v932_v10, %v930_v15  ;;  %v1020_v25 = vmul.f32 %v6784_v6, %v1004_v22  ;;  %v1022_v33 = vmul.f32 %v6784_v6, %v1005_v34 }
  0xa9   : > { %v933_v35 = vpack.c.bf16 %v931_v12, %v929_v13  ;;  %v1021_v30 = vmul.f32 %v6788_v7, %v1003_v20  ;;  %v1019_v37 = vmul.f32 %v6788_v7, %v1002_v23 }
  0xaa   : > { %5993 = vmatmul.mubr.msk.bf16.vlgmr.msra.gmra.mxu0 %vm374_vm4, %v6407_v14  ;;  %957 = vmatprep.subr.bf16.mxu1 %v934_v24  ;;  %v1024_v36 = vpack.c.bf16 %v1022_v33, %v1020_v25 }
  0xab   : > { %868 = vmatpush1.bf16.msra.mxu0 %v843_v21  ;;  %885 = vmatprep.mubr.bf16.mxu0 %v8510_v8  ;;  %v1023_v42 = vpack.c.bf16 %v1021_v30, %v1019_v37 }
  0xac   : > { %1047 = vmatprep.subr.bf16.mxu0 %v1024_v36 }
  0xad   : > { %5998 = vmatmul.mubr.msk.bf16.vlgmr.msra.gmra.mxu1 %vm374_vm4, %v6408_v9 }
  0xae   : > { %958 = vmatpush1.bf16.msra.mxu1 %v933_v35  ;;  %975 = vmatprep.mubr.bf16.mxu1 %v8510_v8 }
  0xb0   : > { %v1090_v30 = vpop.permute.xlu1 %1089 }
  0xb2   : > { %6003 = vmatmul.mubr.msk.bf16.vlgmr.msra.gmra.mxu0 %vm374_vm4, %v6409_v38 }
  0xb3   : > { %1048 = vmatpush1.bf16.msra.mxu0 %v1023_v42  ;;  %1065 = vmatprep.mubr.bf16.mxu0 %v8510_v8 }
  0xb5   : > { %6008 = vmatmul.mubr.msk.bf16.vlgmr.msra.gmra.mxu1 %vm374_vm4, %v6410_v29 }
  0xb6   : > { %1202 = vmatprep.mubr.bf16.mxu1 %v8510_v8 }
  0xba   : > { %6013 = vmatmul.mubr.msk.bf16.vlgmr.msra.gmra.mxu0 %vm374_vm4, %v6411_v41 }
  0xbb   : > { %1253 = vmatprep.mubr.bf16.mxu0 %v8510_v8 }
 0x15a   : > { %v412_v43 = vpop.f32.mrf.mxu0 }
 0x15c   : > { %v414_v49 = vpop.f32.mrf.mxu0 }
 0x15d   : > { %v463_v50 = vpop.f32.mrf.mxu1 }
 0x15e   : > { %v416_v51 = vpop.f32.mrf.mxu0  ;;  %v464_v60 = vadd.f32 %v463_v50, %v412_v43 }
 0x15f   : > { %v465_v53 = vpop.f32.mrf.mxu1 }
 0x160   : > { %v418_v54 = vpop.f32.mrf.mxu0 }
 0x161   : > { %v467_v55 = vpop.f32.mrf.mxu1 }
 0x162   : > { %v549_v56 = vpop.f32.mrf.mxu0  ;;  %v468_v5 = vadd.f32 %v467_v55, %v416_v51  ;;  %v1085_v51 = vpop.permute.xlu0 %1084 }
 0x163   : > { %v469_v57 = vpop.f32.mrf.mxu1  ;;  %v558_v63 = vadd.f32 %v549_v56, %v464_v60  ;;  %v1105_v56 = vpop.permute.xlu1 %1104  ;;  %v466_v60 = vadd.f32 %v465_v53, %v414_v49 }
 0x164   : > { %v551_v52 = vpop.f32.mrf.mxu0 }
 0x165   : > { %v639_v58 = vpop.f32.mrf.mxu1 }
 0x166   : > { %v553_v59 = vpop.f32.mrf.mxu0  ;;  %v648_v10 = vadd.f32 %v639_v58, %v558_v63 }
 0x167   : > { %v641_v61 = vpop.f32.mrf.mxu1  ;;  %v560_v12 = vadd.f32 %v553_v59, %v468_v5  ;;  %v559_v5 = vadd.f32 %v551_v52, %v466_v60 }
 0x168   : > { %v555_v62 = vpop.f32.mrf.mxu0 }
 0x169   : > { %v643_v3 = vpop.f32.mrf.mxu1 }
 0x16a   : > { %v707_v4 = vpop.f32.mrf.mxu0  ;;  %v650_v22 = vadd.f32 %v643_v3, %v560_v12 }
 0x16b   : > { %v645_v0 = vpop.f32.mrf.mxu1  ;;  %v716_v15 = vadd.f32 %v707_v4, %v648_v10 }
 0x16c   : > { %v709_v1 = vpop.f32.mrf.mxu0 }
 0x16d   : > { %v797_v13 = vpop.f32.mrf.mxu1 }
 0x16e   : > { %v711_v14 = vpop.f32.mrf.mxu0  ;;  %v806_v24 = vadd.f32 %v797_v13, %v716_v15  ;;  %v470_v13 = vadd.f32 %v469_v57, %v418_v54 }
 0x16f   : > { %v799_v20 = vpop.f32.mrf.mxu1  ;;  %v718_v25 = vadd.f32 %v711_v14, %v650_v22  ;;  %v1110_v22 = vpop.permute.xlu0 %1109 }
 0x170   : > { %v713_v21 = vpop.f32.mrf.mxu0 }
 0x171   : > { %v801_v34 = vpop.f32.mrf.mxu1 }
 0x172   : > { %v887_v23 = vpop.f32.mrf.mxu0  ;;  %v808_v38 = vadd.f32 %v801_v34, %v718_v25  ;;  %v649_v34 = vadd.f32 %v641_v61, %v559_v5 }
 0x173   : > { %v803_v33 = vpop.f32.mrf.mxu1  ;;  %v896_v35 = vadd.f32 %v887_v23, %v806_v24  ;;  %v561_v23 = vadd.f32 %v555_v62, %v470_v13 }
 0x174   : > { %v889_v9 = vpop.f32.mrf.mxu0  ;;  %v717_v49 = vadd.f32 %v709_v1, %v649_v34 }
 0x175   : > { %v977_v36 = vpop.f32.mrf.mxu1  ;;  %v651_v54 = vadd.f32 %v645_v0, %v561_v23 }
 0x176   : > { %v891_v37 = vpop.f32.mrf.mxu0  ;;  %v986_v41 = vadd.f32 %v977_v36, %v896_v35  ;;  %v807_v57 = vadd.f32 %v799_v20, %v717_v49 }
 0x177   : > { %v979_v42 = vpop.f32.mrf.mxu1  ;;  %v898_v43 = vadd.f32 %v891_v37, %v808_v38  ;;  %v719_v52 = vadd.f32 %v713_v21, %v651_v54 }
 0x178   : > { %v893_v29 = vpop.f32.mrf.mxu0  ;;  %v897_v61 = vadd.f32 %v889_v9, %v807_v57 }
 0x179   : > { %v981_v58 = vpop.f32.mrf.mxu1  ;;  %v809_v62 = vadd.f32 %v803_v33, %v719_v52 }
 0x17a   : > { %v1067_v50 = vpop.f32.mrf.mxu0  ;;  %v988_v63 = vadd.f32 %v981_v58, %v898_v43  ;;  %v987_v1 = vadd.f32 %v979_v42, %v897_v61  ;;  %v6051_v43 = vld [vmem:[%s8505_s3 + $0x18] sm:$0xff] }
 0x17b   : > { %v1076_v55 = vadd.f32 %v1067_v50, %v986_v41  ;;  %v899_v25 = vadd.f32 %v893_v29, %v809_v62  ;;  %v983_v0 = vpop.f32.mrf.mxu1  ;;  %v6052_v41 = vld [vmem:[%s8506_s4 + $0x10] sm:$0xff]  ;;  %v6053_v50 = vld [vmem:[%s8506_s4 + $0x18] sm:$0xff] }
 0x17c   : > { %v1069_v59 = vpop.f32.mrf.mxu0 }
 0x17d   : > { %v1092_v3 = vadd.f32 %v1085_v51, %v1076_v55  ;;  %v1077_v35 = vadd.f32 %v1069_v59, %v987_v1  ;;  %v989_v21 = vadd.f32 %v983_v0, %v899_v25 }
 0x17e   : > { %v1071_v4 = vpop.f32.mrf.mxu0 }
 0x17f   : > { %vm1096_vm9 = vcmp.ge.f32.partialorder %v1092_v3, 0.0  ;;  %v1112_v10 = vmul.f32 %v1105_v56, %v1092_v3  ;;  %v1078_v12 = vadd.f32 %v1071_v4, %v988_v63  ;;  %v1093_v9 = vadd.f32 %v1085_v51, %v1077_v35 }
 0x180   : > { %v1073_v20 = vpop.f32.mrf.mxu0 }
 0x181   : > { %v6834_v14 = vsel %vm1096_vm9, %v1092_v3, %v1112_v10  ;;  %v1094_v15 = vadd.f32 %v1090_v30, %v1078_v12  ;;  %v1079_v33 = vadd.f32 %v1073_v20, %v989_v21  ;;  %v1113_v36 = vmul.f32 %v1105_v56, %v1093_v9 }
 0x182   : > { %1144 = vrot.lane.b32.xlu1 %v6834_v14, %s6482_s8  ;;  %vm1097_vm11 = vcmp.ge.f32.partialorder %v1093_v9, 0.0 }
 0x183   : > { %vm1098_vm10 = vcmp.ge.f32.partialorder %v1094_v15, 0.0  ;;  %v1114_v24 = vmul.f32 %v1110_v22, %v1094_v15  ;;  %v1095_v37 = vadd.f32 %v1090_v30, %v1079_v33  ;;  %v6864_v38 = vsel %vm1097_vm11, %v1093_v9, %v1113_v36  ;;  %v6050_v30 = vld [vmem:[%s8505_s3 + $0x10] sm:$0xff] }
 0x185   : > { %v6838_v53 = vsel %vm1098_vm10, %v1094_v15, %v1114_v24  ;;  %v1115_v42 = vmul.f32 %v1110_v22, %v1095_v37  ;;  %vm1099_vm12 = vcmp.ge.f32.partialorder %v1095_v37, 0.0 }
 0x186   : > { %1123 = vrot.lane.b32.xlu1 %v6834_v14, %s6481_s30  ;;  %1146 = vrot.lane.b32.xlu0 %v6838_v53, %s6482_s8 }
 0x187   : > { %v6870_v29 = vsel %vm1099_vm12, %v1095_v37, %v1115_v42 }
 0x188   : > { %8519 = vst [vmem:[#allocation4_spill] sm:$0xff] %v6870_v29 }
 0x18a   : > { %1267 = vrot.lane.b32.xlu1 %v6834_v14, %s6484_s9  ;;  %1125 = vrot.lane.b32.xlu0 %v6838_v53, %s6481_s30 }
 0x18e   : > { %1343 = vrot.lane.b32.xlu1 %v6834_v14, %s6485_s10  ;;  %1269 = vrot.lane.b32.xlu0 %v6838_v53, %s6484_s9 }
 0x192   : > { %1479 = vrot.lane.b32.xlu1 %v6834_v14, %s6486_s11  ;;  %1345 = vrot.lane.b32.xlu0 %v6838_v53, %s6485_s10 }
 0x196   : > { %1555 = vrot.lane.b32.xlu1 %v6834_v14, %s6487_s12  ;;  %1481 = vrot.lane.b32.xlu0 %v6838_v53, %s6486_s11 }
 0x19a   : > { %1631 = vrot.lane.b32.xlu1 %v6834_v14, %s6488_s13  ;;  %1557 = vrot.lane.b32.xlu0 %v6838_v53, %s6487_s12 }
 0x19e   : > { %1148 = vrot.lane.b32.xlu1 %v6864_v38, %s6482_s8  ;;  %1633 = vrot.lane.b32.xlu0 %v6838_v53, %s6488_s13 }
 0x1a2   : > { %1127 = vrot.lane.b32.xlu1 %v6864_v38, %s6481_s30  ;;  %1150 = vrot.lane.b32.xlu0 %v6870_v29, %s6482_s8 }
 0x1a6   : > { %1271 = vrot.lane.b32.xlu1 %v6864_v38, %s6484_s9  ;;  %1129 = vrot.lane.b32.xlu0 %v6870_v29, %s6481_s30 }
 0x1aa   : > { %1347 = vrot.lane.b32.xlu1 %v6864_v38, %s6485_s10  ;;  %1273 = vrot.lane.b32.xlu0 %v6870_v29, %s6484_s9 }
 0x1ae   : > { %1707 = vrot.lane.b32.xlu1 %v6834_v14, %s6489_s14  ;;  %1349 = vrot.lane.b32.xlu0 %v6870_v29, %s6485_s10 }
 0x1b2   : > { %1483 = vrot.lane.b32.xlu1 %v6864_v38, %s6486_s11  ;;  %1709 = vrot.lane.b32.xlu0 %v6838_v53, %s6489_s14 }
 0x1b6   : > { %1559 = vrot.lane.b32.xlu1 %v6864_v38, %s6487_s12  ;;  %1485 = vrot.lane.b32.xlu0 %v6870_v29, %s6486_s11 }
 0x1ba   : > { %1635 = vrot.lane.b32.xlu1 %v6864_v38, %s6488_s13  ;;  %1561 = vrot.lane.b32.xlu0 %v6870_v29, %s6487_s12 }
 0x1be   : > { %1711 = vrot.lane.b32.xlu1 %v6864_v38, %s6489_s14  ;;  %1637 = vrot.lane.b32.xlu0 %v6870_v29, %s6488_s13 }
 0x1c2   : > { %1785 = vperm.xlu1 %6400, %v6050_v30   ;;  %1713 = vrot.lane.b32.xlu0 %v6870_v29, %s6489_s14 }
 0x1c6   : > { %1806 = vperm.xlu1 %6400, %v6052_v41   ;;  %1790 = vperm.xlu0 %6399, %v6051_v43   ;;  %v6412_v43 = vld [vmem:[%s8504_s2 + $0x50] sm:$0xff]  }
 0x1ca   : > { %1811 = vperm.xlu0 %6399, %v6053_v50  }
 0x1f4   : > { %v1145_v51 = vpop.permute.xlu1 %1144 }
 0x1f8   : > { %v1124_v55 = vpop.permute.xlu1 %1123  ;;  %v1147_v56 = vpop.permute.xlu0 %1146 }
 0x1fc   : > { %v1268_v58 = vpop.permute.xlu1 %1267  ;;  %v1126_v59 = vpop.permute.xlu0 %1125 }
 0x200   : > { %v1344_v60 = vpop.permute.xlu1 %1343  ;;  %v1270_v63 = vpop.permute.xlu0 %1269 }
 0x204   : > { %v6918_v3 = vpop.permute.xlu1 %1479  ;;  %v1346_v4 = vpop.permute.xlu0 %1345 }
 0x208   : > { %v6920_v5 = vpop.permute.xlu1 %1555  ;;  %v6922_v10 = vpop.permute.xlu0 %1481 }
 0x20c   : > { %v6924_v12 = vpop.permute.xlu1 %1631  ;;  %v6926_v13 = vpop.permute.xlu0 %1557 }
 0x210   : > { %v1149_v15 = vpop.permute.xlu1 %1148  ;;  %v6928_v22 = vpop.permute.xlu0 %1633 }
 0x211   : > { %v1152_v34 = vsel %vm345_vm1, %v1145_v51, %v1149_v15  ;;  %v1154_v23 = vsel %vm345_vm1, %v1149_v15, %v1145_v51 }
 0x212   : > { %v1156_v52 = vmul.f32 %v1154_v23, %v6623_v28  ;;  %v1157_v61 = vmul.f32 %v1152_v34, %v6620_v27 }
 0x214   : > { %v1128_v24 = vpop.permute.xlu1 %1127  ;;  %v1151_v49 = vpop.permute.xlu0 %1150 }
 0x215   : > { %v1153_v54 = vsel %vm345_vm1, %v1147_v56, %v1151_v49  ;;  %v1155_v57 = vsel %vm345_vm1, %v1151_v49, %v1147_v56  ;;  %v1131_v25 = vsel %vm311_vm0, %v1124_v55, %v1128_v24  ;;  %v1133_v35 = vsel %vm311_vm0, %v1128_v24, %v1124_v55 }
 0x216   : > { %v1158_v62 = vmul.f32 %v1155_v57, %v6623_v28  ;;  %v1159_v1 = vmul.f32 %v1153_v54, %v6620_v27  ;;  %v1135_v37 = vmul.f32 %v1133_v35, %v6643_v39  ;;  %v1136_v42 = vmul.f32 %v1131_v25, %v6617_v26 }
 0x218   : > { %v1160_v0 = vpack.c.bf16 %v1158_v62, %v1156_v52  ;;  %v1272_v20 = vpop.permute.xlu1 %1271  ;;  %v1130_v21 = vpop.permute.xlu0 %1129  ;;  %v1161_v9 = vpack.c.bf16 %v1159_v1, %v1157_v61 }
 0x219   : > { %v1132_v33 = vsel %vm311_vm0, %v1126_v59, %v1130_v21  ;;  %v1134_v36 = vsel %vm311_vm0, %v1130_v21, %v1126_v59  ;;  %v1275_v50 = vsel %vm483_vm2, %v1268_v58, %v1272_v20  ;;  %v1277_v51 = vsel %vm483_vm2, %v1272_v20, %v1268_v58 }
 0x21a   : > { %v1137_v30 = vmul.f32 %v1134_v36, %v6643_v39  ;;  %v1138_v41 = vmul.f32 %v1132_v33, %v6617_v26  ;;  %1184 = vmatprep.subr.bf16.mxu1 %v1161_v9  ;;  %v1279_v24 = vmul.f32 %v1277_v51, %v6628_v31  ;;  %v1280_v49 = vmul.f32 %v1275_v50, %v6646_v40  ;;  %v6414_v36 = vld [vmem:[%s8504_s2 + $0x58] sm:$0xff]   ;;  %v6415_v51 = vld [vmem:[%s8504_s2 + $0x60] sm:$0xff]  }
 0x21b   : > { %1185 = vmatpush1.bf16.msra.mxu1 %v1160_v0 }
 0x21c   : > { %v1139_v55 = vpack.c.bf16 %v1137_v30, %v1135_v37  ;;  %v1348_v56 = vpop.permute.xlu1 %1347  ;;  %v1274_v59 = vpop.permute.xlu0 %1273  ;;  %v1140_v15 = vpack.c.bf16 %v1138_v41, %v1136_v42  ;;  %v1419_v41 = vpack.c.bf16 %v6838_v53, %v6834_v14 }
 0x21d   : > { %v1276_v34 = vsel %vm483_vm2, %v1270_v63, %v1274_v59  ;;  %v1278_v23 = vsel %vm483_vm2, %v1274_v59, %v1270_v63  ;;  %v1351_v58 = vsel %vm573_vm3, %v1344_v60, %v1348_v56  ;;  %v1353_v52 = vsel %vm573_vm3, %v1348_v56, %v1344_v60  ;;  %v6413_v63 = vld [vmem:[%s8504_s2 + $0x48] sm:$0xff]  }
 0x21e   : > { %v1281_v54 = vmul.f32 %v1278_v23, %v6628_v31  ;;  %v1282_v57 = vmul.f32 %v1276_v34, %v6646_v40  ;;  %6019 = vmatmul.mubr.msk.bf16.vlgmr.msra.gmra.mxu1 %vm374_vm4, %v6412_v43  ;;  %1235 = vmatprep.subr.bf16.mxu0 %v1140_v15  ;;  %v1420_v60 = vpack.c.bf16 %v6870_v29, %v6864_v38 }
 0x21f   : > { %1325 = vmatprep.mubr.bf16.mxu1 %v8510_v8  ;;  %1236 = vmatpush1.bf16.msra.mxu0 %v1139_v55  ;;  %v1355_v20 = vmul.f32 %v1353_v52, %v6631_v32  ;;  %v1356_v21 = vmul.f32 %v1351_v58, %v6652_v46 }
 0x220   : > { %v1283_v61 = vpack.c.bf16 %v1281_v54, %v1279_v24  ;;  %v6978_v62 = vpop.permute.xlu1 %1707  ;;  %v1350_v1 = vpop.permute.xlu0 %1349  ;;  %v1284_v25 = vpack.c.bf16 %v1282_v57, %v1280_v49  ;;  %v6416_v54 = vld [vmem:[%s8504_s2 + $0x68] sm:$0xff]  }
 0x221   : > { %v1352_v35 = vsel %vm573_vm3, %v1346_v4, %v1350_v1  ;;  %v1354_v0 = vsel %vm573_vm3, %v1350_v1, %v1346_v4 }
 0x222   : > { %v1357_v9 = vmul.f32 %v1354_v0, %v6631_v32  ;;  %v1358_v33 = vmul.f32 %v1352_v35, %v6652_v46  ;;  %1307 = vmatprep.subr.bf16.mxu1 %v1284_v25  ;;  %6021 = vmatmul.mubr.msk.bf16.vlgmr.msra.gmra.mxu0 %vm374_vm4, %v6413_v63 }
 0x223   : > { %1308 = vmatpush1.bf16.msra.mxu1 %v1283_v61  ;;  %1401 = vmatprep.mubr.bf16.mxu0 %v8510_v8 }
 0x224   : > { %v1359_v4 = vpack.c.bf16 %v1357_v9, %v1355_v20  ;;  %v1484_v37 = vpop.permute.xlu1 %1483  ;;  %v6994_v42 = vpop.permute.xlu0 %1709  ;;  %1443 = vmatprep.subr.bf16.mxu1 %v1420_v60  ;;  %v1360_v30 = vpack.c.bf16 %v1358_v33, %v1356_v21 }
 0x225   : > { %v1487_v43 = vsel %vm731_vm5, %v6918_v3, %v1484_v37  ;;  %v1489_v50 = vsel %vm731_vm5, %v1484_v37, %v6918_v3 }
 0x226   : > { %6025 = vmatmul.mubr.msk.bf16.vlgmr.msra.gmra.mxu1 %vm374_vm4, %v6414_v36  ;;  %1383 = vmatprep.subr.bf16.mxu0 %v1360_v30  ;;  %v1491_v59 = vmul.f32 %v1487_v43, %v6649_v45  ;;  %v1492_v34 = vmul.f32 %v1489_v50, %v6659_v48 }
 0x227   : > { %1384 = vmatpush1.bf16.msra.mxu0 %v1359_v4  ;;  %1444 = vmatpush1.bf16.msra.mxu1 %v1419_v41 }
 0x228   : > { %v1560_v55 = vpop.permute.xlu1 %1559  ;;  %v1486_v56 = vpop.permute.xlu0 %1485  ;;  %1461 = vmatprep.mubr.bf16.mxu1 %v8510_v8 }
 0x229   : > { %v1488_v15 = vsel %vm731_vm5, %v6922_v10, %v1486_v56  ;;  %v1490_v3 = vsel %vm731_vm5, %v1486_v56, %v6922_v10  ;;  %v1563_v23 = vsel %vm821_vm6, %v6920_v5, %v1560_v55  ;;  %v1565_v57 = vsel %vm821_vm6, %v1560_v55, %v6920_v5 }
 0x22a   : > { %v1493_v24 = vmul.f32 %v1488_v15, %v6649_v45  ;;  %v1494_v49 = vmul.f32 %v1490_v3, %v6659_v48  ;;  %6029 = vmatmul.mubr.msk.bf16.vlgmr.msra.gmra.mxu0 %vm374_vm4, %v6415_v51  ;;  %v1567_v61 = vmul.f32 %v1563_v23, %v6656_v47  ;;  %v1568_v5 = vmul.f32 %v1565_v57, %v6731_v11  ;;  %v6418_v51 = vld [vmem:[%s8504_s2 + $0x78] sm:$0xff]  }
 0x22b   : > { %1537 = vmatprep.mubr.bf16.mxu0 %v8510_v8 }
 0x22c   : > { %v1495_v10 = vpack.c.bf16 %v1493_v24, %v1491_v59  ;;  %v1636_v58 = vpop.permute.xlu1 %1635  ;;  %v1562_v52 = vpop.permute.xlu0 %1561  ;;  %v1496_v63 = vpack.c.bf16 %v1494_v49, %v1492_v34  ;;  %v6419_v49 = vld [vmem:[%s8504_s2 + $0x80] sm:$0xff]  }
 0x22d   : > { %v1564_v1 = vsel %vm821_vm6, %v6926_v13, %v1562_v52  ;;  %v1566_v25 = vsel %vm821_vm6, %v1562_v52, %v6926_v13  ;;  %v1639_v35 = vsel %vm911_vm7, %v6924_v12, %v1636_v58  ;;  %v1641_v20 = vsel %vm911_vm7, %v1636_v58, %v6924_v12  ;;  %v6417_v13 = vld [vmem:[%s8504_s2 + $0x70] sm:$0xff]  }
 0x22e   : > { %v1569_v0 = vmul.f32 %v1564_v1, %v6656_v47  ;;  %v1570_v60 = vmul.f32 %v1566_v25, %v6731_v11  ;;  %6033 = vmatmul.mubr.msk.bf16.vlgmr.msra.gmra.mxu1 %vm374_vm4, %v6416_v54  ;;  %1519 = vmatprep.subr.bf16.mxu0 %v1496_v63  ;;  %v1643_v4 = vmul.f32 %v1639_v35, %v6722_v2 }
 0x22f   : > { %1613 = vmatprep.mubr.bf16.mxu1 %v8510_v8  ;;  %1520 = vmatpush1.bf16.msra.mxu0 %v1495_v10  ;;  %v1644_v30 = vmul.f32 %v1641_v20, %v6759_v44 }
 0x230   : > { %v1571_v21 = vpack.c.bf16 %v1569_v0, %v1567_v61  ;;  %v1712_v9 = vpop.permute.xlu1 %1711  ;;  %v1638_v33 = vpop.permute.xlu0 %1637  ;;  %v1572_v36 = vpack.c.bf16 %v1570_v60, %v1568_v5 }
 0x231   : > { %v1640_v37 = vsel %vm911_vm7, %v6928_v22, %v1638_v33  ;;  %v1642_v12 = vsel %vm911_vm7, %v1638_v33, %v6928_v22  ;;  %v1715_v41 = vsel %vm1001_vm8, %v6978_v62, %v1712_v9  ;;  %v1717_v55 = vsel %vm1001_vm8, %v1712_v9, %v6978_v62 }
 0x232   : > { %v1645_v43 = vmul.f32 %v1640_v37, %v6722_v2  ;;  %v1646_v50 = vmul.f32 %v1642_v12, %v6759_v44  ;;  %1595 = vmatprep.subr.bf16.mxu1 %v1572_v36  ;;  %6037 = vmatmul.mubr.msk.bf16.vlgmr.msra.gmra.mxu0 %vm374_vm4, %v6417_v13  ;;  %v1719_v15 = vmul.f32 %v1715_v41, %v6788_v7 }
 0x233   : > { %1596 = vmatpush1.bf16.msra.mxu1 %v1571_v21  ;;  %1689 = vmatprep.mubr.bf16.mxu0 %v8510_v8  ;;  %v1720_v62 = vmul.f32 %v1717_v55, %v6784_v6 }
 0x234   : > { %v1647_v22 = vpack.c.bf16 %v1645_v43, %v1643_v4  ;;  %v1714_v56 = vpop.permute.xlu0 %1713  ;;  %v1648_v59 = vpack.c.bf16 %v1646_v50, %v1644_v30 }
 0x235   : > { %v1716_v3 = vsel %vm1001_vm8, %v6994_v42, %v1714_v56  ;;  %v1718_v34 = vsel %vm1001_vm8, %v1714_v56, %v6994_v42  ;;  %v6420_v42 = vld [vmem:[%s8504_s2 + $0x88] sm:$0xff]  }
 0x236   : > { %v1721_v23 = vmul.f32 %v1716_v3, %v6788_v7  ;;  %v1722_v24 = vmul.f32 %v1718_v34, %v6784_v6  ;;  %6041 = vmatmul.mubr.msk.bf16.vlgmr.msra.gmra.mxu1 %vm374_vm4, %v6418_v51  ;;  %1671 = vmatprep.subr.bf16.mxu0 %v1648_v59 }
 0x237   : > { %1672 = vmatpush1.bf16.msra.mxu0 %v1647_v22  ;;  %1765 = vmatprep.mubr.bf16.mxu1 %v8510_v8 }
 0x238   : > { %v1723_v54 = vpack.c.bf16 %v1721_v23, %v1719_v15  ;;  %v1724_v57 = vpack.c.bf16 %v1722_v24, %v1720_v62 }
 0x23a   : > { %1747 = vmatprep.subr.bf16.mxu1 %v1724_v57  ;;  %6045 = vmatmul.mubr.msk.bf16.vlgmr.msra.gmra.mxu0 %vm374_vm4, %v6419_v49 }
 0x23b   : > { %1748 = vmatpush1.bf16.msra.mxu1 %v1723_v54  ;;  %1908 = vmatprep.mubr.bf16.mxu0 %v8510_v8 }
 0x23e   : > { %6049 = vmatmul.mubr.msk.bf16.vlgmr.msra.gmra.mxu1 %vm374_vm4, %v6420_v42  ;;  %v1786_v42 = vpop.permute.xlu1 %1785 }
 0x23f   : > { %1959 = vmatprep.mubr.bf16.mxu1 %v8510_v8 }
 0x2de   : > { %v1204_v10 = vpop.f32.mrf.mxu1 }
 0x2e0   : > { %v1206_v58 = vpop.f32.mrf.mxu1 }
 0x2e2   : > { %v1208_v52 = vpop.f32.mrf.mxu1  ;;  %v1255_v63 = vpop.f32.mrf.mxu0 }
 0x2e3   : > { %v1256_v4 = vadd.f32 %v1255_v63, %v1204_v10 }
 0x2e4   : > { %v7095_v61 = vpop.f32.mrf.mxu1  ;;  %v1257_v1 = vpop.f32.mrf.mxu0 }
 0x2e6   : > { %v1327_v25 = vpop.f32.mrf.mxu1  ;;  %v1259_v5 = vpop.f32.mrf.mxu0 }
 0x2e7   : > { %v1336_v30 = vadd.f32 %v1327_v25, %v1256_v4  ;;  %v1260_v50 = vadd.f32 %v1259_v5, %v1208_v52 }
 0x2e8   : > { %v1329_v35 = vpop.f32.mrf.mxu1  ;;  %v1261_v0 = vpop.f32.mrf.mxu0 }
 0x2ea   : > { %v1331_v60 = vpop.f32.mrf.mxu1  ;;  %v1403_v20 = vpop.f32.mrf.mxu0 }
 0x2eb   : > { %v1412_v51 = vadd.f32 %v1403_v20, %v1336_v30  ;;  %v1338_v56 = vadd.f32 %v1331_v60, %v1260_v50  ;;  %v1791_v60 = vpop.permute.xlu0 %1790 }
 0x2ec   : > { %v1333_v13 = vpop.f32.mrf.mxu1  ;;  %v1405_v21 = vpop.f32.mrf.mxu0 }
 0x2ee   : > { %v1463_v9 = vpop.f32.mrf.mxu1  ;;  %v1407_v33 = vpop.f32.mrf.mxu0 }
 0x2ef   : > { %v1472_v59 = vadd.f32 %v1463_v9, %v1412_v51  ;;  %v1414_v34 = vadd.f32 %v1407_v33, %v1338_v56  ;;  %v1807_v33 = vpop.permute.xlu1 %1806 }
 0x2f0   : > { %v1465_v36 = vpop.f32.mrf.mxu1  ;;  %v1409_v37 = vpop.f32.mrf.mxu0 }
 0x2f2   : > { %v1467_v12 = vpop.f32.mrf.mxu1  ;;  %v1539_v41 = vpop.f32.mrf.mxu0 }
 0x2f3   : > { %v1548_v62 = vadd.f32 %v1539_v41, %v1472_v59  ;;  %v1474_v49 = vadd.f32 %v1467_v12, %v1414_v34  ;;  %v1812_v34 = vpop.permute.xlu0 %1811 }
 0x2f4   : > { %v1469_v43 = vpop.f32.mrf.mxu1  ;;  %v1541_v55 = vpop.f32.mrf.mxu0 }
 0x2f6   : > { %v1615_v22 = vpop.f32.mrf.mxu1  ;;  %v1543_v15 = vpop.f32.mrf.mxu0 }
 0x2f7   : > { %v1624_v54 = vadd.f32 %v1615_v22, %v1548_v62  ;;  %v1550_v63 = vadd.f32 %v1543_v15, %v1474_v49  ;;  %v1258_v15 = vadd.f32 %v1257_v1, %v1206_v58 }
 0x2f8   : > { %v1617_v3 = vpop.f32.mrf.mxu1  ;;  %v1545_v23 = vpop.f32.mrf.mxu0 }
 0x2fa   : > { %v1619_v24 = vpop.f32.mrf.mxu1  ;;  %v1691_v57 = vpop.f32.mrf.mxu0 }
 0x2fb   : > { %v1700_v25 = vadd.f32 %v1691_v57, %v1624_v54  ;;  %v1626_v5 = vadd.f32 %v1619_v24, %v1550_v63  ;;  %v1337_v24 = vadd.f32 %v1329_v35, %v1258_v15  ;;  %v1262_v54 = vadd.f32 %v1261_v0, %v7095_v61 }
 0x2fc   : > { %v1621_v10 = vpop.f32.mrf.mxu1  ;;  %v1693_v4 = vpop.f32.mrf.mxu0 }
 0x2fd   : > { %v1413_v57 = vadd.f32 %v1405_v21, %v1337_v24  ;;  %v1339_v63 = vadd.f32 %v1333_v13, %v1262_v54 }
 0x2fe   : > { %v1767_v52 = vpop.f32.mrf.mxu1  ;;  %v1695_v20 = vpop.f32.mrf.mxu0 }
 0x2ff   : > { %v1776_v30 = vadd.f32 %v1767_v52, %v1700_v25  ;;  %v1702_v50 = vadd.f32 %v1695_v20, %v1626_v5  ;;  %v1473_v25 = vadd.f32 %v1465_v36, %v1413_v57  ;;  %v1415_v58 = vadd.f32 %v1409_v37, %v1339_v63  ;;  %v6090_v20 = vld [vmem:[%s8505_s3 + $0x20] sm:$0xff] }
 0x300   : > { %v1769_v9 = vpop.f32.mrf.mxu1  ;;  %v1697_v13 = vpop.f32.mrf.mxu0 }
 0x301   : > { %v1793_v51 = vadd.f32 %v1786_v42, %v1776_v30  ;;  %v1549_v1 = vadd.f32 %v1541_v55, %v1473_v25  ;;  %v1475_v35 = vadd.f32 %v1469_v43, %v1415_v58  ;;  %v6092_v30 = vld [vmem:[%s8506_s4 + $0x20] sm:$0xff] }
 0x302   : > { %v1771_v41 = vpop.f32.mrf.mxu1 }
 0x303   : > { %vm1797_vm13 = vcmp.ge.f32.partialorder %v1793_v51, 0.0  ;;  %v1814_v56 = vmul.f32 %v1807_v33, %v1793_v51  ;;  %v1778_v12 = vadd.f32 %v1771_v41, %v1702_v50  ;;  %v1625_v52 = vadd.f32 %v1617_v3, %v1549_v1 }
 0x304   : > { %v1551_v61 = vadd.f32 %v1545_v23, %v1475_v35  ;;  %v1773_v5 = vpop.f32.mrf.mxu1 }
 0x305   : > { %v7097_v22 = vsel %vm1797_vm13, %v1793_v51, %v1814_v56  ;;  %v1795_v59 = vadd.f32 %v1791_v60, %v1778_v12  ;;  %v1701_v0 = vadd.f32 %v1693_v4, %v1625_v52 }
 0x306   : > { %1850 = vrot.lane.b32.xlu1 %v7097_v22, %s6482_s8  ;;  %v1627_v21 = vadd.f32 %v1621_v10, %v1551_v61 }
 0x307   : > { %vm1799_vm14 = vcmp.ge.f32.partialorder %v1795_v59, 0.0  ;;  %v1816_v62 = vmul.f32 %v1812_v34, %v1795_v59  ;;  %v1777_v36 = vadd.f32 %v1769_v9, %v1701_v0  ;;  %v6093_v9 = vld [vmem:[%s8506_s4 + $0x28] sm:$0xff] }
 0x308   : > { %v1703_v37 = vadd.f32 %v1697_v13, %v1627_v21 }
 0x309   : > { %v7101_v49 = vsel %vm1799_vm14, %v1795_v59, %v1816_v62  ;;  %v1794_v43 = vadd.f32 %v1786_v42, %v1777_v36 }
 0x30a   : > { %1829 = vrot.lane.b32.xlu1 %v7097_v22, %s6481_s30  ;;  %1852 = vrot.lane.b32.xlu0 %v7101_v49, %s6482_s8  ;;  %v1779_v55 = vadd.f32 %v1773_v5, %v1703_v37 }
 0x30b   : > { %v1815_v3 = vmul.f32 %v1807_v33, %v1794_v43  ;;  %vm1798_vm15 = vcmp.ge.f32.partialorder %v1794_v43, 0.0 }
 0x30c   : > { %v1796_v23 = vadd.f32 %v1791_v60, %v1779_v55  ;;  %v6091_v60 = vld [vmem:[%s8505_s3 + $0x28] sm:$0xff] }
 0x30d   : > { %v7128_v10 = vsel %vm1798_vm15, %v1794_v43, %v1815_v3 }
 0x30e   : > { %1973 = vrot.lane.b32.xlu1 %v7097_v22, %s6484_s9  ;;  %1831 = vrot.lane.b32.xlu0 %v7101_v49, %s6481_s30  ;;  %v1817_v4 = vmul.f32 %v1812_v34, %v1796_v23  ;;  %vm1800_vm9 = vcmp.ge.f32.partialorder %v1796_v23, 0.0 }
 0x310   : > { %v7134_v42 = vsel %vm1800_vm9, %v1796_v23, %v1817_v4 }
 0x312   : > { %2049 = vrot.lane.b32.xlu1 %v7097_v22, %s6485_s10  ;;  %1975 = vrot.lane.b32.xlu0 %v7101_v49, %s6484_s9 }
 0x316   : > { %2185 = vrot.lane.b32.xlu1 %v7097_v22, %s6486_s11  ;;  %2051 = vrot.lane.b32.xlu0 %v7101_v49, %s6485_s10 }
 0x31a   : > { %2261 = vrot.lane.b32.xlu1 %v7097_v22, %s6487_s12  ;;  %2187 = vrot.lane.b32.xlu0 %v7101_v49, %s6486_s11 }
 0x31e   : > { %2337 = vrot.lane.b32.xlu1 %v7097_v22, %s6488_s13  ;;  %2263 = vrot.lane.b32.xlu0 %v7101_v49, %s6487_s12 }
 0x322   : > { %1854 = vrot.lane.b32.xlu1 %v7128_v10, %s6482_s8  ;;  %2339 = vrot.lane.b32.xlu0 %v7101_v49, %s6488_s13 }
 0x326   : > { %1833 = vrot.lane.b32.xlu1 %v7128_v10, %s6481_s30  ;;  %1856 = vrot.lane.b32.xlu0 %v7134_v42, %s6482_s8 }
 0x32a   : > { %1977 = vrot.lane.b32.xlu1 %v7128_v10, %s6484_s9  ;;  %1835 = vrot.lane.b32.xlu0 %v7134_v42, %s6481_s30 }
 0x32e   : > { %2053 = vrot.lane.b32.xlu1 %v7128_v10, %s6485_s10  ;;  %1979 = vrot.lane.b32.xlu0 %v7134_v42, %s6484_s9 }
 0x332   : > { %2413 = vrot.lane.b32.xlu1 %v7097_v22, %s6489_s14  ;;  %2055 = vrot.lane.b32.xlu0 %v7134_v42, %s6485_s10 }
 0x336   : > { %2189 = vrot.lane.b32.xlu1 %v7128_v10, %s6486_s11  ;;  %2415 = vrot.lane.b32.xlu0 %v7101_v49, %s6489_s14 }
 0x33a   : > { %2265 = vrot.lane.b32.xlu1 %v7128_v10, %s6487_s12  ;;  %2191 = vrot.lane.b32.xlu0 %v7134_v42, %s6486_s11 }
 0x33e   : > { %2341 = vrot.lane.b32.xlu1 %v7128_v10, %s6488_s13  ;;  %2267 = vrot.lane.b32.xlu0 %v7134_v42, %s6487_s12 }
 0x342   : > { %2417 = vrot.lane.b32.xlu1 %v7128_v10, %s6489_s14  ;;  %2343 = vrot.lane.b32.xlu0 %v7134_v42, %s6488_s13 }
 0x346   : > { %2491 = vperm.xlu1 %6400, %v6090_v20   ;;  %2419 = vrot.lane.b32.xlu0 %v7134_v42, %s6489_s14 }
 0x34a   : > { %2512 = vperm.xlu1 %6400, %v6092_v30   ;;  %2496 = vperm.xlu0 %6399, %v6091_v60  }
 0x34e   : > { %2517 = vperm.xlu0 %6399, %v6093_v9  }
 0x378   : > { %v1851_v50 = vpop.permute.xlu1 %1850 }
 0x37c   : > { %v1830_v51 = vpop.permute.xlu1 %1829  ;;  %v1853_v33 = vpop.permute.xlu0 %1852 }
 0x380   : > { %v1974_v41 = vpop.permute.xlu1 %1973  ;;  %v1832_v56 = vpop.permute.xlu0 %1831 }
 0x384   : > { %v2050_v12 = vpop.permute.xlu1 %2049  ;;  %v1976_v59 = vpop.permute.xlu0 %1975 }
 0x388   : > { %v7182_v34 = vpop.permute.xlu1 %2185  ;;  %v2052_v15 = vpop.permute.xlu0 %2051 }
 0x38c   : > { %v7184_v62 = vpop.permute.xlu1 %2261  ;;  %v7186_v24 = vpop.permute.xlu0 %2187 }
 0x390   : > { %v7188_v54 = vpop.permute.xlu1 %2337  ;;  %v7190_v57 = vpop.permute.xlu0 %2263 }
 0x394   : > { %v1855_v63 = vpop.permute.xlu1 %1854  ;;  %v7192_v25 = vpop.permute.xlu0 %2339 }
 0x395   : > { %v1858_v58 = vsel %vm345_vm1, %v1851_v50, %v1855_v63  ;;  %v1860_v1 = vsel %vm345_vm1, %v1855_v63, %v1851_v50 }
 0x396   : > { %v1862_v13 = vmul.f32 %v1860_v1, %v6623_v28  ;;  %v1863_v21 = vmul.f32 %v1858_v58, %v6620_v27 }
 0x398   : > { %v1834_v35 = vpop.permute.xlu1 %1833  ;;  %v1857_v52 = vpop.permute.xlu0 %1856 }
 0x399   : > { %v1859_v61 = vsel %vm345_vm1, %v1853_v33, %v1857_v52  ;;  %v1861_v0 = vsel %vm345_vm1, %v1857_v52, %v1853_v33  ;;  %v1837_v37 = vsel %vm311_vm0, %v1830_v51, %v1834_v35  ;;  %v1839_v43 = vsel %vm311_vm0, %v1834_v35, %v1830_v51  ;;  %v6421_v51 = vld [vmem:[%s8504_s2 + $0x98] sm:$0xff]  }
 0x39a   : > { %v1864_v36 = vmul.f32 %v1861_v0, %v6623_v28  ;;  %v1865_v5 = vmul.f32 %v1859_v61, %v6620_v27  ;;  %v1841_v60 = vmul.f32 %v1839_v43, %v6643_v39  ;;  %v1842_v9 = vmul.f32 %v1837_v37, %v6617_v26 }
 0x39c   : > { %v1866_v55 = vpack.c.bf16 %v1864_v36, %v1862_v13  ;;  %v1978_v3 = vpop.permute.xlu1 %1977  ;;  %v1836_v23 = vpop.permute.xlu0 %1835  ;;  %v1867_v4 = vpack.c.bf16 %v1865_v5, %v1863_v21 }
 0x39d   : > { %v1838_v20 = vsel %vm311_vm0, %v1832_v56, %v1836_v23  ;;  %v1840_v30 = vsel %vm311_vm0, %v1836_v23, %v1832_v56  ;;  %v1981_v63 = vsel %vm483_vm2, %v1974_v41, %v1978_v3  ;;  %v1983_v58 = vsel %vm483_vm2, %v1978_v3, %v1974_v41 }
 0x39e   : > { %v1843_v50 = vmul.f32 %v1840_v30, %v6643_v39  ;;  %v1844_v33 = vmul.f32 %v1838_v20, %v6617_v26  ;;  %1890 = vmatprep.subr.bf16.mxu0 %v1867_v4  ;;  %v1985_v13 = vmul.f32 %v1983_v58, %v6628_v31  ;;  %v1986_v21 = vmul.f32 %v1981_v63, %v6646_v40 }
 0x39f   : > { %1891 = vmatpush1.bf16.msra.mxu0 %v1866_v55 }
 0x3a0   : > { %v1845_v56 = vpack.c.bf16 %v1843_v50, %v1841_v60  ;;  %v2054_v1 = vpop.permute.xlu1 %2053  ;;  %v1980_v35 = vpop.permute.xlu0 %1979  ;;  %v1846_v52 = vpack.c.bf16 %v1844_v33, %v1842_v9  ;;  %v6423_v33 = vld [vmem:[%s8504_s2 + $0xa0] sm:$0xff]  }
 0x3a1   : > { %v1982_v61 = vsel %vm483_vm2, %v1976_v59, %v1980_v35  ;;  %v1984_v0 = vsel %vm483_vm2, %v1980_v35, %v1976_v59  ;;  %v2057_v41 = vsel %vm573_vm3, %v2050_v12, %v2054_v1  ;;  %v2059_v37 = vsel %vm573_vm3, %v2054_v1, %v2050_v12  ;;  %v6422_v59 = vld [vmem:[%s8504_s2 + $0x90] sm:$0xff]  }
 0x3a2   : > { %v1987_v36 = vmul.f32 %v1984_v0, %v6628_v31  ;;  %v1988_v5 = vmul.f32 %v1982_v61, %v6646_v40  ;;  %6059 = vmatmul.mubr.msk.bf16.vlgmr.msra.gmra.mxu0 %vm374_vm4, %v6421_v51  ;;  %1941 = vmatprep.subr.bf16.mxu1 %v1846_v52  ;;  %v2126_v12 = vpack.c.bf16 %v7134_v42, %v7128_v10  ;;  %v6424_v52 = vld [vmem:[%s8504_s2 + $0xa8] sm:$0xff]  }
 0x3a3   : > { %2031 = vmatprep.mubr.bf16.mxu0 %v8510_v8  ;;  %1942 = vmatpush1.bf16.msra.mxu1 %v1845_v56  ;;  %v2061_v30 = vmul.f32 %v2059_v37, %v6631_v32  ;;  %v2062_v60 = vmul.f32 %v2057_v41, %v6652_v46  ;;  %v2125_v56 = vpack.c.bf16 %v7101_v49, %v7097_v22 }
 0x3a4   : > { %v1989_v43 = vpack.c.bf16 %v1987_v36, %v1985_v13  ;;  %v7242_v55 = vpop.permute.xlu1 %2413  ;;  %v2056_v3 = vpop.permute.xlu0 %2055  ;;  %v1990_v23 = vpack.c.bf16 %v1988_v5, %v1986_v21 }
 0x3a5   : > { %v2058_v4 = vsel %vm573_vm3, %v2052_v15, %v2056_v3  ;;  %v2060_v20 = vsel %vm573_vm3, %v2056_v3, %v2052_v15 }
 0x3a6   : > { %v2063_v9 = vmul.f32 %v2060_v20, %v6631_v32  ;;  %v2064_v50 = vmul.f32 %v2058_v4, %v6652_v46  ;;  %2013 = vmatprep.subr.bf16.mxu0 %v1990_v23  ;;  %6061 = vmatmul.mubr.msk.bf16.vlgmr.msra.gmra.mxu1 %vm374_vm4, %v6422_v59  ;;  %v6425_v59 = vld [vmem:[%s8504_s2 + $0xb0] sm:$0xff]  }
 0x3a7   : > { %2014 = vmatpush1.bf16.msra.mxu0 %v1989_v43  ;;  %2107 = vmatprep.mubr.bf16.mxu1 %v8510_v8 }
 0x3a8   : > { %v2065_v15 = vpack.c.bf16 %v2063_v9, %v2061_v30  ;;  %v2190_v51 = vpop.permute.xlu1 %2189  ;;  %v7258_v63 = vpop.permute.xlu0 %2415  ;;  %2149 = vmatprep.subr.bf16.mxu0 %v2126_v12  ;;  %v2066_v58 = vpack.c.bf16 %v2064_v50, %v2062_v60 }
 0x3a9   : > { %v2193_v1 = vsel %vm731_vm5, %v7182_v34, %v2190_v51  ;;  %v2195_v35 = vsel %vm731_vm5, %v2190_v51, %v7182_v34 }
 0x3aa   : > { %6065 = vmatmul.mubr.msk.bf16.vlgmr.msra.gmra.mxu0 %vm374_vm4, %v6423_v33  ;;  %2089 = vmatprep.subr.bf16.mxu1 %v2066_v58  ;;  %v2197_v13 = vmul.f32 %v2193_v1, %v6649_v45  ;;  %v2198_v36 = vmul.f32 %v2195_v35, %v6659_v48 }
 0x3ab   : > { %2090 = vmatpush1.bf16.msra.mxu1 %v2065_v15  ;;  %2150 = vmatpush1.bf16.msra.mxu0 %v2125_v56 }
 0x3ac   : > { %v2266_v61 = vpop.permute.xlu1 %2265  ;;  %v2192_v0 = vpop.permute.xlu0 %2191  ;;  %2167 = vmatprep.mubr.bf16.mxu0 %v8510_v8 }
 0x3ad   : > { %v2194_v21 = vsel %vm731_vm5, %v7186_v24, %v2192_v0  ;;  %v2196_v34 = vsel %vm731_vm5, %v2192_v0, %v7186_v24  ;;  %v2269_v5 = vsel %vm821_vm6, %v7184_v62, %v2266_v61  ;;  %v2271_v43 = vsel %vm821_vm6, %v2266_v61, %v7184_v62 }
 0x3ae   : > { %v2199_v41 = vmul.f32 %v2194_v21, %v6649_v45  ;;  %v2200_v37 = vmul.f32 %v2196_v34, %v6659_v48  ;;  %6069 = vmatmul.mubr.msk.bf16.vlgmr.msra.gmra.mxu1 %vm374_vm4, %v6424_v52  ;;  %v2273_v20 = vmul.f32 %v2269_v5, %v6656_v47  ;;  %v2274_v62 = vmul.f32 %v2271_v43, %v6731_v11  ;;  %v6427_v21 = vld [vmem:[%s8504_s2 + $0xc0] sm:$0xff]  }
 0x3af   : > { %2243 = vmatprep.mubr.bf16.mxu1 %v8510_v8 }
 0x3b0   : > { %v2201_v24 = vpack.c.bf16 %v2199_v41, %v2197_v13  ;;  %v2342_v3 = vpop.permute.xlu1 %2341  ;;  %v2268_v23 = vpop.permute.xlu0 %2267  ;;  %v2202_v4 = vpack.c.bf16 %v2200_v37, %v2198_v36 }
 0x3b1   : > { %v2270_v12 = vsel %vm821_vm6, %v7190_v57, %v2268_v23  ;;  %v2272_v30 = vsel %vm821_vm6, %v2268_v23, %v7190_v57  ;;  %v2345_v60 = vsel %vm911_vm7, %v7188_v54, %v2342_v3  ;;  %v2347_v33 = vsel %vm911_vm7, %v2342_v3, %v7188_v54  ;;  %v6426_v57 = vld [vmem:[%s8504_s2 + $0xb8] sm:$0xff]   ;;  %v6428_v3 = vld [vmem:[%s8504_s2 + $0xc8] sm:$0xff]  }
 0x3b2   : > { %v2275_v9 = vmul.f32 %v2270_v12, %v6656_v47  ;;  %v2276_v50 = vmul.f32 %v2272_v30, %v6731_v11  ;;  %6073 = vmatmul.mubr.msk.bf16.vlgmr.msra.gmra.mxu0 %vm374_vm4, %v6425_v59  ;;  %2225 = vmatprep.subr.bf16.mxu1 %v2202_v4  ;;  %v2349_v1 = vmul.f32 %v2345_v60, %v6722_v2 }
 0x3b3   : > { %2319 = vmatprep.mubr.bf16.mxu0 %v8510_v8  ;;  %2226 = vmatpush1.bf16.msra.mxu1 %v2201_v24  ;;  %v2350_v52 = vmul.f32 %v2347_v33, %v6759_v44 }
 0x3b4   : > { %v2277_v15 = vpack.c.bf16 %v2275_v9, %v2273_v20  ;;  %v2418_v51 = vpop.permute.xlu1 %2417  ;;  %v2344_v58 = vpop.permute.xlu0 %2343  ;;  %v2278_v56 = vpack.c.bf16 %v2276_v50, %v2274_v62 }
 0x3b5   : > { %v2346_v35 = vsel %vm911_vm7, %v7192_v25, %v2344_v58  ;;  %v2348_v54 = vsel %vm911_vm7, %v2344_v58, %v7192_v25  ;;  %v2421_v61 = vsel %vm1001_vm8, %v7242_v55, %v2418_v51  ;;  %v2423_v34 = vsel %vm1001_vm8, %v2418_v51, %v7242_v55 }
 0x3b6   : > { %v2351_v0 = vmul.f32 %v2346_v35, %v6722_v2  ;;  %v2352_v13 = vmul.f32 %v2348_v54, %v6759_v44  ;;  %2301 = vmatprep.subr.bf16.mxu0 %v2278_v56  ;;  %6077 = vmatmul.mubr.msk.bf16.vlgmr.msra.gmra.mxu1 %vm374_vm4, %v6426_v57  ;;  %v2425_v41 = vmul.f32 %v2421_v61, %v6788_v7 }
 0x3b7   : > { %2302 = vmatpush1.bf16.msra.mxu0 %v2277_v15  ;;  %2395 = vmatprep.mubr.bf16.mxu1 %v8510_v8  ;;  %v2426_v55 = vmul.f32 %v2423_v34, %v6784_v6 }
 0x3b8   : > { %v2353_v25 = vpack.c.bf16 %v2351_v0, %v2349_v1  ;;  %v2420_v36 = vpop.permute.xlu0 %2419  ;;  %v2354_v5 = vpack.c.bf16 %v2352_v13, %v2350_v52 }
 0x3b9   : > { %v2422_v37 = vsel %vm1001_vm8, %v7258_v63, %v2420_v36  ;;  %v2424_v59 = vsel %vm1001_vm8, %v2420_v36, %v7258_v63  ;;  %v6429_v63 = vld [vmem:[%s8504_s2 + $0xd0] sm:$0xff]  }
 0x3ba   : > { %v2427_v43 = vmul.f32 %v2422_v37, %v6788_v7  ;;  %v2428_v24 = vmul.f32 %v2424_v59, %v6784_v6  ;;  %6081 = vmatmul.mubr.msk.bf16.vlgmr.msra.gmra.mxu0 %vm374_vm4, %v6427_v21  ;;  %2377 = vmatprep.subr.bf16.mxu1 %v2354_v5 }
 0x3bb   : > { %2378 = vmatpush1.bf16.msra.mxu1 %v2353_v25  ;;  %2471 = vmatprep.mubr.bf16.mxu0 %v8510_v8 }
 0x3bc   : > { %v2429_v23 = vpack.c.bf16 %v2427_v43, %v2425_v41  ;;  %v2430_v4 = vpack.c.bf16 %v2428_v24, %v2426_v55 }
 0x3be   : > { %2453 = vmatprep.subr.bf16.mxu0 %v2430_v4  ;;  %6085 = vmatmul.mubr.msk.bf16.vlgmr.msra.gmra.mxu1 %vm374_vm4, %v6428_v3 }
 0x3bf   : > { %2454 = vmatpush1.bf16.msra.mxu0 %v2429_v23  ;;  %2614 = vmatprep.mubr.bf16.mxu1 %v8510_v8 }
 0x3c2   : > { %6089 = vmatmul.mubr.msk.bf16.vlgmr.msra.gmra.mxu0 %vm374_vm4, %v6429_v63 }
 0x3c3   : > { %2665 = vmatprep.mubr.bf16.mxu0 %v8510_v8 }
 0x462   : > { %v1910_v20 = vpop.f32.mrf.mxu0 }
 0x464   : > { %v1912_v12 = vpop.f32.mrf.mxu0 }
 0x466   : > { %v1914_v30 = vpop.f32.mrf.mxu0  ;;  %v1961_v62 = vpop.f32.mrf.mxu1 }
 0x467   : > { %v1962_v61 = vadd.f32 %v1961_v62, %v1910_v20 }
 0x468   : > { %v1916_v60 = vpop.f32.mrf.mxu0  ;;  %v1963_v9 = vpop.f32.mrf.mxu1 }
 0x469   : > { %v1964_v21 = vadd.f32 %v1963_v9, %v1912_v12 }
 0x46a   : > { %v2033_v50 = vpop.f32.mrf.mxu0  ;;  %v1965_v33 = vpop.f32.mrf.mxu1 }
 0x46b   : > { %v2042_v34 = vadd.f32 %v2033_v50, %v1962_v61  ;;  %v1966_v5 = vadd.f32 %v1965_v33, %v1914_v30  ;;  %v2492_v33 = vpop.permute.xlu1 %2491 }
 0x46c   : > { %v2035_v57 = vpop.f32.mrf.mxu0  ;;  %v1967_v15 = vpop.f32.mrf.mxu1 }
 0x46d   : > { %v2043_v41 = vadd.f32 %v2035_v57, %v1964_v21  ;;  %v1968_v4 = vadd.f32 %v1967_v15, %v1916_v60  ;;  %v282_v15 = vadd.s32 8, %v6589_v16 }
 0x46e   : > { %v2037_v51 = vpop.f32.mrf.mxu0  ;;  %v2109_v58 = vpop.f32.mrf.mxu1 }
 0x46f   : > { %v2118_v37 = vadd.f32 %v2109_v58, %v2042_v34  ;;  %v2044_v43 = vadd.f32 %v2037_v51, %v1966_v5  ;;  %v2497_v5 = vpop.permute.xlu0 %2496  ;;  %vm286_vm10 = vcmp.ge.s32.totalorder %v282_v15, 12  ;;  %v6131_v15 = vld [vmem:[%s8505_s3 + $0x38] sm:$0xff] }
 0x470   : > { %v2039_v56 = vpop.f32.mrf.mxu0  ;;  %v2111_v1 = vpop.f32.mrf.mxu1 }
 0x471   : > { %v2119_v24 = vadd.f32 %v2111_v1, %v2043_v41  ;;  %v2045_v18 = vadd.f32 %v2039_v56, %v1968_v4  ;;  %v6490_v4 = vmov 0.0  }
 0x472   : > { %v2169_v35 = vpop.f32.mrf.mxu0  ;;  %v2113_v54 = vpop.f32.mrf.mxu1 }
 0x473   : > { %v2178_v3 = vadd.f32 %v2169_v35, %v2118_v37  ;;  %v2120_v8 = vadd.f32 %v2113_v54, %v2044_v43 }
 0x474   : > { %v2171_v52 = vpop.f32.mrf.mxu0  ;;  %v2115_v0 = vpop.f32.mrf.mxu1 }
 0x475   : > { %v2179_v19 = vadd.f32 %v2171_v52, %v2119_v24  ;;  %v2121_v57 = vadd.f32 %v2115_v0, %v2045_v18  ;;  %v2513_v0 = vpop.permute.xlu1 %2512 }
 0x476   : > { %v2173_v13 = vpop.f32.mrf.mxu0  ;;  %v2245_v25 = vpop.f32.mrf.mxu1 }
 0x477   : > { %v2254_v20 = vadd.f32 %v2245_v25, %v2178_v3  ;;  %v2180_v9 = vadd.f32 %v2173_v13, %v2120_v8 }
 0x478   : > { %v2175_v36 = vpop.f32.mrf.mxu0  ;;  %v2247_v59 = vpop.f32.mrf.mxu1 }
 0x479   : > { %v2255_v50 = vadd.f32 %v2247_v59, %v2179_v19  ;;  %v2181_v34 = vadd.f32 %v2175_v36, %v2121_v57 }
 0x47a   : > { %v2321_v55 = vpop.f32.mrf.mxu0  ;;  %v2249_v23 = vpop.f32.mrf.mxu1 }
 0x47b   : > { %v2330_v61 = vadd.f32 %v2321_v55, %v2254_v20  ;;  %v2256_v21 = vadd.f32 %v2249_v23, %v2180_v9 }
 0x47c   : > { %v2323_v63 = vpop.f32.mrf.mxu0  ;;  %v2251_v62 = vpop.f32.mrf.mxu1 }
 0x47d   : > { %v2331_v51 = vadd.f32 %v2323_v63, %v2255_v50  ;;  %v2257_v8 = vadd.f32 %v2251_v62, %v2181_v34  ;;  %v7360_v63 = vsel %vm286_vm10, 1.0, %v6490_v4  ;;  %v2518_v62 = vpop.permute.xlu0 %2517 }
 0x47e   : > { %v2325_v12 = vpop.f32.mrf.mxu0  ;;  %v2397_v30 = vpop.f32.mrf.mxu1 }
 0x47f   : > { %v2406_v1 = vadd.f32 %v2397_v30, %v2330_v61  ;;  %v2332_v54 = vadd.f32 %v2325_v12, %v2256_v21  ;;  %v1824_v30 = vmul.f32 %v7360_v63, %v7101_v49 }
 0x480   : > { %v2327_v58 = vpop.f32.mrf.mxu0  ;;  %v2399_v35 = vpop.f32.mrf.mxu1 }
 0x481   : > { %v2407_v52 = vadd.f32 %v2399_v35, %v2331_v51  ;;  %v2333_v59 = vadd.f32 %v2327_v58, %v2257_v8 }
 0x482   : > { %v2473_v60 = vpop.f32.mrf.mxu0  ;;  %v2401_v25 = vpop.f32.mrf.mxu1 }
 0x483   : > { %v2482_v56 = vadd.f32 %v2473_v60, %v2406_v1  ;;  %v2408_v13 = vadd.f32 %v2401_v25, %v2332_v54  ;;  %v6133_v54 = vld [vmem:[%s8506_s4 + $0x38] sm:$0xff] }
 0x484   : > { %v2475_v19 = vpop.f32.mrf.mxu0  ;;  %v2403_v37 = vpop.f32.mrf.mxu1 }
 0x485   : > { %v2499_v41 = vadd.f32 %v2492_v33, %v2482_v56  ;;  %v2483_v18 = vadd.f32 %v2475_v19, %v2407_v52  ;;  %v2409_v16 = vadd.f32 %v2403_v37, %v2333_v59 }
 0x486   : > { %v2477_v55 = vpop.f32.mrf.mxu0 }
 0x487   : > { %vm2503_vm11 = vcmp.ge.f32.partialorder %v2499_v41, 0.0  ;;  %v2520_v36 = vmul.f32 %v2513_v0, %v2499_v41  ;;  %v2500_v43 = vadd.f32 %v2492_v33, %v2483_v18  ;;  %v2484_v24 = vadd.f32 %v2477_v55, %v2408_v13 }
 0x488   : > { %v2479_v3 = vpop.f32.mrf.mxu0 }
 0x489   : > { %v2524_v23 = vsel %vm2503_vm11, %v2499_v41, %v2520_v36  ;;  %v2501_v20 = vadd.f32 %v2497_v5, %v2484_v24  ;;  %v2521_v9 = vmul.f32 %v2513_v0, %v2500_v43  ;;  %v2485_v50 = vadd.f32 %v2479_v3, %v2409_v16 }
 0x48a   : > { %v7363_v12 = vadd.f32 %v2524_v23, %v7097_v22  ;;  %vm2504_vm12 = vcmp.ge.f32.partialorder %v2500_v43, 0.0  ;;  %v1825_v22 = vmul.f32 %v7360_v63, %v7134_v42  ;;  %v6132_v42 = vld [vmem:[%s8506_s4 + $0x30] sm:$0xff] }
 0x48b   : > { %vm2505_vm13 = vcmp.ge.f32.partialorder %v2501_v20, 0.0  ;;  %v2522_v61 = vmul.f32 %v2518_v62, %v2501_v20  ;;  %v2502_v33 = vadd.f32 %v2497_v5, %v2485_v50  ;;  %v2525_v58 = vsel %vm2504_vm12, %v2500_v43, %v2521_v9 }
 0x48c   : > { %2556 = vrot.lane.b32.xlu1 %v7363_v12, %s6482_s8  ;;  %v7380_v35 = vadd.f32 %v2525_v58, %v7128_v10  ;;  %v6130_v10 = vld [vmem:[%s8505_s3 + $0x30] sm:$0xff] }
 0x48d   : > { %v2526_v57 = vsel %vm2505_vm13, %v2501_v20, %v2522_v61  ;;  %vm2506_vm14 = vcmp.ge.f32.partialorder %v2502_v33, 0.0  ;;  %v2523_v51 = vmul.f32 %v2518_v62, %v2502_v33 }
 0x48e   : > { %v7369_v21 = vadd.f32 %v2526_v57, %v1824_v30 }
 0x48f   : > { %v2527_v1 = vsel %vm2506_vm14, %v2502_v33, %v2523_v51 }
 0x490   : > { %2535 = vrot.lane.b32.xlu1 %v7363_v12, %s6481_s30  ;;  %2558 = vrot.lane.b32.xlu0 %v7369_v21, %s6482_s8  ;;  %v2831_v49 = vpack.c.bf16 %v7369_v21, %v7363_v12  ;;  %v7382_v34 = vadd.f32 %v2527_v1, %v1825_v22 }
 0x492   : > { %v2832_v60 = vpack.c.bf16 %v7382_v34, %v7380_v35 }
 0x494   : > { %2679 = vrot.lane.b32.xlu1 %v7363_v12, %s6484_s9  ;;  %2537 = vrot.lane.b32.xlu0 %v7369_v21, %s6481_s30 }
 0x498   : > { %2755 = vrot.lane.b32.xlu1 %v7363_v12, %s6485_s10  ;;  %2681 = vrot.lane.b32.xlu0 %v7369_v21, %s6484_s9 }
 0x49c   : > { %2891 = vrot.lane.b32.xlu1 %v7363_v12, %s6486_s11  ;;  %2757 = vrot.lane.b32.xlu0 %v7369_v21, %s6485_s10 }
 0x4a0   : > { %2967 = vrot.lane.b32.xlu1 %v7363_v12, %s6487_s12  ;;  %2893 = vrot.lane.b32.xlu0 %v7369_v21, %s6486_s11 }
 0x4a4   : > { %3043 = vrot.lane.b32.xlu1 %v7363_v12, %s6488_s13  ;;  %2969 = vrot.lane.b32.xlu0 %v7369_v21, %s6487_s12 }
 0x4a8   : > { %2560 = vrot.lane.b32.xlu1 %v7380_v35, %s6482_s8  ;;  %3045 = vrot.lane.b32.xlu0 %v7369_v21, %s6488_s13 }
 0x4ac   : > { %2539 = vrot.lane.b32.xlu1 %v7380_v35, %s6481_s30  ;;  %2562 = vrot.lane.b32.xlu0 %v7382_v34, %s6482_s8 }
 0x4b0   : > { %2683 = vrot.lane.b32.xlu1 %v7380_v35, %s6484_s9  ;;  %2541 = vrot.lane.b32.xlu0 %v7382_v34, %s6481_s30 }
 0x4b4   : > { %2759 = vrot.lane.b32.xlu1 %v7380_v35, %s6485_s10  ;;  %2685 = vrot.lane.b32.xlu0 %v7382_v34, %s6484_s9 }
 0x4b8   : > { %3119 = vrot.lane.b32.xlu1 %v7363_v12, %s6489_s14  ;;  %2761 = vrot.lane.b32.xlu0 %v7382_v34, %s6485_s10 }
 0x4bc   : > { %2895 = vrot.lane.b32.xlu1 %v7380_v35, %s6486_s11  ;;  %3121 = vrot.lane.b32.xlu0 %v7369_v21, %s6489_s14 }
 0x4c0   : > { %2971 = vrot.lane.b32.xlu1 %v7380_v35, %s6487_s12  ;;  %2897 = vrot.lane.b32.xlu0 %v7382_v34, %s6486_s11 }
 0x4c4   : > { %3047 = vrot.lane.b32.xlu1 %v7380_v35, %s6488_s13  ;;  %2973 = vrot.lane.b32.xlu0 %v7382_v34, %s6487_s12 }
 0x4c8   : > { %3123 = vrot.lane.b32.xlu1 %v7380_v35, %s6489_s14  ;;  %3049 = vrot.lane.b32.xlu0 %v7382_v34, %s6488_s13  ;;  %v6433_v35 = vld [vmem:[%s8504_s2 + $0xf0] sm:$0xff]  }
 0x4cc   : > { %3197 = vperm.xlu1 %6400, %v6130_v10   ;;  %3125 = vrot.lane.b32.xlu0 %v7382_v34, %s6489_s14 }
 0x4d0   : > { %3218 = vperm.xlu1 %6400, %v6132_v42   ;;  %3202 = vperm.xlu0 %6399, %v6131_v15  }
 0x4d4   : > { %3223 = vperm.xlu0 %6399, %v6133_v54  }
 0x4fe   : > { %v2557_v52 = vpop.permute.xlu1 %2556 }
 0x502   : > { %v2536_v25 = vpop.permute.xlu1 %2535  ;;  %v2559_v56 = vpop.permute.xlu0 %2558 }
 0x506   : > { %v2680_v5 = vpop.permute.xlu1 %2679  ;;  %v2538_v8 = vpop.permute.xlu0 %2537 }
 0x50a   : > { %v2756_v19 = vpop.permute.xlu1 %2755  ;;  %v2682_v13 = vpop.permute.xlu0 %2681 }
 0x50e   : > { %v7456_v41 = vpop.permute.xlu1 %2891  ;;  %v2758_v37 = vpop.permute.xlu0 %2757 }
 0x512   : > { %v7458_v18 = vpop.permute.xlu1 %2967  ;;  %v7460_v0 = vpop.permute.xlu0 %2893 }
 0x516   : > { %v7462_v59 = vpop.permute.xlu1 %3043  ;;  %v7464_v55 = vpop.permute.xlu0 %2969 }
 0x51a   : > { %v2561_v36 = vpop.permute.xlu1 %2560  ;;  %v7466_v43 = vpop.permute.xlu0 %3045 }
 0x51b   : > { %v2564_v24 = vsel %vm345_vm1, %v2557_v52, %v2561_v36  ;;  %v2566_v16 = vsel %vm345_vm1, %v2561_v36, %v2557_v52 }
 0x51c   : > { %v2568_v62 = vmul.f32 %v2566_v16, %v6623_v28  ;;  %v2569_v9 = vmul.f32 %v2564_v24, %v6620_v27 }
 0x51e   : > { %v2540_v3 = vpop.permute.xlu1 %2539  ;;  %v2563_v23 = vpop.permute.xlu0 %2562 }
 0x51f   : > { %v2565_v4 = vsel %vm345_vm1, %v2559_v56, %v2563_v23  ;;  %v2567_v20 = vsel %vm345_vm1, %v2563_v23, %v2559_v56  ;;  %v2543_v30 = vsel %vm311_vm0, %v2536_v25, %v2540_v3  ;;  %v2545_v33 = vsel %vm311_vm0, %v2540_v3, %v2536_v25  ;;  %v6430_v25 = vld [vmem:[%s8504_s2 + $0xe0] sm:$0xff]  }
 0x520   : > { %v2570_v50 = vmul.f32 %v2567_v20, %v6623_v28  ;;  %v2571_v61 = vmul.f32 %v2565_v4, %v6620_v27  ;;  %v2547_v42 = vmul.f32 %v2545_v33, %v6643_v39  ;;  %v2548_v15 = vmul.f32 %v2543_v30, %v6617_v26 }
 0x521   : > { %v8520_v30 = vmov 0  }
 0x522   : > { %v2572_v57 = vpack.c.bf16 %v2570_v50, %v2568_v62  ;;  %v2684_v58 = vpop.permute.xlu1 %2683  ;;  %v2542_v51 = vpop.permute.xlu0 %2541  ;;  %v2573_v22 = vpack.c.bf16 %v2571_v61, %v2569_v9 }
 0x523   : > { %v2544_v1 = vsel %vm311_vm0, %v2538_v8, %v2542_v51  ;;  %v2546_v10 = vsel %vm311_vm0, %v2542_v51, %v2538_v8  ;;  %v2687_v56 = vsel %vm483_vm2, %v2680_v5, %v2684_v58  ;;  %v2689_v36 = vsel %vm483_vm2, %v2684_v58, %v2680_v5 }
 0x524   : > { %v2549_v54 = vmul.f32 %v2546_v10, %v6643_v39  ;;  %v2550_v52 = vmul.f32 %v2544_v1, %v6617_v26  ;;  %2596 = vmatprep.subr.bf16.mxu1 %v2573_v22  ;;  %v2691_v20 = vmul.f32 %v2689_v36, %v6628_v31  ;;  %v2692_v62 = vmul.f32 %v2687_v56, %v6646_v40 }
 0x525   : > { %2597 = vmatpush1.bf16.msra.mxu1 %v2572_v57 }
 0x526   : > { %v2551_v8 = vpack.c.bf16 %v2549_v54, %v2547_v42  ;;  %v2760_v24 = vpop.permute.xlu1 %2759  ;;  %v2686_v16 = vpop.permute.xlu0 %2685  ;;  %v2552_v3 = vpack.c.bf16 %v2550_v52, %v2548_v15  ;;  %v6432_v54 = vld [vmem:[%s8504_s2 + $0xe8] sm:$0xff]  }
 0x527   : > { %v2688_v23 = vsel %vm483_vm2, %v2682_v13, %v2686_v16  ;;  %v2690_v4 = vsel %vm483_vm2, %v2686_v16, %v2682_v13  ;;  %v2763_v5 = vsel %vm573_vm3, %v2756_v19, %v2760_v24  ;;  %v2765_v61 = vsel %vm573_vm3, %v2760_v24, %v2756_v19  ;;  %v6431_v13 = vld [vmem:[%s8504_s2 + $0xd8] sm:$0xff]  }
 0x528   : > { %v2693_v9 = vmul.f32 %v2690_v4, %v6628_v31  ;;  %v2694_v50 = vmul.f32 %v2688_v23, %v6646_v40  ;;  %6099 = vmatmul.mubr.msk.bf16.vlgmr.msra.gmra.mxu1 %vm374_vm4, %v6430_v25  ;;  %2647 = vmatprep.subr.bf16.mxu0 %v2552_v3  ;;  %v2767_v19 = vmul.f32 %v2765_v61, %v6631_v32  ;;  %v6434_v23 = vld [vmem:[%s8504_s2 + $0xf8] sm:$0xff]  }
 0x529   : > { %2737 = vmatprep.mubr.bf16.mxu1 %v8520_v30  ;;  %2648 = vmatpush1.bf16.msra.mxu0 %v2551_v8  ;;  %v2768_v10 = vmul.f32 %v2763_v5, %v6652_v46 }
 0x52a   : > { %v2695_v33 = vpack.c.bf16 %v2693_v9, %v2691_v20  ;;  %v7516_v57 = vpop.permute.xlu1 %3119  ;;  %v2762_v58 = vpop.permute.xlu0 %2761  ;;  %v2696_v51 = vpack.c.bf16 %v2694_v50, %v2692_v62 }
 0x52b   : > { %v2764_v22 = vsel %vm573_vm3, %v2758_v37, %v2762_v58  ;;  %v2766_v1 = vsel %vm573_vm3, %v2762_v58, %v2758_v37 }
 0x52c   : > { %v2769_v42 = vmul.f32 %v2766_v1, %v6631_v32  ;;  %v2770_v15 = vmul.f32 %v2764_v22, %v6652_v46  ;;  %2719 = vmatprep.subr.bf16.mxu1 %v2696_v51  ;;  %6101 = vmatmul.mubr.msk.bf16.vlgmr.msra.gmra.mxu0 %vm374_vm4, %v6431_v13 }
 0x52d   : > { %2720 = vmatpush1.bf16.msra.mxu1 %v2695_v33  ;;  %2813 = vmatprep.mubr.bf16.mxu0 %v8520_v30 }
 0x52e   : > { %v2771_v52 = vpack.c.bf16 %v2769_v42, %v2767_v19  ;;  %v2896_v25 = vpop.permute.xlu1 %2895  ;;  %v7530_v56 = vpop.permute.xlu0 %3121  ;;  %2855 = vmatprep.subr.bf16.mxu1 %v2832_v60  ;;  %v2772_v37 = vpack.c.bf16 %v2770_v15, %v2768_v10 }
 0x52f   : > { %v2899_v36 = vsel %vm731_vm5, %v7456_v41, %v2896_v25  ;;  %v2901_v8 = vsel %vm731_vm5, %v2896_v25, %v7456_v41 }
 0x530   : > { %6105 = vmatmul.mubr.msk.bf16.vlgmr.msra.gmra.mxu1 %vm374_vm4, %v6432_v54  ;;  %2795 = vmatprep.subr.bf16.mxu0 %v2772_v37  ;;  %v2903_v24 = vmul.f32 %v2899_v36, %v6649_v45  ;;  %v2904_v12 = vmul.f32 %v2901_v8, %v6659_v48  ;;  %v6436_v36 = vld [vmem:[%s8504_s2 + $0x108] sm:$0xff]  }
 0x531   : > { %2796 = vmatpush1.bf16.msra.mxu0 %v2771_v52  ;;  %2856 = vmatpush1.bf16.msra.mxu1 %v2831_v49 }
 0x532   : > { %v2972_v34 = vpop.permute.xlu1 %2971  ;;  %v2898_v60 = vpop.permute.xlu0 %2897  ;;  %2873 = vmatprep.mubr.bf16.mxu1 %v8520_v30 }
 0x533   : > { %v2900_v16 = vsel %vm731_vm5, %v7460_v0, %v2898_v60  ;;  %v2902_v41 = vsel %vm731_vm5, %v2898_v60, %v7460_v0  ;;  %v2975_v21 = vsel %vm821_vm6, %v7458_v18, %v2972_v34  ;;  %v2977_v4 = vsel %vm821_vm6, %v2972_v34, %v7458_v18 }
 0x534   : > { %v2905_v49 = vmul.f32 %v2900_v16, %v6649_v45  ;;  %v2906_v3 = vmul.f32 %v2902_v41, %v6659_v48  ;;  %6109 = vmatmul.mubr.msk.bf16.vlgmr.msra.gmra.mxu0 %vm374_vm4, %v6433_v35  ;;  %v2979_v50 = vmul.f32 %v2975_v21, %v6656_v47  ;;  %v2980_v18 = vmul.f32 %v2977_v4, %v6731_v11  ;;  %v6437_v21 = vld [vmem:[%s8504_s2 + $0x110] sm:$0xff]  }
 0x535   : > { %2949 = vmatprep.mubr.bf16.mxu0 %v8520_v30 }
 0x536   : > { %v2907_v0 = vpack.c.bf16 %v2905_v49, %v2903_v24  ;;  %v3048_v20 = vpop.permute.xlu1 %3047  ;;  %v2974_v62 = vpop.permute.xlu0 %2973  ;;  %v2908_v9 = vpack.c.bf16 %v2906_v3, %v2904_v12 }
 0x537   : > { %v2976_v5 = vsel %vm821_vm6, %v7464_v55, %v2974_v62  ;;  %v2978_v61 = vsel %vm821_vm6, %v2974_v62, %v7464_v55  ;;  %v3051_v13 = vsel %vm911_vm7, %v7462_v59, %v3048_v20  ;;  %v3053_v51 = vsel %vm911_vm7, %v3048_v20, %v7462_v59  ;;  %v6435_v55 = vld [vmem:[%s8504_s2 + $0x100] sm:$0xff]  }
 0x538   : > { %v2981_v33 = vmul.f32 %v2976_v5, %v6656_v47  ;;  %v2982_v58 = vmul.f32 %v2978_v61, %v6731_v11  ;;  %6113 = vmatmul.mubr.msk.bf16.vlgmr.msra.gmra.mxu1 %vm374_vm4, %v6434_v23  ;;  %2931 = vmatprep.subr.bf16.mxu0 %v2908_v9  ;;  %v3055_v42 = vmul.f32 %v3051_v13, %v6722_v2 }
 0x539   : > { %3025 = vmatprep.mubr.bf16.mxu1 %v8520_v30  ;;  %2932 = vmatpush1.bf16.msra.mxu0 %v2907_v0  ;;  %v3056_v54 = vmul.f32 %v3053_v51, %v6759_v44 }
 0x53a   : > { %v2983_v22 = vpack.c.bf16 %v2981_v33, %v2979_v50  ;;  %v3124_v1 = vpop.permute.xlu1 %3123  ;;  %v3050_v19 = vpop.permute.xlu0 %3049  ;;  %v2984_v10 = vpack.c.bf16 %v2982_v58, %v2980_v18 }
 0x53b   : > { %v3052_v15 = vsel %vm911_vm7, %v7466_v43, %v3050_v19  ;;  %v3054_v59 = vsel %vm911_vm7, %v3050_v19, %v7466_v43  ;;  %v3127_v52 = vsel %vm1001_vm8, %v7516_v57, %v3124_v1  ;;  %v3129_v8 = vsel %vm1001_vm8, %v3124_v1, %v7516_v57 }
 0x53c   : > { %v3057_v25 = vmul.f32 %v3052_v15, %v6722_v2  ;;  %v3058_v37 = vmul.f32 %v3054_v59, %v6759_v44  ;;  %3007 = vmatprep.subr.bf16.mxu1 %v2984_v10  ;;  %6117 = vmatmul.mubr.msk.bf16.vlgmr.msra.gmra.mxu0 %vm374_vm4, %v6435_v55  ;;  %v3131_v60 = vmul.f32 %v3127_v52, %v6788_v7 }
 0x53d   : > { %3008 = vmatpush1.bf16.msra.mxu1 %v2983_v22  ;;  %3101 = vmatprep.mubr.bf16.mxu0 %v8520_v30  ;;  %v3132_v57 = vmul.f32 %v3129_v8, %v6784_v6 }
 0x53e   : > { %v3059_v43 = vpack.c.bf16 %v3057_v25, %v3055_v42  ;;  %v3126_v35 = vpop.permute.xlu0 %3125  ;;  %v3060_v34 = vpack.c.bf16 %v3058_v37, %v3056_v54 }
 0x53f   : > { %v3128_v24 = vsel %vm1001_vm8, %v7530_v56, %v3126_v35  ;;  %v3130_v16 = vsel %vm1001_vm8, %v3126_v35, %v7530_v56  ;;  %v6438_v56 = vld [vmem:[%s8504_s2 + $0x118] sm:$0xff]  }
 0x540   : > { %v3133_v41 = vmul.f32 %v3128_v24, %v6788_v7  ;;  %v3134_v12 = vmul.f32 %v3130_v16, %v6784_v6  ;;  %6121 = vmatmul.mubr.msk.bf16.vlgmr.msra.gmra.mxu1 %vm374_vm4, %v6436_v36  ;;  %3083 = vmatprep.subr.bf16.mxu0 %v3060_v34 }
 0x541   : > { %3084 = vmatpush1.bf16.msra.mxu0 %v3059_v43  ;;  %3177 = vmatprep.mubr.bf16.mxu1 %v8520_v30 }
 0x542   : > { %v3135_v49 = vpack.c.bf16 %v3133_v41, %v3131_v60  ;;  %v3136_v3 = vpack.c.bf16 %v3134_v12, %v3132_v57 }
 0x544   : > { %3159 = vmatprep.subr.bf16.mxu1 %v3136_v3  ;;  %6125 = vmatmul.mubr.msk.bf16.vlgmr.msra.gmra.mxu0 %vm374_vm4, %v6437_v21 }
 0x545   : > { %3160 = vmatpush1.bf16.msra.mxu1 %v3135_v49  ;;  %3320 = vmatprep.mubr.bf16.mxu0 %v8520_v30 }
 0x547   : > { %v3198_v49 = vpop.permute.xlu1 %3197 }
 0x548   : > { %6129 = vmatmul.mubr.msk.bf16.vlgmr.msra.gmra.mxu1 %vm374_vm4, %v6438_v56 }
 0x549   : > { %3371 = vmatprep.mubr.bf16.mxu1 %v8520_v30 }
 0x5e8   : > { %v2616_v23 = vpop.f32.mrf.mxu1 }
 0x5ea   : > { %v2618_v4 = vpop.f32.mrf.mxu1 }
 0x5ec   : > { %v2620_v0 = vpop.f32.mrf.mxu1  ;;  %v2667_v20 = vpop.f32.mrf.mxu0 }
 0x5ed   : > { %v2668_v19 = vadd.f32 %v2667_v20, %v2616_v23 }
 0x5ee   : > { %v7635_v62 = vpop.f32.mrf.mxu1  ;;  %v2669_v9 = vpop.f32.mrf.mxu0 }
 0x5f0   : > { %v2739_v50 = vpop.f32.mrf.mxu1  ;;  %v2671_v5 = vpop.f32.mrf.mxu0 }
 0x5f1   : > { %v2748_v15 = vadd.f32 %v2739_v50, %v2668_v19  ;;  %v2672_v52 = vadd.f32 %v2671_v5, %v2620_v0 }
 0x5f2   : > { %v2741_v61 = vpop.f32.mrf.mxu1  ;;  %v2673_v18 = vpop.f32.mrf.mxu0 }
 0x5f4   : > { %v2743_v13 = vpop.f32.mrf.mxu1  ;;  %v2815_v33 = vpop.f32.mrf.mxu0 }
 0x5f5   : > { %v2824_v25 = vadd.f32 %v2815_v33, %v2748_v15  ;;  %v2750_v8 = vadd.f32 %v2743_v13, %v2672_v52  ;;  %v3203_v13 = vpop.permute.xlu0 %3202 }
 0x5f6   : > { %v2745_v58 = vpop.f32.mrf.mxu1  ;;  %v2817_v51 = vpop.f32.mrf.mxu0 }
 0x5f8   : > { %v2875_v55 = vpop.f32.mrf.mxu1  ;;  %v2819_v22 = vpop.f32.mrf.mxu0 }
 0x5f9   : > { %v2884_v43 = vadd.f32 %v2875_v55, %v2824_v25  ;;  %v2826_v60 = vadd.f32 %v2819_v22, %v2750_v8  ;;  %v3219_v22 = vpop.permute.xlu1 %3218  ;;  %v3224_v8 = vpop.permute.xlu0 %3223 }
 0x5fa   : > { %v2877_v1 = vpop.f32.mrf.mxu1  ;;  %v2821_v10 = vpop.f32.mrf.mxu0 }
 0x5fc   : > { %v2879_v42 = vpop.f32.mrf.mxu1  ;;  %v2951_v59 = vpop.f32.mrf.mxu0 }
 0x5fd   : > { %v2960_v24 = vadd.f32 %v2951_v59, %v2884_v43  ;;  %v2886_v41 = vadd.f32 %v2879_v42, %v2826_v60  ;;  %v2670_v43 = vadd.f32 %v2669_v9, %v2618_v4 }
 0x5fe   : > { %v2881_v54 = vpop.f32.mrf.mxu1  ;;  %v2953_v37 = vpop.f32.mrf.mxu0 }
 0x5ff   : > { %v2749_v60 = vadd.f32 %v2741_v61, %v2670_v43 }
 0x600   : > { %v3027_v36 = vpop.f32.mrf.mxu1  ;;  %v2955_v35 = vpop.f32.mrf.mxu0 }
 0x601   : > { %v3036_v12 = vadd.f32 %v3027_v36, %v2960_v24  ;;  %v2962_v56 = vadd.f32 %v2955_v35, %v2886_v41  ;;  %v2825_v41 = vadd.f32 %v2817_v51, %v2749_v60 }
 0x602   : > { %v3029_v34 = vpop.f32.mrf.mxu1  ;;  %v2957_v16 = vpop.f32.mrf.mxu0 }
 0x604   : > { %v3031_v57 = vpop.f32.mrf.mxu1  ;;  %v3103_v21 = vpop.f32.mrf.mxu0 }
 0x605   : > { %v3112_v23 = vadd.f32 %v3103_v21, %v3036_v12  ;;  %v3038_v50 = vadd.f32 %v3031_v57, %v2962_v56  ;;  %v2674_v57 = vadd.f32 %v2673_v18, %v7635_v62  ;;  %v2885_v21 = vadd.f32 %v2877_v1, %v2825_v41 }
 0x606   : > { %v3033_v3 = vpop.f32.mrf.mxu1  ;;  %v3105_v20 = vpop.f32.mrf.mxu0 }
 0x607   : > { %v2751_v12 = vadd.f32 %v2745_v58, %v2674_v57  ;;  %v2961_v9 = vadd.f32 %v2953_v37, %v2885_v21 }
 0x608   : > { %v3179_v0 = vpop.f32.mrf.mxu1  ;;  %v3107_v5 = vpop.f32.mrf.mxu0 }
 0x609   : > { %v3188_v33 = vadd.f32 %v3179_v0, %v3112_v23  ;;  %v3114_v19 = vadd.f32 %v3107_v5, %v3038_v50  ;;  %v2827_v4 = vadd.f32 %v2821_v10, %v2751_v12  ;;  %v3037_v56 = vadd.f32 %v3029_v34, %v2961_v9  ;;  %v6170_v0 = vld [vmem:[%s8505_s3 + $0x40] sm:$0xff]  ;;  %v6171_v5 = vld [vmem:[%s8505_s3 + $0x48] sm:$0xff] }
 0x60a   : > { %v3181_v55 = vpop.f32.mrf.mxu1  ;;  %v3109_v58 = vpop.f32.mrf.mxu0  ;;  %v6172_v50 = vld [vmem:[%s8506_s4 + $0x40] sm:$0xff] }
 0x60b   : > { %v3205_v15 = vadd.f32 %v3198_v49, %v3188_v33  ;;  %v2887_v61 = vadd.f32 %v2881_v54, %v2827_v4  ;;  %v3113_v18 = vadd.f32 %v3105_v20, %v3037_v56  ;;  %v6173_v33 = vld [vmem:[%s8506_s4 + $0x48] sm:$0xff] }
 0x60c   : > { %v3183_v59 = vpop.f32.mrf.mxu1 }
 0x60d   : > { %vm3209_vm15 = vcmp.ge.f32.partialorder %v3205_v15, 0.0  ;;  %v3226_v52 = vmul.f32 %v3219_v22, %v3205_v15  ;;  %v3190_v42 = vadd.f32 %v3183_v59, %v3114_v19  ;;  %v2963_v62 = vadd.f32 %v2957_v16, %v2887_v61 }
 0x60e   : > { %v3189_v1 = vadd.f32 %v3181_v55, %v3113_v18  ;;  %v3185_v23 = vpop.f32.mrf.mxu1 }
 0x60f   : > { %v7637_v25 = vsel %vm3209_vm15, %v3205_v15, %v3226_v52  ;;  %v3207_v36 = vadd.f32 %v3203_v13, %v3190_v42  ;;  %v3039_v51 = vadd.f32 %v3033_v3, %v2963_v62 }
 0x610   : > { %3262 = vrot.lane.b32.xlu1 %v7637_v25, %s6482_s8  ;;  %v3206_v54 = vadd.f32 %v3198_v49, %v3189_v1 }
 0x611   : > { %vm3211_vm9 = vcmp.ge.f32.partialorder %v3207_v36, 0.0  ;;  %v3228_v35 = vmul.f32 %v3224_v8, %v3207_v36  ;;  %v3115_v10 = vadd.f32 %v3109_v58, %v3039_v51 }
 0x612   : > { %v3227_v34 = vmul.f32 %v3219_v22, %v3206_v54  ;;  %vm3210_vm10 = vcmp.ge.f32.partialorder %v3206_v54, 0.0 }
 0x613   : > { %v7641_v24 = vsel %vm3211_vm9, %v3207_v36, %v3228_v35  ;;  %v3191_v37 = vadd.f32 %v3185_v23, %v3115_v10 }
 0x614   : > { %3241 = vrot.lane.b32.xlu1 %v7637_v25, %s6481_s30  ;;  %3264 = vrot.lane.b32.xlu0 %v7641_v24, %s6482_s8  ;;  %v7668_v3 = vsel %vm3210_vm10, %v3206_v54, %v3227_v34 }
 0x615   : > { %v3208_v16 = vadd.f32 %v3203_v13, %v3191_v37 }
 0x617   : > { %v3229_v20 = vmul.f32 %v3224_v8, %v3208_v16  ;;  %vm3212_vm11 = vcmp.ge.f32.partialorder %v3208_v16, 0.0 }
 0x618   : > { %3385 = vrot.lane.b32.xlu1 %v7637_v25, %s6484_s9  ;;  %3243 = vrot.lane.b32.xlu0 %v7641_v24, %s6481_s30 }
 0x619   : > { %v7674_v49 = vsel %vm3212_vm11, %v3208_v16, %v3229_v20 }
 0x61c   : > { %3461 = vrot.lane.b32.xlu1 %v7637_v25, %s6485_s10  ;;  %3387 = vrot.lane.b32.xlu0 %v7641_v24, %s6484_s9 }
 0x620   : > { %3597 = vrot.lane.b32.xlu1 %v7637_v25, %s6486_s11  ;;  %3463 = vrot.lane.b32.xlu0 %v7641_v24, %s6485_s10 }
 0x624   : > { %3673 = vrot.lane.b32.xlu1 %v7637_v25, %s6487_s12  ;;  %3599 = vrot.lane.b32.xlu0 %v7641_v24, %s6486_s11 }
 0x628   : > { %3749 = vrot.lane.b32.xlu1 %v7637_v25, %s6488_s13  ;;  %3675 = vrot.lane.b32.xlu0 %v7641_v24, %s6487_s12 }
 0x62c   : > { %3266 = vrot.lane.b32.xlu1 %v7668_v3, %s6482_s8  ;;  %3751 = vrot.lane.b32.xlu0 %v7641_v24, %s6488_s13 }
 0x630   : > { %3245 = vrot.lane.b32.xlu1 %v7668_v3, %s6481_s30  ;;  %3268 = vrot.lane.b32.xlu0 %v7674_v49, %s6482_s8 }
 0x634   : > { %3389 = vrot.lane.b32.xlu1 %v7668_v3, %s6484_s9  ;;  %3247 = vrot.lane.b32.xlu0 %v7674_v49, %s6481_s30 }
 0x638   : > { %3465 = vrot.lane.b32.xlu1 %v7668_v3, %s6485_s10  ;;  %3391 = vrot.lane.b32.xlu0 %v7674_v49, %s6484_s9 }
 0x63c   : > { %3825 = vrot.lane.b32.xlu1 %v7637_v25, %s6489_s14  ;;  %3467 = vrot.lane.b32.xlu0 %v7674_v49, %s6485_s10 }
 0x640   : > { %3601 = vrot.lane.b32.xlu1 %v7668_v3, %s6486_s11  ;;  %3827 = vrot.lane.b32.xlu0 %v7641_v24, %s6489_s14 }
 0x644   : > { %3677 = vrot.lane.b32.xlu1 %v7668_v3, %s6487_s12  ;;  %3603 = vrot.lane.b32.xlu0 %v7674_v49, %s6486_s11 }
 0x648   : > { %3753 = vrot.lane.b32.xlu1 %v7668_v3, %s6488_s13  ;;  %3679 = vrot.lane.b32.xlu0 %v7674_v49, %s6487_s12 }
 0x64c   : > { %3829 = vrot.lane.b32.xlu1 %v7668_v3, %s6489_s14  ;;  %3755 = vrot.lane.b32.xlu0 %v7674_v49, %s6488_s13 }
 0x650   : > { %3903 = vperm.xlu1 %6400, %v6170_v0   ;;  %3831 = vrot.lane.b32.xlu0 %v7674_v49, %s6489_s14 }
 0x654   : > { %3924 = vperm.xlu1 %6400, %v6172_v50   ;;  %3908 = vperm.xlu0 %6399, %v6171_v5  }
 0x658   : > { %3929 = vperm.xlu0 %6399, %v6173_v33  }
 0x682   : > { %v3263_v13 = vpop.permute.xlu1 %3262 }
 0x686   : > { %v3242_v55 = vpop.permute.xlu1 %3241  ;;  %v3265_v19 = vpop.permute.xlu0 %3264 }
 0x68a   : > { %v3386_v15 = vpop.permute.xlu1 %3385  ;;  %v3244_v22 = vpop.permute.xlu0 %3243 }
 0x68e   : > { %v3462_v59 = vpop.permute.xlu1 %3461  ;;  %v3388_v52 = vpop.permute.xlu0 %3387 }
 0x692   : > { %v7722_v42 = vpop.permute.xlu1 %3597  ;;  %v3464_v36 = vpop.permute.xlu0 %3463 }
 0x696   : > { %v7724_v8 = vpop.permute.xlu1 %3673  ;;  %v7726_v43 = vpop.permute.xlu0 %3599 }
 0x69a   : > { %v7728_v35 = vpop.permute.xlu1 %3749  ;;  %v7730_v60 = vpop.permute.xlu0 %3675 }
 0x69e   : > { %v3267_v57 = vpop.permute.xlu1 %3266  ;;  %v7732_v41 = vpop.permute.xlu0 %3751 }
 0x69f   : > { %v3270_v12 = vsel %vm345_vm1, %v3263_v13, %v3267_v57  ;;  %v3272_v21 = vsel %vm345_vm1, %v3267_v57, %v3263_v13  ;;  %v6439_v13 = vld [vmem:[%s8504_s2 + $0x128] sm:$0xff]  }
 0x6a0   : > { %v3274_v62 = vmul.f32 %v3272_v21, %v6623_v28  ;;  %v3275_v18 = vmul.f32 %v3270_v12, %v6620_v27 }
 0x6a2   : > { %v3246_v4 = vpop.permute.xlu1 %3245  ;;  %v3269_v9 = vpop.permute.xlu0 %3268 }
 0x6a3   : > { %v3271_v61 = vsel %vm345_vm1, %v3265_v19, %v3269_v9  ;;  %v3273_v56 = vsel %vm345_vm1, %v3269_v9, %v3265_v19  ;;  %v3249_v1 = vsel %vm311_vm0, %v3242_v55, %v3246_v4  ;;  %v3251_v23 = vsel %vm311_vm0, %v3246_v4, %v3242_v55 }
 0x6a4   : > { %v3276_v58 = vmul.f32 %v3273_v56, %v6623_v28  ;;  %v3277_v51 = vmul.f32 %v3271_v61, %v6620_v27  ;;  %v3253_v0 = vmul.f32 %v3251_v23, %v6643_v39  ;;  %v3254_v50 = vmul.f32 %v3249_v1, %v6617_v26 }
 0x6a6   : > { %v3278_v10 = vpack.c.bf16 %v3276_v58, %v3274_v62  ;;  %v3390_v54 = vpop.permute.xlu1 %3389  ;;  %v3248_v37 = vpop.permute.xlu0 %3247  ;;  %v3279_v34 = vpack.c.bf16 %v3277_v51, %v3275_v18 }
 0x6a7   : > { %v3250_v16 = vsel %vm311_vm0, %v3244_v22, %v3248_v37  ;;  %v3252_v20 = vsel %vm311_vm0, %v3248_v37, %v3244_v22  ;;  %v3393_v55 = vsel %vm483_vm2, %v3386_v15, %v3390_v54  ;;  %v3395_v19 = vsel %vm483_vm2, %v3390_v54, %v3386_v15 }
 0x6a8   : > { %v3255_v5 = vmul.f32 %v3252_v20, %v6643_v39  ;;  %v3256_v33 = vmul.f32 %v3250_v16, %v6617_v26  ;;  %3302 = vmatprep.subr.bf16.mxu0 %v3279_v34  ;;  %v3397_v61 = vmul.f32 %v3395_v19, %v6628_v31  ;;  %v3398_v56 = vmul.f32 %v3393_v55, %v6646_v40 }
 0x6a9   : > { %3303 = vmatpush1.bf16.msra.mxu0 %v3278_v10  ;;  %v3537_v55 = vpack.c.bf16 %v7641_v24, %v7637_v25 }
 0x6aa   : > { %v3257_v22 = vpack.c.bf16 %v3255_v5, %v3253_v0  ;;  %v3466_v57 = vpop.permute.xlu1 %3465  ;;  %v3392_v12 = vpop.permute.xlu0 %3391  ;;  %v3258_v21 = vpack.c.bf16 %v3256_v33, %v3254_v50  ;;  %v6441_v50 = vld [vmem:[%s8504_s2 + $0x130] sm:$0xff]  }
 0x6ab   : > { %v3394_v4 = vsel %vm483_vm2, %v3388_v52, %v3392_v12  ;;  %v3396_v9 = vsel %vm483_vm2, %v3392_v12, %v3388_v52  ;;  %v3469_v15 = vsel %vm573_vm3, %v3462_v59, %v3466_v57  ;;  %v3471_v58 = vsel %vm573_vm3, %v3466_v57, %v3462_v59  ;;  %v6440_v52 = vld [vmem:[%s8504_s2 + $0x120] sm:$0xff]   ;;  %v6442_v57 = vld [vmem:[%s8504_s2 + $0x138] sm:$0xff]  }
 0x6ac   : > { %v3399_v62 = vmul.f32 %v3396_v9, %v6628_v31  ;;  %v3400_v18 = vmul.f32 %v3394_v4, %v6646_v40  ;;  %6139 = vmatmul.mubr.msk.bf16.vlgmr.msra.gmra.mxu0 %vm374_vm4, %v6439_v13  ;;  %3353 = vmatprep.subr.bf16.mxu1 %v3258_v21  ;;  %v3538_v59 = vpack.c.bf16 %v7674_v49, %v7668_v3 }
 0x6ad   : > { %3443 = vmatprep.mubr.bf16.mxu0 %v8520_v30  ;;  %3354 = vmatpush1.bf16.msra.mxu1 %v3257_v22  ;;  %v3473_v34 = vmul.f32 %v3471_v58, %v6631_v32  ;;  %v3474_v16 = vmul.f32 %v3469_v15, %v6652_v46  ;;  %v6443_v15 = vld [vmem:[%s8504_s2 + $0x140] sm:$0xff]  }
 0x6ae   : > { %v3401_v51 = vpack.c.bf16 %v3399_v62, %v3397_v61  ;;  %v7782_v1 = vpop.permute.xlu1 %3825  ;;  %v3468_v23 = vpop.permute.xlu0 %3467  ;;  %v3402_v10 = vpack.c.bf16 %v3400_v18, %v3398_v56 }
 0x6af   : > { %v3470_v54 = vsel %vm573_vm3, %v3464_v36, %v3468_v23  ;;  %v3472_v37 = vsel %vm573_vm3, %v3468_v23, %v3464_v36 }
 0x6b0   : > { %v3475_v20 = vmul.f32 %v3472_v37, %v6631_v32  ;;  %v3476_v0 = vmul.f32 %v3470_v54, %v6652_v46  ;;  %3425 = vmatprep.subr.bf16.mxu0 %v3402_v10  ;;  %6141 = vmatmul.mubr.msk.bf16.vlgmr.msra.gmra.mxu1 %vm374_vm4, %v6440_v52 }
 0x6b1   : > { %3426 = vmatpush1.bf16.msra.mxu0 %v3401_v51  ;;  %3519 = vmatprep.mubr.bf16.mxu1 %v8520_v30 }
 0x6b2   : > { %v3477_v36 = vpack.c.bf16 %v3475_v20, %v3473_v34  ;;  %v3602_v5 = vpop.permute.xlu1 %3601  ;;  %v7798_v33 = vpop.permute.xlu0 %3827  ;;  %3561 = vmatprep.subr.bf16.mxu0 %v3538_v59  ;;  %v3478_v13 = vpack.c.bf16 %v3476_v0, %v3474_v16 }
 0x6b3   : > { %v3605_v19 = vsel %vm731_vm5, %v7722_v42, %v3602_v5  ;;  %v3607_v22 = vsel %vm731_vm5, %v3602_v5, %v7722_v42 }
 0x6b4   : > { %6145 = vmatmul.mubr.msk.bf16.vlgmr.msra.gmra.mxu0 %vm374_vm4, %v6441_v50  ;;  %3501 = vmatprep.subr.bf16.mxu1 %v3478_v13  ;;  %v3609_v4 = vmul.f32 %v3605_v19, %v6649_v45  ;;  %v3610_v61 = vmul.f32 %v3607_v22, %v6659_v48 }
 0x6b5   : > { %3502 = vmatpush1.bf16.msra.mxu1 %v3477_v36  ;;  %3562 = vmatpush1.bf16.msra.mxu0 %v3537_v55 }
 0x6b6   : > { %v3678_v12 = vpop.permute.xlu1 %3677  ;;  %v3604_v21 = vpop.permute.xlu0 %3603  ;;  %3579 = vmatprep.mubr.bf16.mxu0 %v8520_v30 }
 0x6b7   : > { %v3606_v9 = vsel %vm731_vm5, %v7726_v43, %v3604_v21  ;;  %v3608_v42 = vsel %vm731_vm5, %v3604_v21, %v7726_v43  ;;  %v3681_v56 = vsel %vm821_vm6, %v7724_v8, %v3678_v12  ;;  %v3683_v58 = vsel %vm821_vm6, %v3678_v12, %v7724_v8  ;;  %v6445_v21 = vld [vmem:[%s8504_s2 + $0x150] sm:$0xff]  }
 0x6b8   : > { %v3611_v62 = vmul.f32 %v3606_v9, %v6649_v45  ;;  %v3612_v18 = vmul.f32 %v3608_v42, %v6659_v48  ;;  %6149 = vmatmul.mubr.msk.bf16.vlgmr.msra.gmra.mxu1 %vm374_vm4, %v6442_v57  ;;  %v3685_v10 = vmul.f32 %v3681_v56, %v6656_v47  ;;  %v3686_v8 = vmul.f32 %v3683_v58, %v6731_v11  ;;  %v6446_v58 = vld [vmem:[%s8504_s2 + $0x158] sm:$0xff]  }
 0x6b9   : > { %3655 = vmatprep.mubr.bf16.mxu1 %v8520_v30 }
 0x6ba   : > { %v3613_v43 = vpack.c.bf16 %v3611_v62, %v3609_v4  ;;  %v3754_v52 = vpop.permute.xlu1 %3753  ;;  %v3680_v51 = vpop.permute.xlu0 %3679  ;;  %v3614_v23 = vpack.c.bf16 %v3612_v18, %v3610_v61 }
 0x6bb   : > { %v3682_v54 = vsel %vm821_vm6, %v7730_v60, %v3680_v51  ;;  %v3684_v37 = vsel %vm821_vm6, %v3680_v51, %v7730_v60  ;;  %v3757_v59 = vsel %vm911_vm7, %v7728_v35, %v3754_v52  ;;  %v3759_v20 = vsel %vm911_vm7, %v3754_v52, %v7728_v35  ;;  %v6444_v60 = vld [vmem:[%s8504_s2 + $0x148] sm:$0xff]  }
 0x6bc   : > { %v3687_v34 = vmul.f32 %v3682_v54, %v6656_v47  ;;  %v3688_v16 = vmul.f32 %v3684_v37, %v6731_v11  ;;  %6153 = vmatmul.mubr.msk.bf16.vlgmr.msra.gmra.mxu0 %vm374_vm4, %v6443_v15  ;;  %3637 = vmatprep.subr.bf16.mxu1 %v3614_v23  ;;  %v3761_v13 = vmul.f32 %v3757_v59, %v6722_v2 }
 0x6bd   : > { %3731 = vmatprep.mubr.bf16.mxu0 %v8520_v30  ;;  %3638 = vmatpush1.bf16.msra.mxu1 %v3613_v43  ;;  %v3762_v19 = vmul.f32 %v3759_v20, %v6759_v44 }
 0x6be   : > { %v3689_v0 = vpack.c.bf16 %v3687_v34, %v3685_v10  ;;  %v3830_v50 = vpop.permute.xlu1 %3829  ;;  %v3756_v36 = vpop.permute.xlu0 %3755  ;;  %v3690_v5 = vpack.c.bf16 %v3688_v16, %v3686_v8 }
 0x6bf   : > { %v3758_v55 = vsel %vm911_vm7, %v7732_v41, %v3756_v36  ;;  %v3760_v35 = vsel %vm911_vm7, %v3756_v36, %v7732_v41  ;;  %v3833_v22 = vsel %vm1001_vm8, %v7782_v1, %v3830_v50  ;;  %v3835_v4 = vsel %vm1001_vm8, %v3830_v50, %v7782_v1 }
 0x6c0   : > { %v3763_v57 = vmul.f32 %v3758_v55, %v6722_v2  ;;  %v3764_v12 = vmul.f32 %v3760_v35, %v6759_v44  ;;  %3713 = vmatprep.subr.bf16.mxu0 %v3690_v5  ;;  %6157 = vmatmul.mubr.msk.bf16.vlgmr.msra.gmra.mxu1 %vm374_vm4, %v6444_v60  ;;  %v3837_v61 = vmul.f32 %v3833_v22, %v6788_v7 }
 0x6c1   : > { %3714 = vmatpush1.bf16.msra.mxu0 %v3689_v0  ;;  %3807 = vmatprep.mubr.bf16.mxu1 %v8520_v30  ;;  %v3838_v1 = vmul.f32 %v3835_v4, %v6784_v6 }
 0x6c2   : > { %v3765_v41 = vpack.c.bf16 %v3763_v57, %v3761_v13  ;;  %v3832_v9 = vpop.permute.xlu0 %3831  ;;  %v3766_v42 = vpack.c.bf16 %v3764_v12, %v3762_v19 }
 0x6c3   : > { %v3834_v56 = vsel %vm1001_vm8, %v7798_v33, %v3832_v9  ;;  %v3836_v62 = vsel %vm1001_vm8, %v3832_v9, %v7798_v33  ;;  %v6447_v33 = vld [vmem:[%s8504_s2 + $0x160] sm:$0xff]  }
 0x6c4   : > { %v3839_v18 = vmul.f32 %v3834_v56, %v6788_v7  ;;  %v3840_v15 = vmul.f32 %v3836_v62, %v6784_v6  ;;  %6161 = vmatmul.mubr.msk.bf16.vlgmr.msra.gmra.mxu0 %vm374_vm4, %v6445_v21  ;;  %3789 = vmatprep.subr.bf16.mxu1 %v3766_v42 }
 0x6c5   : > { %3790 = vmatpush1.bf16.msra.mxu1 %v3765_v41  ;;  %3883 = vmatprep.mubr.bf16.mxu0 %v8520_v30 }
 0x6c6   : > { %v3841_v43 = vpack.c.bf16 %v3839_v18, %v3837_v61  ;;  %v3842_v52 = vpack.c.bf16 %v3840_v15, %v3838_v1 }
 0x6c8   : > { %3865 = vmatprep.subr.bf16.mxu0 %v3842_v52  ;;  %6165 = vmatmul.mubr.msk.bf16.vlgmr.msra.gmra.mxu1 %vm374_vm4, %v6446_v58 }
 0x6c9   : > { %3866 = vmatpush1.bf16.msra.mxu0 %v3841_v43  ;;  %4026 = vmatprep.mubr.bf16.mxu1 %v8520_v30 }
 0x6cc   : > { %6169 = vmatmul.mubr.msk.bf16.vlgmr.msra.gmra.mxu0 %vm374_vm4, %v6447_v33 }
 0x6cd   : > { %4077 = vmatprep.mubr.bf16.mxu0 %v8520_v30 }
 0x76c   : > { %v3322_v51 = vpop.f32.mrf.mxu0 }
 0x76e   : > { %v3324_v23 = vpop.f32.mrf.mxu0 }
 0x770   : > { %v3326_v10 = vpop.f32.mrf.mxu0  ;;  %v3373_v54 = vpop.f32.mrf.mxu1 }
 0x771   : > { %v3374_v35 = vadd.f32 %v3373_v54, %v3322_v51 }
 0x772   : > { %v3328_v37 = vpop.f32.mrf.mxu0  ;;  %v3375_v8 = vpop.f32.mrf.mxu1 }
 0x773   : > { %v3376_v57 = vadd.f32 %v3375_v8, %v3324_v23 }
 0x774   : > { %v3445_v59 = vpop.f32.mrf.mxu0  ;;  %v3377_v34 = vpop.f32.mrf.mxu1 }
 0x775   : > { %v3454_v12 = vadd.f32 %v3445_v59, %v3374_v35  ;;  %v3378_v41 = vadd.f32 %v3377_v34, %v3326_v10  ;;  %v3904_v34 = vpop.permute.xlu1 %3903 }
 0x776   : > { %v3447_v16 = vpop.f32.mrf.mxu0  ;;  %v3379_v20 = vpop.f32.mrf.mxu1 }
 0x777   : > { %v3455_v9 = vadd.f32 %v3447_v16, %v3376_v57  ;;  %v3380_v58 = vadd.f32 %v3379_v20, %v3328_v37 }
 0x778   : > { %v3449_v60 = vpop.f32.mrf.mxu0  ;;  %v3521_v0 = vpop.f32.mrf.mxu1 }
 0x779   : > { %v3530_v42 = vadd.f32 %v3521_v0, %v3454_v12  ;;  %v3456_v62 = vadd.f32 %v3449_v60, %v3378_v41  ;;  %v3909_v41 = vpop.permute.xlu0 %3908 }
 0x77a   : > { %v3451_v50 = vpop.f32.mrf.mxu0  ;;  %v3523_v36 = vpop.f32.mrf.mxu1 }
 0x77b   : > { %v3531_v1 = vadd.f32 %v3523_v36, %v3455_v9  ;;  %v3457_v29 = vadd.f32 %v3451_v50, %v3380_v58 }
 0x77c   : > { %v3581_v5 = vpop.f32.mrf.mxu0  ;;  %v3525_v13 = vpop.f32.mrf.mxu1 }
 0x77d   : > { %v3590_v18 = vadd.f32 %v3581_v5, %v3530_v42  ;;  %v3532_v52 = vadd.f32 %v3525_v13, %v3456_v62  ;;  %v3925_v62 = vpop.permute.xlu1 %3924 }
 0x77e   : > { %v3583_v55 = vpop.f32.mrf.mxu0  ;;  %v3527_v19 = vpop.f32.mrf.mxu1 }
 0x77f   : > { %v3591_v33 = vadd.f32 %v3583_v55, %v3531_v1  ;;  %v3533_v16 = vadd.f32 %v3527_v19, %v3457_v29 }
 0x780   : > { %v3585_v22 = vpop.f32.mrf.mxu0  ;;  %v3657_v21 = vpop.f32.mrf.mxu1 }
 0x781   : > { %v3666_v51 = vadd.f32 %v3657_v21, %v3590_v18  ;;  %v3592_v8 = vadd.f32 %v3585_v22, %v3532_v52 }
 0x782   : > { %v3587_v4 = vpop.f32.mrf.mxu0  ;;  %v3659_v61 = vpop.f32.mrf.mxu1 }
 0x783   : > { %v3667_v59 = vadd.f32 %v3659_v61, %v3591_v33  ;;  %v3593_v12 = vadd.f32 %v3587_v4, %v3533_v16  ;;  %v3930_v33 = vpop.permute.xlu0 %3929 }
 0x784   : > { %v3733_v56 = vpop.f32.mrf.mxu0  ;;  %v3661_v15 = vpop.f32.mrf.mxu1 }
 0x785   : > { %v3742_v35 = vadd.f32 %v3733_v56, %v3666_v51  ;;  %v3668_v57 = vadd.f32 %v3661_v15, %v3592_v8 }
 0x786   : > { %v3735_v43 = vpop.f32.mrf.mxu0  ;;  %v3663_v54 = vpop.f32.mrf.mxu1 }
 0x787   : > { %v3743_v60 = vadd.f32 %v3735_v43, %v3667_v59  ;;  %v3669_v50 = vadd.f32 %v3663_v54, %v3593_v12  ;;  %v3236_v59 = vmul.f32 %v7360_v63, %v7641_v24  ;;  %v6213_v12 = vld [vmem:[%s8506_s4 + $0x58] sm:$0xff] }
 0x788   : > { %v3737_v23 = vpop.f32.mrf.mxu0  ;;  %v3809_v10 = vpop.f32.mrf.mxu1 }
 0x789   : > { %v3818_v36 = vadd.f32 %v3809_v10, %v3742_v35  ;;  %v3744_v20 = vadd.f32 %v3737_v23, %v3668_v57 }
 0x78a   : > { %v3739_v0 = vpop.f32.mrf.mxu0  ;;  %v3811_v5 = vpop.f32.mrf.mxu1 }
 0x78b   : > { %v3819_v13 = vadd.f32 %v3811_v5, %v3743_v60  ;;  %v3745_v29 = vadd.f32 %v3739_v0, %v3669_v50 }
 0x78c   : > { %v3885_v37 = vpop.f32.mrf.mxu0  ;;  %v3813_v55 = vpop.f32.mrf.mxu1 }
 0x78d   : > { %v3894_v21 = vadd.f32 %v3885_v37, %v3818_v36  ;;  %v3820_v22 = vadd.f32 %v3813_v55, %v3744_v20 }
 0x78e   : > { %v3887_v9 = vpop.f32.mrf.mxu0  ;;  %v3815_v61 = vpop.f32.mrf.mxu1 }
 0x78f   : > { %v3911_v42 = vadd.f32 %v3904_v34, %v3894_v21  ;;  %v3895_v56 = vadd.f32 %v3887_v9, %v3819_v13  ;;  %v3821_v4 = vadd.f32 %v3815_v61, %v3745_v29 }
 0x790   : > { %v3889_v19 = vpop.f32.mrf.mxu0 }
 0x791   : > { %vm3915_vm12 = vcmp.ge.f32.partialorder %v3911_v42, 0.0  ;;  %v3932_v1 = vmul.f32 %v3925_v62, %v3911_v42  ;;  %v3912_v18 = vadd.f32 %v3904_v34, %v3895_v56  ;;  %v3896_v15 = vadd.f32 %v3889_v19, %v3820_v22 }
 0x792   : > { %v3891_v58 = vpop.f32.mrf.mxu0 }
 0x793   : > { %v3936_v43 = vsel %vm3915_vm12, %v3911_v42, %v3932_v1  ;;  %v3913_v52 = vadd.f32 %v3909_v41, %v3896_v15  ;;  %v3933_v54 = vmul.f32 %v3925_v62, %v3912_v18  ;;  %v3897_v23 = vadd.f32 %v3891_v58, %v3821_v4 }
 0x794   : > { %v7900_v51 = vadd.f32 %v3936_v43, %v7637_v25  ;;  %vm3916_vm13 = vcmp.ge.f32.partialorder %v3912_v18, 0.0  ;;  %v3237_v25 = vmul.f32 %v7360_v63, %v7674_v49  ;;  %v6210_v63 = vld [vmem:[%s8505_s3 + $0x50] sm:$0xff]  ;;  %v6211_v49 = vld [vmem:[%s8505_s3 + $0x58] sm:$0xff] }
 0x795   : > { %vm3917_vm14 = vcmp.ge.f32.partialorder %v3913_v52, 0.0  ;;  %v3934_v8 = vmul.f32 %v3930_v33, %v3913_v52  ;;  %v3914_v35 = vadd.f32 %v3909_v41, %v3897_v23  ;;  %v3937_v34 = vsel %vm3916_vm13, %v3912_v18, %v3933_v54 }
 0x796   : > { %3968 = vrot.lane.b32.xlu1 %v7900_v51, %s6482_s8  ;;  %v7917_v60 = vadd.f32 %v3937_v34, %v7668_v3  ;;  %v6212_v3 = vld [vmem:[%s8506_s4 + $0x50] sm:$0xff] }
 0x797   : > { %v3938_v10 = vsel %vm3917_vm14, %v3913_v52, %v3934_v8  ;;  %vm3918_vm15 = vcmp.ge.f32.partialorder %v3914_v35, 0.0  ;;  %v3935_v0 = vmul.f32 %v3930_v33, %v3914_v35 }
 0x798   : > { %v7906_v16 = vadd.f32 %v3938_v10, %v3236_v59 }
 0x799   : > { %v3939_v57 = vsel %vm3918_vm15, %v3914_v35, %v3935_v0 }
 0x79a   : > { %3947 = vrot.lane.b32.xlu1 %v7900_v51, %s6481_s30  ;;  %3970 = vrot.lane.b32.xlu0 %v7906_v16, %s6482_s8  ;;  %v4243_v24 = vpack.c.bf16 %v7906_v16, %v7900_v51  ;;  %v7919_v36 = vadd.f32 %v3939_v57, %v3237_v25 }
 0x79c   : > { %v4244_v5 = vpack.c.bf16 %v7919_v36, %v7917_v60 }
 0x79e   : > { %4091 = vrot.lane.b32.xlu1 %v7900_v51, %s6484_s9  ;;  %3949 = vrot.lane.b32.xlu0 %v7906_v16, %s6481_s30 }
 0x7a2   : > { %4167 = vrot.lane.b32.xlu1 %v7900_v51, %s6485_s10  ;;  %4093 = vrot.lane.b32.xlu0 %v7906_v16, %s6484_s9 }
 0x7a6   : > { %4303 = vrot.lane.b32.xlu1 %v7900_v51, %s6486_s11  ;;  %4169 = vrot.lane.b32.xlu0 %v7906_v16, %s6485_s10 }
 0x7aa   : > { %4379 = vrot.lane.b32.xlu1 %v7900_v51, %s6487_s12  ;;  %4305 = vrot.lane.b32.xlu0 %v7906_v16, %s6486_s11 }
 0x7ae   : > { %4455 = vrot.lane.b32.xlu1 %v7900_v51, %s6488_s13  ;;  %4381 = vrot.lane.b32.xlu0 %v7906_v16, %s6487_s12 }
 0x7b2   : > { %3972 = vrot.lane.b32.xlu1 %v7917_v60, %s6482_s8  ;;  %4457 = vrot.lane.b32.xlu0 %v7906_v16, %s6488_s13 }
 0x7b6   : > { %3951 = vrot.lane.b32.xlu1 %v7917_v60, %s6481_s30  ;;  %3974 = vrot.lane.b32.xlu0 %v7919_v36, %s6482_s8 }
 0x7ba   : > { %4095 = vrot.lane.b32.xlu1 %v7917_v60, %s6484_s9  ;;  %3953 = vrot.lane.b32.xlu0 %v7919_v36, %s6481_s30 }
 0x7be   : > { %4171 = vrot.lane.b32.xlu1 %v7917_v60, %s6485_s10  ;;  %4097 = vrot.lane.b32.xlu0 %v7919_v36, %s6484_s9 }
 0x7c2   : > { %4531 = vrot.lane.b32.xlu1 %v7900_v51, %s6489_s14  ;;  %4173 = vrot.lane.b32.xlu0 %v7919_v36, %s6485_s10 }
 0x7c6   : > { %4307 = vrot.lane.b32.xlu1 %v7917_v60, %s6486_s11  ;;  %4533 = vrot.lane.b32.xlu0 %v7906_v16, %s6489_s14 }
 0x7ca   : > { %4383 = vrot.lane.b32.xlu1 %v7917_v60, %s6487_s12  ;;  %4309 = vrot.lane.b32.xlu0 %v7919_v36, %s6486_s11 }
 0x7ce   : > { %4459 = vrot.lane.b32.xlu1 %v7917_v60, %s6488_s13  ;;  %4385 = vrot.lane.b32.xlu0 %v7919_v36, %s6487_s12 }
 0x7d2   : > { %4535 = vrot.lane.b32.xlu1 %v7917_v60, %s6489_s14  ;;  %4461 = vrot.lane.b32.xlu0 %v7919_v36, %s6488_s13  ;;  %v6451_v60 = vld [vmem:[%s8504_s2 + $0x180] sm:$0xff]  }
 0x7d6   : > { %4609 = vperm.xlu1 %6400, %v6210_v63   ;;  %4537 = vrot.lane.b32.xlu0 %v7919_v36, %s6489_s14 }
 0x7da   : > { %4634 = vperm.xlu1 %6400, %v6212_v3   ;;  %4614 = vperm.xlu0 %6399, %v6211_v49  }
 0x7de   : > { %4639 = vperm.xlu0 %6399, %v6213_v12  }
 0x808   : > { %v3969_v37 = vpop.permute.xlu1 %3968 }
 0x80c   : > { %v3948_v20 = vpop.permute.xlu1 %3947  ;;  %v3971_v13 = vpop.permute.xlu0 %3970 }
 0x810   : > { %v4092_v55 = vpop.permute.xlu1 %4091  ;;  %v3950_v21 = vpop.permute.xlu0 %3949 }
 0x814   : > { %v4168_v41 = vpop.permute.xlu1 %4167  ;;  %v4094_v50 = vpop.permute.xlu0 %4093 }
 0x818   : > { %v7993_v9 = vpop.permute.xlu1 %4303  ;;  %v4170_v22 = vpop.permute.xlu0 %4169 }
 0x81c   : > { %v7995_v42 = vpop.permute.xlu1 %4379  ;;  %v7997_v61 = vpop.permute.xlu0 %4305 }
 0x820   : > { %v7999_v56 = vpop.permute.xlu1 %4455  ;;  %v8001_v62 = vpop.permute.xlu0 %4381 }
 0x824   : > { %v3973_v29 = vpop.permute.xlu1 %3972  ;;  %v8003_v19 = vpop.permute.xlu0 %4457 }
 0x825   : > { %v3976_v1 = vsel %vm345_vm1, %v3969_v37, %v3973_v29  ;;  %v3978_v18 = vsel %vm345_vm1, %v3973_v29, %v3969_v37  ;;  %v6448_v37 = vld [vmem:[%s8504_s2 + $0x170] sm:$0xff]  }
 0x826   : > { %v3980_v52 = vmul.f32 %v3978_v18, %v6623_v28  ;;  %v3981_v33 = vmul.f32 %v3976_v1, %v6620_v27 }
 0x828   : > { %v3952_v15 = vpop.permute.xlu1 %3951  ;;  %v3975_v4 = vpop.permute.xlu0 %3974 }
 0x829   : > { %v3977_v58 = vsel %vm345_vm1, %v3971_v13, %v3975_v4  ;;  %v3979_v43 = vsel %vm345_vm1, %v3975_v4, %v3971_v13  ;;  %v3955_v8 = vsel %vm311_vm0, %v3948_v20, %v3952_v15  ;;  %v3957_v59 = vsel %vm311_vm0, %v3952_v15, %v3948_v20 }
 0x82a   : > { %v3982_v54 = vmul.f32 %v3979_v43, %v6623_v28  ;;  %v3983_v23 = vmul.f32 %v3977_v58, %v6620_v27  ;;  %v3959_v63 = vmul.f32 %v3957_v59, %v6643_v39  ;;  %v3960_v3 = vmul.f32 %v3955_v8, %v6617_v26 }
 0x82c   : > { %v3984_v35 = vpack.c.bf16 %v3982_v54, %v3980_v52  ;;  %v4096_v10 = vpop.permute.xlu1 %4095  ;;  %v3954_v34 = vpop.permute.xlu0 %3953  ;;  %v3985_v0 = vpack.c.bf16 %v3983_v23, %v3981_v33 }
 0x82d   : > { %v3956_v25 = vsel %vm311_vm0, %v3950_v21, %v3954_v34  ;;  %v3958_v57 = vsel %vm311_vm0, %v3954_v34, %v3950_v21  ;;  %v4099_v20 = vsel %vm483_vm2, %v4092_v55, %v4096_v10  ;;  %v4101_v13 = vsel %vm483_vm2, %v4096_v10, %v4092_v55 }
 0x82e   : > { %v3961_v49 = vmul.f32 %v3958_v57, %v6643_v39  ;;  %v3962_v12 = vmul.f32 %v3956_v25, %v6617_v26  ;;  %4008 = vmatprep.subr.bf16.mxu1 %v3985_v0  ;;  %v4103_v58 = vmul.f32 %v4101_v13, %v6628_v31  ;;  %v4104_v43 = vmul.f32 %v4099_v20, %v6646_v40  ;;  %v6450_v25 = vld [vmem:[%s8504_s2 + $0x178] sm:$0xff]  }
 0x82f   : > { %4009 = vmatpush1.bf16.msra.mxu1 %v3984_v35 }
 0x830   : > { %v3963_v21 = vpack.c.bf16 %v3961_v49, %v3959_v63  ;;  %v4172_v29 = vpop.permute.xlu1 %4171  ;;  %v4098_v1 = vpop.permute.xlu0 %4097  ;;  %v3964_v18 = vpack.c.bf16 %v3962_v12, %v3960_v3 }
 0x831   : > { %v4100_v15 = vsel %vm483_vm2, %v4094_v50, %v4098_v1  ;;  %v4102_v4 = vsel %vm483_vm2, %v4098_v1, %v4094_v50  ;;  %v4175_v55 = vsel %vm573_vm3, %v4168_v41, %v4172_v29  ;;  %v4177_v54 = vsel %vm573_vm3, %v4172_v29, %v4168_v41  ;;  %v6449_v50 = vld [vmem:[%s8504_s2 + $0x168] sm:$0xff]  }
 0x832   : > { %v4105_v52 = vmul.f32 %v4102_v4, %v6628_v31  ;;  %v4106_v33 = vmul.f32 %v4100_v15, %v6646_v40  ;;  %6179 = vmatmul.mubr.msk.bf16.vlgmr.msra.gmra.mxu1 %vm374_vm4, %v6448_v37  ;;  %4059 = vmatprep.subr.bf16.mxu0 %v3964_v18  ;;  %v4179_v41 = vmul.f32 %v4177_v54, %v6631_v32 }
 0x833   : > { %4149 = vmatprep.mubr.bf16.mxu1 %v8520_v30  ;;  %4060 = vmatpush1.bf16.msra.mxu0 %v3963_v21  ;;  %v4180_v10 = vmul.f32 %v4175_v55, %v6652_v46  ;;  %v6452_v21 = vld [vmem:[%s8504_s2 + $0x188] sm:$0xff]  }
 0x834   : > { %v4107_v23 = vpack.c.bf16 %v4105_v52, %v4103_v58  ;;  %v8053_v31 = vpop.permute.xlu1 %4531  ;;  %v4174_v40 = vpop.permute.xlu0 %4173  ;;  %v4108_v8 = vpack.c.bf16 %v4106_v33, %v4104_v43 }
 0x835   : > { %v4176_v59 = vsel %vm573_vm3, %v4170_v22, %v4174_v40  ;;  %v4178_v35 = vsel %vm573_vm3, %v4174_v40, %v4170_v22 }
 0x836   : > { %v4181_v34 = vmul.f32 %v4178_v35, %v6631_v32  ;;  %v4182_v0 = vmul.f32 %v4176_v59, %v6652_v46  ;;  %4131 = vmatprep.subr.bf16.mxu1 %v4108_v8  ;;  %6181 = vmatmul.mubr.msk.bf16.vlgmr.msra.gmra.mxu0 %vm374_vm4, %v6449_v50 }
 0x837   : > { %4132 = vmatpush1.bf16.msra.mxu1 %v4107_v23  ;;  %4225 = vmatprep.mubr.bf16.mxu0 %v8520_v30 }
 0x838   : > { %v4183_v57 = vpack.c.bf16 %v4181_v34, %v4179_v41  ;;  %v4308_v63 = vpop.permute.xlu1 %4307  ;;  %v8067_v3 = vpop.permute.xlu0 %4533  ;;  %4267 = vmatprep.subr.bf16.mxu1 %v4244_v5  ;;  %v4184_v22 = vpack.c.bf16 %v4182_v0, %v4180_v10  ;;  %v6454_v41 = vld [vmem:[%s8504_s2 + $0x198] sm:$0xff]  }
 0x839   : > { %v4311_v49 = vsel %vm731_vm5, %v7993_v9, %v4308_v63  ;;  %v4313_v12 = vsel %vm731_vm5, %v4308_v63, %v7993_v9 }
 0x83a   : > { %6185 = vmatmul.mubr.msk.bf16.vlgmr.msra.gmra.mxu1 %vm374_vm4, %v6450_v25  ;;  %4207 = vmatprep.subr.bf16.mxu0 %v4184_v22  ;;  %v4315_v37 = vmul.f32 %v4311_v49, %v6649_v45  ;;  %v4316_v51 = vmul.f32 %v4313_v12, %v6659_v48  ;;  %v6455_v22 = vld [vmem:[%s8504_s2 + $0x1a0] sm:$0xff]  }
 0x83b   : > { %4208 = vmatpush1.bf16.msra.mxu0 %v4183_v57  ;;  %4268 = vmatpush1.bf16.msra.mxu1 %v4243_v24 }
 0x83c   : > { %v4384_v36 = vpop.permute.xlu1 %4383  ;;  %v4310_v5 = vpop.permute.xlu0 %4309  ;;  %4285 = vmatprep.mubr.bf16.mxu1 %v8520_v30 }
 0x83d   : > { %v4312_v20 = vsel %vm731_vm5, %v7997_v61, %v4310_v5  ;;  %v4314_v9 = vsel %vm731_vm5, %v4310_v5, %v7997_v61  ;;  %v4387_v16 = vsel %vm821_vm6, %v7995_v42, %v4384_v36  ;;  %v4389_v29 = vsel %vm821_vm6, %v4384_v36, %v7995_v42 }
 0x83e   : > { %v4317_v24 = vmul.f32 %v4312_v20, %v6649_v45  ;;  %v4318_v13 = vmul.f32 %v4314_v9, %v6659_v48  ;;  %6189 = vmatmul.mubr.msk.bf16.vlgmr.msra.gmra.mxu0 %vm374_vm4, %v6451_v60  ;;  %v4391_v45 = vmul.f32 %v4387_v16, %v6656_v47  ;;  %v4392_v42 = vmul.f32 %v4389_v29, %v6731_v11 }
 0x83f   : > { %4361 = vmatprep.mubr.bf16.mxu0 %v8520_v30 }
 0x840   : > { %v4319_v61 = vpack.c.bf16 %v4317_v24, %v4315_v37  ;;  %v4460_v1 = vpop.permute.xlu1 %4459  ;;  %v4386_v18 = vpop.permute.xlu0 %4385  ;;  %v4320_v15 = vpack.c.bf16 %v4318_v13, %v4316_v51 }
 0x841   : > { %v4388_v48 = vsel %vm821_vm6, %v8001_v62, %v4386_v18  ;;  %v4390_v4 = vsel %vm821_vm6, %v4386_v18, %v8001_v62  ;;  %v4463_v58 = vsel %vm911_vm7, %v7999_v56, %v4460_v1  ;;  %v4465_v33 = vsel %vm911_vm7, %v4460_v1, %v7999_v56  ;;  %v6453_v62 = vld [vmem:[%s8504_s2 + $0x190] sm:$0xff]  }
 0x842   : > { %v4393_v43 = vmul.f32 %v4388_v48, %v6656_v47  ;;  %v4394_v52 = vmul.f32 %v4390_v4, %v6731_v11  ;;  %6193 = vmatmul.mubr.msk.bf16.vlgmr.msra.gmra.mxu1 %vm374_vm4, %v6452_v21  ;;  %4343 = vmatprep.subr.bf16.mxu0 %v4320_v15  ;;  %v4467_v11 = vmul.f32 %v4463_v58, %v6722_v2 }
 0x843   : > { %4437 = vmatprep.mubr.bf16.mxu1 %v8520_v30  ;;  %4344 = vmatpush1.bf16.msra.mxu0 %v4319_v61  ;;  %v4468_v40 = vmul.f32 %v4465_v33, %v6759_v44 }
 0x844   : > { %v4395_v55 = vpack.c.bf16 %v4393_v43, %v4391_v45  ;;  %v4536_v54 = vpop.permute.xlu1 %4535  ;;  %v4462_v50 = vpop.permute.xlu0 %4461  ;;  %v4396_v47 = vpack.c.bf16 %v4394_v52, %v4392_v42 }
 0x845   : > { %v4464_v23 = vsel %vm911_vm7, %v8003_v19, %v4462_v50  ;;  %v4466_v56 = vsel %vm911_vm7, %v4462_v50, %v8003_v19  ;;  %v4539_v8 = vsel %vm1001_vm8, %v8053_v31, %v4536_v54  ;;  %v4541_v10 = vsel %vm1001_vm8, %v4536_v54, %v8053_v31 }
 0x846   : > { %v4469_v59 = vmul.f32 %v4464_v23, %v6722_v2  ;;  %v4470_v35 = vmul.f32 %v4466_v56, %v6759_v44  ;;  %4419 = vmatprep.subr.bf16.mxu1 %v4396_v47  ;;  %6197 = vmatmul.mubr.msk.bf16.vlgmr.msra.gmra.mxu0 %vm374_vm4, %v6453_v62  ;;  %v4543_v2 = vmul.f32 %v4539_v8, %v6788_v7 }
 0x847   : > { %4420 = vmatpush1.bf16.msra.mxu1 %v4395_v55  ;;  %4513 = vmatprep.mubr.bf16.mxu0 %v8520_v30  ;;  %v4544_v31 = vmul.f32 %v4541_v10, %v6784_v6 }
 0x848   : > { %v4471_v19 = vpack.c.bf16 %v4469_v59, %v4467_v11  ;;  %v4538_v34 = vpop.permute.xlu0 %4537  ;;  %v4472_v0 = vpack.c.bf16 %v4470_v35, %v4468_v40 }
 0x849   : > { %v4540_v44 = vsel %vm1001_vm8, %v8067_v3, %v4538_v34  ;;  %v4542_v25 = vsel %vm1001_vm8, %v4538_v34, %v8067_v3  ;;  %v6456_v3 = vld [vmem:[%s8504_s2 + $0x1a8] sm:$0xff]  }
 0x84a   : > { %v4545_v57 = vmul.f32 %v4540_v44, %v6788_v7  ;;  %v4546_v63 = vmul.f32 %v4542_v25, %v6784_v6  ;;  %6201 = vmatmul.mubr.msk.bf16.vlgmr.msra.gmra.mxu1 %vm374_vm4, %v6454_v41  ;;  %4495 = vmatprep.subr.bf16.mxu0 %v4472_v0 }
 0x84b   : > { %4496 = vmatpush1.bf16.msra.mxu0 %v4471_v19  ;;  %4589 = vmatprep.mubr.bf16.mxu1 %v8520_v30 }
 0x84c   : > { %v4547_v49 = vpack.c.bf16 %v4545_v57, %v4543_v2  ;;  %v4548_v12 = vpack.c.bf16 %v4546_v63, %v4544_v31 }
 0x84e   : > { %4571 = vmatprep.subr.bf16.mxu1 %v4548_v12  ;;  %6205 = vmatmul.mubr.msk.bf16.vlgmr.msra.gmra.mxu0 %vm374_vm4, %v6455_v22 }
 0x84f   : > { %4572 = vmatpush1.bf16.msra.mxu1 %v4547_v49  ;;  %4715 = vmatprep.mubr.bf16.mxu0 %v8520_v30 }
 0x851   : > { %v4610_v12 = vpop.permute.xlu1 %4609 }
 0x852   : > { %6209 = vmatmul.mubr.msk.bf16.vlgmr.msra.gmra.mxu1 %vm374_vm4, %v6456_v3 }
 0x853   : > { %4766 = vmatprep.mubr.bf16.mxu1 %v8520_v30 }
 0x8f2   : > { %v4028_v6 = vpop.f32.mrf.mxu1 }
 0x8f4   : > { %v4030_v7 = vpop.f32.mrf.mxu1 }
 0x8f6   : > { %v4032_v60 = vpop.f32.mrf.mxu1  ;;  %v4079_v36 = vpop.f32.mrf.mxu0 }
 0x8f7   : > { %v4080_v15 = vadd.f32 %v4079_v36, %v4028_v6 }
 0x8f8   : > { %v4034_v5 = vpop.f32.mrf.mxu1  ;;  %v4081_v37 = vpop.f32.mrf.mxu0 }
 0x8f9   : > { %v4082_v4 = vadd.f32 %v4081_v37, %v4030_v7 }
 0x8fa   : > { %v4151_v20 = vpop.f32.mrf.mxu1  ;;  %v4083_v9 = vpop.f32.mrf.mxu0 }
 0x8fb   : > { %v4160_v42 = vadd.f32 %v4151_v20, %v4080_v15  ;;  %v4084_v52 = vadd.f32 %v4083_v9, %v4032_v60  ;;  %v4635_v15 = vpop.permute.xlu1 %4634 }
 0x8fc   : > { %v4153_v51 = vpop.f32.mrf.mxu1  ;;  %v4085_v16 = vpop.f32.mrf.mxu0 }
 0x8fd   : > { %v4161_v33 = vadd.f32 %v4153_v51, %v4082_v4  ;;  %v4086_v56 = vadd.f32 %v4085_v16, %v4034_v5 }
 0x8fe   : > { %v4155_v24 = vpop.f32.mrf.mxu1  ;;  %v4227_v13 = vpop.f32.mrf.mxu0 }
 0x8ff   : > { %v4236_v62 = vadd.f32 %v4227_v13, %v4160_v42  ;;  %v4162_v50 = vadd.f32 %v4155_v24, %v4084_v52  ;;  %v4615_v13 = vpop.permute.xlu0 %4614 }
 0x900   : > { %v4157_v21 = vpop.f32.mrf.mxu1  ;;  %v4229_v29 = vpop.f32.mrf.mxu0 }
 0x901   : > { %v4237_v47 = vadd.f32 %v4229_v29, %v4161_v33  ;;  %v4163_v10 = vadd.f32 %v4157_v21, %v4086_v56 }
 0x902   : > { %v4287_v61 = vpop.f32.mrf.mxu1  ;;  %v4231_v1 = vpop.f32.mrf.mxu0 }
 0x903   : > { %v4296_v11 = vadd.f32 %v4287_v61, %v4236_v62  ;;  %v4238_v8 = vadd.f32 %v4231_v1, %v4162_v50  ;;  %v4640_v62 = vpop.permute.xlu0 %4639  ;;  %v8521_v50 = vld [vmem:[#allocation4_spill] sm:$0xff] }
 0x904   : > { %v4289_v18 = vpop.f32.mrf.mxu1  ;;  %v4233_v45 = vpop.f32.mrf.mxu0 }
 0x905   : > { %v4297_v59 = vadd.f32 %v4289_v18, %v4237_v47  ;;  %v4239_v25 = vadd.f32 %v4233_v45, %v4163_v10 }
 0x906   : > { %v4291_v48 = vpop.f32.mrf.mxu1  ;;  %v4363_v58 = vpop.f32.mrf.mxu0 }
 0x907   : > { %v4372_v35 = vadd.f32 %v4363_v58, %v4296_v11  ;;  %v4298_v34 = vadd.f32 %v4291_v48, %v4238_v8  ;;  %v6458_v8 = vld [vmem:[%s8507_s5] sm:$0xff]  }
 0x908   : > { %v4293_v43 = vpop.f32.mrf.mxu1  ;;  %v4365_v55 = vpop.f32.mrf.mxu0 }
 0x909   : > { %v4373_v0 = vadd.f32 %v4365_v55, %v4297_v59  ;;  %v4299_v3 = vadd.f32 %v4293_v43, %v4239_v25  ;;  %v4929_v59 = vld [vmem:[%s8508_s6] sm:$0xff] }
 0x90a   : > { %v4439_v54 = vpop.f32.mrf.mxu1  ;;  %v4367_v23 = vpop.f32.mrf.mxu0 }
 0x90b   : > { %v4448_v2 = vadd.f32 %v4439_v54, %v4372_v35  ;;  %v4374_v57 = vadd.f32 %v4367_v23, %v4298_v34  ;;  %v4930_v35 = vld [vmem:[%s8508_s6 + $0x8] sm:$0xff] }
 0x90c   : > { %v4441_v40 = vpop.f32.mrf.mxu1  ;;  %v4369_v41 = vpop.f32.mrf.mxu0 }
 0x90d   : > { %v4449_v63 = vadd.f32 %v4441_v40, %v4373_v0  ;;  %v4375_v37 = vadd.f32 %v4369_v41, %v4299_v3 }
 0x90e   : > { %v4443_v19 = vpop.f32.mrf.mxu1  ;;  %v4515_v44 = vpop.f32.mrf.mxu0 }
 0x90f   : > { %v4524_v22 = vadd.f32 %v4515_v44, %v4448_v2  ;;  %v4450_v7 = vadd.f32 %v4443_v19, %v4374_v57 }
 0x910   : > { %v4445_v31 = vpop.f32.mrf.mxu1  ;;  %v4517_v49 = vpop.f32.mrf.mxu0 }
 0x911   : > { %v4525_v60 = vadd.f32 %v4517_v49, %v4449_v63  ;;  %v4451_v21 = vadd.f32 %v4445_v31, %v4375_v37 }
 0x912   : > { %v4591_v6 = vpop.f32.mrf.mxu1  ;;  %v4519_v36 = vpop.f32.mrf.mxu0 }
 0x913   : > { %v4600_v5 = vadd.f32 %v4591_v6, %v4524_v22  ;;  %v4526_v9 = vadd.f32 %v4519_v36, %v4450_v7 }
 0x914   : > { %v4593_v20 = vpop.f32.mrf.mxu1  ;;  %v4521_v16 = vpop.f32.mrf.mxu0 }
 0x915   : > { %v4617_v51 = vadd.f32 %v4610_v12, %v4600_v5  ;;  %v4601_v24 = vadd.f32 %v4593_v20, %v4525_v60  ;;  %v4527_v45 = vadd.f32 %v4521_v16, %v4451_v21 }
 0x916   : > { %v4595_v29 = vpop.f32.mrf.mxu1 }
 0x917   : > { %v4621_v61 = vadd.f32 %v4617_v51, %v6834_v14  ;;  %v4618_v1 = vadd.f32 %v4610_v12, %v4601_v24  ;;  %v4602_v18 = vadd.f32 %v4595_v29, %v4526_v9 }
 0x918   : > { %v4597_v48 = vpop.f32.mrf.mxu1 }
 0x919   : > { %vm4625_vm9 = vcmp.ge.f32.partialorder %v4621_v61, 0.0  ;;  %v4642_v4 = vmul.f32 %v4635_v15, %v4621_v61  ;;  %v4619_v42 = vadd.f32 %v4615_v13, %v4602_v18  ;;  %v4622_v58 = vadd.f32 %v4618_v1, %v6864_v38 }
 0x91a   : > { %v4603_v43 = vadd.f32 %v4597_v48, %v4527_v45 }
 0x91b   : > { %v4646_v52 = vsel %vm4625_vm9, %v4621_v61, %v4642_v4  ;;  %v4623_v33 = vadd.f32 %v4619_v42, %v6838_v53  ;;  %v4643_v54 = vmul.f32 %v4635_v15, %v4622_v58  ;;  %vm4626_vm11 = vcmp.ge.f32.partialorder %v4622_v58, 0.0  ;;  %v6457_v42 = vld [vmem:[%s8507_s5 + $0x8] sm:$0xff]  }
 0x91c   : > { %v4620_v55 = vadd.f32 %v4615_v13, %v4603_v43  ;;  %4657 = vrot.lane.b32.xlu1 %v4646_v52, %s6485_s10  ;;  %v6232_v43 = vld [vmem:[%s8503_s1 + $0xa] sm:$0x3] }
 0x91d   : > { %vm4627_vm10 = vcmp.ge.f32.partialorder %v4623_v33, 0.0  ;;  %v4644_v14 = vmul.f32 %v4640_v62, %v4623_v33  ;;  %v4647_v38 = vsel %vm4626_vm11, %v4622_v58, %v4643_v54  ;;  %v8523_v54 = vld [vmem:[#allocation3_spill] sm:$0xff] }
 0x91e   : > { %v4624_v47 = vadd.f32 %v4620_v55, %v8521_v50  ;;  %v8522_v55 = vld [vmem:[#allocation2_spill] sm:$0xff]  ;;  %v4976_v50 = vrot.slane %v6232_v43, %v8523_v54 }
 0x91f   : > { %v4648_v11 = vsel %vm4627_vm10, %v4623_v33, %v4644_v14  ;;  %v4972_v14 = vrot.slane %v6232_v43, %v8522_v55 }
 0x920   : > { %vm4628_vm12 = vcmp.ge.f32.partialorder %v4624_v47, 0.0  ;;  %v4645_v23 = vmul.f32 %v4640_v62, %v4624_v47  ;;  %4780 = vrot.lane.b32.xlu1 %v4646_v52, %s6482_s8  ;;  %4659 = vrot.lane.b32.xlu0 %v4648_v11, %s6485_s10  ;;  %v8183_v40 = vpack.c.bf16 %v4648_v11, %v4646_v52 }
 0x922   : > { %v4649_v56 = vsel %vm4628_vm12, %v4624_v47, %v4645_v23 }
 0x923   : > { %v8179_v53 = vpack.c.bf16 %v4649_v56, %v4647_v38 }
 0x924   : > { %4856 = vrot.lane.b32.xlu1 %v4646_v52, %s6481_s30  ;;  %4782 = vrot.lane.b32.xlu0 %v4648_v11, %s6482_s8 }
 0x925   : > { %4748 = vmatprep.subr.bf16.mxu1 %v8179_v53 }
 0x926   : > { %4749 = vmatpush1.bf16.msra.mxu1 %v8183_v40 }
 0x928   : > { %4661 = vrot.lane.b32.xlu1 %v4647_v38, %s6485_s10  ;;  %4858 = vrot.lane.b32.xlu0 %v4648_v11, %s6481_s30 }
 0x929   : > { %6219 = vmatmul.mubr.msk.bf16.vlgmr.msra.gmra.mxu1 %vm374_vm4, %v6458_v8 }
 0x92a   : > { %4914 = vmatprep.mubr.bf16.mxu1 %v8520_v30 }
 0x92c   : > { %4784 = vrot.lane.b32.xlu1 %v4647_v38, %s6482_s8  ;;  %4663 = vrot.lane.b32.xlu0 %v4649_v56, %s6485_s10 }
 0x930   : > { %4860 = vrot.lane.b32.xlu1 %v4647_v38, %s6481_s30  ;;  %4786 = vrot.lane.b32.xlu0 %v4649_v56, %s6482_s8 }
 0x934   : > { %4955 = vrot.lane.b32.xlu1 %v4646_v52, %s6486_s11  ;;  %4862 = vrot.lane.b32.xlu0 %v4649_v56, %s6481_s30 }
 0x938   : > { %4959 = vrot.lane.b32.xlu1 %v4647_v38, %s6486_s11  ;;  %4957 = vrot.lane.b32.xlu0 %v4648_v11, %s6486_s11 }
 0x93c   : > { %5166 = vrot.lane.b32.xlu1 %v4646_v52, %s6484_s9  ;;  %4961 = vrot.lane.b32.xlu0 %v4649_v56, %s6486_s11 }
 0x940   : > { %5170 = vrot.lane.b32.xlu1 %v4647_v38, %s6484_s9  ;;  %5168 = vrot.lane.b32.xlu0 %v4648_v11, %s6484_s9 }
 0x944   : > { %5401 = vrot.lane.b32.xlu1 %v4646_v52, %s6488_s13  ;;  %5172 = vrot.lane.b32.xlu0 %v4649_v56, %s6484_s9 }
 0x948   : > { %5405 = vrot.lane.b32.xlu1 %v4647_v38, %s6488_s13  ;;  %5403 = vrot.lane.b32.xlu0 %v4648_v11, %s6488_s13 }
 0x94c   : > { %5489 = vrot.lane.b32.xlu1 %v4646_v52, %s6487_s12  ;;  %5491 = vrot.lane.b32.xlu0 %v4648_v11, %s6487_s12 }
 0x950   : > { %5493 = vrot.lane.b32.xlu1 %v4647_v38, %s6487_s12  ;;  %5407 = vrot.lane.b32.xlu0 %v4649_v56, %s6488_s13 }
 0x954   : > { %5800 = vrot.lane.b32.xlu1 %v4646_v52, %s6489_s14  ;;  %5495 = vrot.lane.b32.xlu0 %v4649_v56, %s6487_s12  ;;  %v6239_v52 = vld [vmem:[%s8503_s1 + $0x2] sm:$0x3] }
 0x955   : > { %v5099_v47 = vrot.slane %v6239_v52, %v8523_v54 }
 0x958   : > { %5804 = vrot.lane.b32.xlu1 %v4647_v38, %s6489_s14  ;;  %5802 = vrot.lane.b32.xlu0 %v4648_v11, %s6489_s14  ;;  %v6460_v38 = vld [vmem:[%s8507_s5 + $0x18] sm:$0xff]  }
 0x95c   : > { %4933 = vperm.xlu1 %6400, %v4929_v59   ;;  %5806 = vrot.lane.b32.xlu0 %v4649_v56, %s6489_s14 }
 0x960   : > { %5255 = vperm.xlu1 %6400, %v4929_v59   ;;  %4938 = vperm.xlu0 %6399, %v4930_v35  }
 0x964   : > { %5578 = vperm.xlu1 %6400, %v4929_v59   ;;  %5260 = vperm.xlu0 %6399, %v4930_v35  }
 0x968   : > { %5889 = vperm.xlu1 %6400, %v4929_v59   ;;  %5583 = vperm.xlu0 %6399, %v4930_v35  }
 0x96c   : > { %5894 = vperm.xlu0 %6399, %v4930_v35  }
 0x98e   : > { %v4658_v41 = vpop.permute.xlu1 %4657 }
 0x992   : > { %v4781_v10 = vpop.permute.xlu1 %4780  ;;  %v4660_v19 = vpop.permute.xlu0 %4659 }
 0x996   : > { %v4857_v34 = vpop.permute.xlu1 %4856  ;;  %v4783_v0 = vpop.permute.xlu0 %4782 }
 0x99a   : > { %v4662_v2 = vpop.permute.xlu1 %4661  ;;  %v4859_v44 = vpop.permute.xlu0 %4858 }
 0x99b   : > { %v8235_v22 = vsel %vm573_vm3, %v4658_v41, %v4662_v2  ;;  %v8239_v49 = vsel %vm573_vm3, %v4662_v2, %v4658_v41 }
 0x99c   : > { %v4669_v60 = vmul.f32 %v8239_v49, %v6631_v32  ;;  %v4670_v36 = vmul.f32 %v8235_v22, %v6652_v46 }
 0x99e   : > { %v4785_v25 = vpop.permute.xlu1 %4784  ;;  %v4664_v31 = vpop.permute.xlu0 %4663 }
 0x99f   : > { %v8227_v57 = vsel %vm573_vm3, %v4660_v19, %v4664_v31  ;;  %v8231_v63 = vsel %vm573_vm3, %v4664_v31, %v4660_v19  ;;  %v4788_v5 = vsel %vm345_vm1, %v4781_v10, %v4785_v25  ;;  %v8253_v37 = vsel %vm345_vm1, %v4785_v25, %v4781_v10  ;;  %v6255_v10 = vld [vmem:[%s8503_s1 + $0x6] sm:$0x3]  ;;  %v6244_v25 = vld [vmem:[%s8503_s1 + $0x4] sm:$0x3] }
 0x9a0   : > { %v4671_v12 = vmul.f32 %v8231_v63, %v6631_v32  ;;  %v4672_v3 = vmul.f32 %v8227_v57, %v6652_v46  ;;  %v4793_v13 = vmul.f32 %v4788_v5, %v6620_v27  ;;  %v4792_v1 = vmul.f32 %v8253_v37, %v6623_v28 }
 0x9a1   : > { %v5103_v31 = vmul.f32 %v5099_v47, %v4788_v5  ;;  %v5095_v5 = vrot.slane %v6239_v52, %v8522_v55 }
 0x9a2   : > { %v4861_v6 = vpop.permute.xlu1 %4860  ;;  %v4787_v7 = vpop.permute.xlu0 %4786  ;;  %v4673_v32 = vpack.c.bf16 %v4671_v12, %v4669_v60  ;;  %v4674_v21 = vpack.c.bf16 %v4672_v3, %v4670_v36  ;;  %v5287_v60 = vrot.slane %v6255_v10, %v8523_v54  ;;  %v5183_v36 = vrot.slane %v6244_v25, %v8522_v55 }
 0x9a3   : > { %v4866_v20 = vsel %vm311_vm0, %v4861_v6, %v4857_v34  ;;  %v4789_v9 = vsel %vm345_vm1, %v4783_v0, %v4787_v7  ;;  %v8261_v51 = vsel %vm345_vm1, %v4787_v7, %v4783_v0  ;;  %v4864_v46 = vsel %vm311_vm0, %v4857_v34, %v4861_v6 }
 0x9a4   : > { %v4794_v16 = vmul.f32 %v8261_v51, %v6623_v28  ;;  %v4795_v24 = vmul.f32 %v4789_v9, %v6620_v27  ;;  %v4868_v18 = vmul.f32 %v4866_v20, %v6643_v39  ;;  %v4869_v48 = vmul.f32 %v4864_v46, %v6617_v26  ;;  %4697 = vmatprep.subr.bf16.mxu0 %v4674_v21 }
 0x9a5   : > { %4698 = vmatpush1.bf16.msra.mxu0 %v4673_v32  ;;  %v5105_v59 = vmul.f32 %v5099_v47, %v4789_v9  ;;  %v5187_v20 = vrot.slane %v6244_v25, %v8523_v54  ;;  %v5293_v21 = vmul.f32 %v5287_v60, %v8227_v57  ;;  %v5291_v57 = vmul.f32 %v5287_v60, %v8235_v22  ;;  %v6464_v22 = vld [vmem:[%s8507_s5 + $0x38] sm:$0xff]   ;;  %v6463_v47 = vld [vmem:[%s8507_s5 + $0x30] sm:$0xff]   ;;  %v6466_v60 = vld [vmem:[%s8507_s5 + $0x40] sm:$0xff]  }
 0x9a6   : > { %v4956_v29 = vpop.permute.xlu1 %4955  ;;  %v4863_v61 = vpop.permute.xlu0 %4862  ;;  %v4797_v28 = vpack.c.bf16 %v4795_v24, %v4793_v13  ;;  %v4796_v58 = vpack.c.bf16 %v4794_v16, %v4792_v1  ;;  %v6462_v16 = vld [vmem:[%s8507_s5 + $0x20] sm:$0xff]  }
 0x9a7   : > { %v4865_v15 = vsel %vm311_vm0, %v4859_v44, %v4863_v61  ;;  %v4867_v45 = vsel %vm311_vm0, %v4863_v61, %v4859_v44  ;;  %v6459_v44 = vld [vmem:[%s8507_s5 + $0x10] sm:$0xff]   ;;  %v5107_v9 = vpack.c.bf16 %v5105_v59, %v5103_v31  ;;  %v5295_v52 = vpack.c.bf16 %v5293_v21, %v5291_v57 }
 0x9a8   : > { %v4870_v4 = vmul.f32 %v4867_v45, %v6643_v39  ;;  %v4871_v27 = vmul.f32 %v4865_v15, %v6617_v26  ;;  %4820 = vmatprep.subr.bf16.mxu0 %v4797_v28  ;;  %6217 = vmatmul.mubr.msk.bf16.vlgmr.msra.gmra.mxu0 %vm374_vm4, %v6457_v42 }
 0x9a9   : > { %4821 = vmatpush1.bf16.msra.mxu0 %v4796_v58  ;;  %4838 = vmatprep.mubr.bf16.mxu0 %v8520_v30 }
 0x9aa   : > { %v4872_v33 = vpack.c.bf16 %v4870_v4, %v4868_v18  ;;  %v4960_v39 = vpop.permute.xlu1 %4959  ;;  %v4958_v62 = vpop.permute.xlu0 %4957  ;;  %v4873_v26 = vpack.c.bf16 %v4871_v27, %v4869_v48  ;;  %v6461_v4 = vld [vmem:[%s8507_s5 + $0x28] sm:$0xff]   ;;  %v5102_v27 = vmul.f32 %v5095_v5, %v8253_v37 }
 0x9ab   : > { %v8294_v11 = vsel %vm731_vm5, %v4956_v29, %v4960_v39  ;;  %v8298_v23 = vsel %vm731_vm5, %v4960_v39, %v4956_v29  ;;  %v5104_v29 = vmul.f32 %v5095_v5, %v8261_v51  ;;  %v6262_v37 = vld [vmem:[%s8503_s1 + $0xe] sm:$0x3] }
 0x9ac   : > { %4896 = vmatprep.subr.bf16.mxu1 %v4873_v26  ;;  %v4979_v19 = vmul.f32 %v4972_v14, %v8294_v11  ;;  %v4980_v34 = vmul.f32 %v4976_v50, %v8298_v23  ;;  %v5418_v59 = vrot.slane %v6262_v37, %v8522_v55 }
 0x9ad   : > { %4897 = vmatpush1.bf16.msra.mxu1 %v4872_v33  ;;  %v5106_v43 = vpack.c.bf16 %v5104_v29, %v5102_v27  ;;  %v5283_v33 = vrot.slane %v6255_v10, %v8522_v55  ;;  %v6285_v27 = vld [vmem:[%s8503_s1 + $0xe] sm:$0x3] }
 0x9ae   : > { %v5167_v56 = vpop.permute.xlu1 %5166  ;;  %v4962_v8 = vpop.permute.xlu0 %4961  ;;  %5058 = vmatprep.subr.bf16.mxu1 %v8179_v53 }
 0x9af   : > { %v8306_v35 = vsel %vm731_vm5, %v4958_v62, %v4962_v8  ;;  %v8310_v41 = vsel %vm731_vm5, %v4962_v8, %v4958_v62  ;;  %v5292_v26 = vmul.f32 %v5283_v33, %v8231_v63  ;;  %v5290_v63 = vmul.f32 %v5283_v33, %v8239_v49 }
 0x9b0   : > { %v4981_v0 = vmul.f32 %v4972_v14, %v8306_v35  ;;  %v4982_v2 = vmul.f32 %v4976_v50, %v8310_v41  ;;  %6227 = vmatmul.mubr.msk.bf16.vlgmr.msra.gmra.mxu1 %vm374_vm4, %v6460_v38  ;;  %6223 = vmatmul.mubr.msk.bf16.vlgmr.msra.gmra.mxu0 %vm374_vm4, %v6459_v44  ;;  %v6278_v14 = vld [vmem:[%s8503_s1 + $0xa] sm:$0x3]  ;;  %v5422_v50 = vrot.slane %v6262_v37, %v8523_v54  ;;  %v6267_v38 = vld [vmem:[%s8503_s1 + $0xc] sm:$0x3] }
 0x9b1   : > { %5059 = vmatpush1.bf16.msra.mxu1 %v8183_v40  ;;  %5076 = vmatprep.mubr.bf16.mxu1 %v8520_v30  ;;  %v5610_v8 = vrot.slane %v6278_v14, %v8523_v54  ;;  %v5510_v31 = vrot.slane %v6267_v38, %v8523_v54 }
 0x9b2   : > { %v4983_v12 = vpack.c.bf16 %v4981_v0, %v4979_v19  ;;  %v5171_v3 = vpop.permute.xlu1 %5170  ;;  %v5169_v6 = vpop.permute.xlu0 %5168  ;;  %v4984_v7 = vpack.c.bf16 %v4982_v2, %v4980_v34  ;;  %5025 = vmatprep.mubr.bf16.mxu0 %v8520_v30  ;;  %v5294_v34 = vpack.c.bf16 %v5292_v26, %v5290_v63  ;;  %v5506_v0 = vrot.slane %v6267_v38, %v8522_v55 }
 0x9b3   : > { %v5174_v32 = vsel %vm483_vm2, %v5167_v56, %v5171_v3  ;;  %v5176_v46 = vsel %vm483_vm2, %v5171_v3, %v5167_v56  ;;  %v5616_v5 = vmul.f32 %v5610_v8, %v8310_v41  ;;  %v6290_v41 = vld [vmem:[%s8503_s1 + $0x10] sm:$0x3]  ;;  %v5729_v63 = vrot.slane %v6285_v27, %v8522_v55 }
 0x9b4   : > { %5007 = vmatprep.subr.bf16.mxu0 %v4984_v7  ;;  %v5190_v18 = vmul.f32 %v5183_v36, %v5176_v46  ;;  %v5191_v15 = vmul.f32 %v5187_v20, %v5174_v32  ;;  %v5821_v57 = vrot.slane %v6290_v41, %v8523_v54 }
 0x9b5   : > { %5008 = vmatpush1.bf16.msra.mxu0 %v4983_v12 }
 0x9b6   : > { %v5402_v24 = vpop.permute.xlu1 %5401  ;;  %5130 = vmatprep.subr.bf16.mxu0 %v5107_v9  ;;  %v5173_v13 = vpop.permute.xlu0 %5172 }
 0x9b7   : > { %v5175_v61 = vsel %vm483_vm2, %v5169_v6, %v5173_v13  ;;  %v5177_v1 = vsel %vm483_vm2, %v5173_v13, %v5169_v6 }
 0x9b8   : > { %v5192_v45 = vmul.f32 %v5183_v36, %v5177_v1  ;;  %v5193_v48 = vmul.f32 %v5187_v20, %v5175_v61  ;;  %6236 = vmatmul.mubr.msk.bf16.vlgmr.msra.gmra.mxu1 %vm374_vm4, %v6462_v16  ;;  %6234 = vmatmul.mubr.msk.bf16.vlgmr.msra.gmra.mxu0 %vm374_vm4, %v6461_v4  ;;  %v6465_v61 = vld [vmem:[%s8507_s5 + $0x48] sm:$0xff]  }
 0x9b9   : > { %5236 = vmatprep.mubr.bf16.mxu1 %v8520_v30  ;;  %5131 = vmatpush1.bf16.msra.mxu0 %v5106_v43 }
 0x9ba   : > { %v5194_v51 = vpack.c.bf16 %v5192_v45, %v5190_v18  ;;  %v5406_v42 = vpop.permute.xlu1 %5405  ;;  %v5404_v28 = vpop.permute.xlu0 %5403  ;;  %v5195_v58 = vpack.c.bf16 %v5193_v48, %v5191_v15  ;;  %5318 = vmatprep.subr.bf16.mxu0 %v5295_v52  ;;  %5148 = vmatprep.mubr.bf16.mxu0 %v8520_v30  ;;  %v5614_v18 = vmul.f32 %v5610_v8, %v8298_v23 }
 0x9bb   : > { %v8379_v56 = vsel %vm911_vm7, %v5406_v42, %v5402_v24  ;;  %v8395_v44 = vsel %vm911_vm7, %v5402_v24, %v5406_v42  ;;  %v5606_v42 = vrot.slane %v6278_v14, %v8522_v55 }
 0x9bc   : > { %5218 = vmatprep.subr.bf16.mxu1 %v5195_v58  ;;  %v5426_v25 = vmul.f32 %v5422_v50, %v8379_v56  ;;  %v5425_v32 = vmul.f32 %v5418_v59, %v8395_v44  ;;  %v5733_v58 = vrot.slane %v6285_v27, %v8523_v54 }
 0x9bd   : > { %5219 = vmatpush1.bf16.msra.mxu1 %v5194_v51  ;;  %v5618_v51 = vpack.c.bf16 %v5616_v5, %v5614_v18  ;;  %v5615_v52 = vmul.f32 %v5606_v42, %v8306_v35  ;;  %v5613_v54 = vmul.f32 %v5606_v42, %v8294_v11  ;;  %v5817_v35 = vrot.slane %v6290_v41, %v8522_v55 }
 0x9be   : > { %v5490_v39 = vpop.permute.xlu1 %5489  ;;  %v5492_v62 = vpop.permute.xlu0 %5491  ;;  %5369 = vmatprep.subr.bf16.mxu1 %v8179_v53 }
 0x9c0   : > { %6246 = vmatmul.mubr.msk.bf16.vlgmr.msra.gmra.mxu1 %vm374_vm4, %v6464_v22  ;;  %6241 = vmatmul.mubr.msk.bf16.vlgmr.msra.gmra.mxu0 %vm374_vm4, %v6463_v47 }
 0x9c1   : > { %5370 = vmatpush1.bf16.msra.mxu1 %v8183_v40  ;;  %5387 = vmatprep.mubr.bf16.mxu1 %v8520_v30 }
 0x9c2   : > { %v5494_v10 = vpop.permute.xlu1 %5493  ;;  %v5408_v19 = vpop.permute.xlu0 %5407  ;;  %5319 = vmatpush1.bf16.msra.mxu0 %v5294_v34  ;;  %5336 = vmatprep.mubr.bf16.mxu0 %v8520_v30  ;;  %v6471_v34 = vld [vmem:[%s8507_s5 + $0x70] sm:$0xff]  }
 0x9c3   : > { %v8389_v49 = vsel %vm911_vm7, %v5404_v28, %v5408_v19  ;;  %v5412_v2 = vsel %vm911_vm7, %v5408_v19, %v5404_v28  ;;  %v5497_v3 = vsel %vm821_vm6, %v5490_v39, %v5494_v10  ;;  %v5499_v6 = vsel %vm821_vm6, %v5494_v10, %v5490_v39  ;;  %v6468_v28 = vld [vmem:[%s8507_s5 + $0x58] sm:$0xff]  }
 0x9c4   : > { %v5428_v12 = vmul.f32 %v5422_v50, %v5412_v2  ;;  %v5427_v7 = vmul.f32 %v5418_v59, %v8389_v49  ;;  %v5513_v24 = vmul.f32 %v5506_v0, %v5497_v3  ;;  %v5514_v13 = vmul.f32 %v5510_v31, %v5499_v6  ;;  %v6469_v59 = vld [vmem:[%s8507_s5 + $0x68] sm:$0xff]   ;;  %v6472_v19 = vld [vmem:[%s8507_s5 + $0x78] sm:$0xff]  }
 0x9c5   : > { %v5739_v37 = vmul.f32 %v5733_v58, %v5412_v2  ;;  %v5617_v50 = vpack.c.bf16 %v5615_v52, %v5613_v54  ;;  %v5738_v8 = vmul.f32 %v5729_v63, %v8389_v49  ;;  %v5736_v10 = vmul.f32 %v5729_v63, %v8395_v44 }
 0x9c6   : > { %v5801_v36 = vpop.permute.xlu1 %5800  ;;  %v5496_v20 = vpop.permute.xlu0 %5495  ;;  %v5430_v9 = vpack.c.bf16 %v5428_v12, %v5426_v25  ;;  %v5429_v1 = vpack.c.bf16 %v5427_v7, %v5425_v32 }
 0x9c7   : > { %v5498_v46 = vsel %vm821_vm6, %v5492_v62, %v5496_v20  ;;  %v5500_v16 = vsel %vm821_vm6, %v5496_v20, %v5492_v62  ;;  %v6467_v62 = vld [vmem:[%s8507_s5 + $0x50] sm:$0xff]   ;;  %v5740_v55 = vpack.c.bf16 %v5738_v8, %v5736_v10 }
 0x9c8   : > { %v5515_v21 = vmul.f32 %v5506_v0, %v5498_v46  ;;  %v5516_v29 = vmul.f32 %v5510_v31, %v5500_v16  ;;  %5453 = vmatprep.subr.bf16.mxu0 %v5430_v9  ;;  %6259 = vmatmul.mubr.msk.bf16.vlgmr.msra.gmra.mxu1 %vm374_vm4, %v6466_v60 }
 0x9c9   : > { %5559 = vmatprep.mubr.bf16.mxu1 %v8520_v30  ;;  %6257 = vmatmul.mubr.msk.bf16.vlgmr.msra.gmra.mxu0 %vm374_vm4, %v6465_v61 }
 0x9ca   : > { %v5517_v15 = vpack.c.bf16 %v5515_v21, %v5513_v24  ;;  %v5805_v45 = vpop.permute.xlu1 %5804  ;;  %v5803_v48 = vpop.permute.xlu0 %5802  ;;  %v5518_v4 = vpack.c.bf16 %v5516_v29, %v5514_v13  ;;  %5454 = vmatpush1.bf16.msra.mxu0 %v5429_v1  ;;  %5471 = vmatprep.mubr.bf16.mxu0 %v8520_v30 }
 0x9cb   : > { %v5810_v23 = vsel %vm1001_vm8, %v5805_v45, %v5801_v36  ;;  %5641 = vmatprep.subr.bf16.mxu0 %v5618_v51  ;;  %v5808_v47 = vsel %vm1001_vm8, %v5801_v36, %v5805_v45 }
 0x9cc   : > { %5541 = vmatprep.subr.bf16.mxu1 %v5518_v4  ;;  %v5825_v22 = vmul.f32 %v5821_v57, %v5810_v23 }
 0x9cd   : > { %5542 = vmatpush1.bf16.msra.mxu1 %v5517_v15 }
 0x9ce   : > { %v5807_v43 = vpop.permute.xlu0 %5806  ;;  %5692 = vmatprep.subr.bf16.mxu1 %v8179_v53  ;;  %v5737_v53 = vmul.f32 %v5733_v58, %v8379_v56  ;;  %v5824_v56 = vmul.f32 %v5817_v35, %v5808_v47 }
 0x9cf   : > { %v5811_v33 = vsel %vm1001_vm8, %v5807_v43, %v5803_v48  ;;  %v5809_v26 = vsel %vm1001_vm8, %v5803_v48, %v5807_v43 }
 0x9d0   : > { %v5827_v39 = vmul.f32 %v5821_v57, %v5811_v33  ;;  %6269 = vmatmul.mubr.msk.bf16.vlgmr.msra.gmra.mxu1 %vm374_vm4, %v6468_v28  ;;  %v5826_v38 = vmul.f32 %v5817_v35, %v5809_v26  ;;  %v5741_v11 = vpack.c.bf16 %v5739_v37, %v5737_v53 }
 0x9d1   : > { %5693 = vmatpush1.bf16.msra.mxu1 %v8183_v40  ;;  %5710 = vmatprep.mubr.bf16.mxu1 %v8520_v30  ;;  %v6470_v40 = vld [vmem:[%s8507_s5 + $0x60] sm:$0xff]  }
 0x9d2   : > { %v5829_v14 = vpack.c.bf16 %v5827_v39, %v5825_v22  ;;  %6264 = vmatmul.mubr.msk.bf16.vlgmr.msra.gmra.mxu0 %vm374_vm4, %v6467_v62  ;;  %v5828_v17 = vpack.c.bf16 %v5826_v38, %v5824_v56 }
 0x9d3   : > { %5642 = vmatpush1.bf16.msra.mxu0 %v5617_v50  ;;  %5659 = vmatprep.mubr.bf16.mxu0 %v8520_v30 }
 0x9d4   : > { %5852 = vmatprep.subr.bf16.mxu1 %v5829_v14  ;;  %5764 = vmatprep.subr.bf16.mxu0 %v5741_v11 }
 0x9d7   : > { %v4934_v13 = vpop.permute.xlu1 %4933 }
 0x9d8   : > { %6282 = vmatmul.mubr.msk.bf16.vlgmr.msra.gmra.mxu1 %vm374_vm4, %v6470_v40 }
 0x9d9   : > { %5853 = vmatpush1.bf16.msra.mxu1 %v5828_v17  ;;  %5870 = vmatprep.mubr.bf16.mxu1 %v8520_v30 }
 0x9da   : > { %6280 = vmatmul.mubr.msk.bf16.vlgmr.msra.gmra.mxu0 %vm374_vm4, %v6469_v59 }
 0x9db   : > { %5765 = vmatpush1.bf16.msra.mxu0 %v5740_v55  ;;  %5782 = vmatprep.mubr.bf16.mxu0 %v8520_v30  ;;  %v4939_v57 = vpop.permute.xlu0 %4938  ;;  %v5256_v63 = vpop.permute.xlu1 %5255 }
 0x9e0   : > { %6292 = vmatmul.mubr.msk.bf16.vlgmr.msra.gmra.mxu1 %vm374_vm4, %v6472_v19 }
 0x9e2   : > { %6287 = vmatmul.mubr.msk.bf16.vlgmr.msra.gmra.mxu0 %vm374_vm4, %v6471_v34 }
 0x9e9   : > { %v4768_v0 = vpop.f32.mrf.mxu1 }
 0x9eb   : > { %v4770_v49 = vpop.f32.mrf.mxu1 }
 0x9ed   : > { %v4772_v2 = vpop.f32.mrf.mxu1 }
 0x9ef   : > { %v4774_v31 = vpop.f32.mrf.mxu1 }
 0xa68   : > { %v4717_v44 = vpop.f32.mrf.mxu0 }
 0xa69   : > { %v4769_v6 = vadd.f32 %v4768_v0, %v4717_v44 }
 0xa6a   : > { %v4719_v25 = vpop.f32.mrf.mxu0 }
 0xa6b   : > { %v4771_v36 = vadd.f32 %v4770_v49, %v4719_v25 }
 0xa6c   : > { %v4721_v30 = vpop.f32.mrf.mxu0 }
 0xa6d   : > { %v4773_v32 = vadd.f32 %v4772_v2, %v4721_v30  ;;  %v5261_v2 = vpop.permute.xlu0 %5260 }
 0xa6e   : > { %v4723_v3 = vpop.f32.mrf.mxu0 }
 0xa6f   : > { %v4775_v29 = vadd.f32 %v4774_v31, %v4723_v3 }
 0xa70   : > { %v4916_v12 = vpop.f32.mrf.mxu1  ;;  %v4840_v60 = vpop.f32.mrf.mxu0 }
 0xa71   : > { %v4849_v20 = vadd.f32 %v4840_v60, %v4769_v6 }
 0xa72   : > { %v4918_v7 = vpop.f32.mrf.mxu1  ;;  %v4842_v5 = vpop.f32.mrf.mxu0 }
 0xa73   : > { %v4925_v46 = vadd.f32 %v4916_v12, %v4849_v20  ;;  %v4850_v16 = vadd.f32 %v4842_v5, %v4771_v36 }
 0xa74   : > { %v4920_v9 = vpop.f32.mrf.mxu1  ;;  %v4844_v21 = vpop.f32.mrf.mxu0 }
 0xa75   : > { %v4941_v61 = vadd.f32 %v4934_v13, %v4925_v46  ;;  %v4926_v1 = vadd.f32 %v4918_v7, %v4850_v16  ;;  %v4851_v41 = vadd.f32 %v4844_v21, %v4773_v32 }
 0xa76   : > { %v4922_v24 = vpop.f32.mrf.mxu1  ;;  %v4846_v15 = vpop.f32.mrf.mxu0 }
 0xa77   : > { %4945 = vst [vmem:[%s8481_s27] sm:$0xff] %v4941_v61  ;;  %v4942_v45 = vadd.f32 %v4934_v13, %v4926_v1  ;;  %v4927_v48 = vadd.f32 %v4920_v9, %v4851_v41  ;;  %v4852_v4 = vadd.f32 %v4846_v15, %v4775_v29  ;;  %v5579_v1 = vpop.permute.xlu1 %5578 }
 0xa78   : > { %v5078_v18 = vpop.f32.mrf.mxu1  ;;  %v5027_v51 = vpop.f32.mrf.mxu0 }
 0xa79   : > { %4946 = vst [vmem:[%s8481_s27 + $0x8] sm:$0xff] %v4942_v45  ;;  %v4943_v42 = vadd.f32 %v4939_v57, %v4927_v48  ;;  %v4928_v23 = vadd.f32 %v4922_v24, %v4852_v4  ;;  %v5079_v39 = vadd.f32 %v5078_v18, %v5027_v51 }
 0xa7a   : > { %v5080_v27 = vpop.f32.mrf.mxu1  ;;  %v5029_v58 = vpop.f32.mrf.mxu0 }
 0xa7b   : > { %4947 = vst [vmem:[%s8481_s27 + $0x10] sm:$0xff] %v4943_v42  ;;  %v4944_v43 = vadd.f32 %v4939_v57, %v4928_v23  ;;  %v5081_v26 = vadd.f32 %v5080_v27, %v5029_v58 }
 0xa7c   : > { %v5082_v28 = vpop.f32.mrf.mxu1  ;;  %v5031_v33 = vpop.f32.mrf.mxu0 }
 0xa7d   : > { %4948 = vst [vmem:[%s8481_s27 + $0x18] sm:$0xff] %v4944_v43  ;;  %v5083_v50 = vadd.f32 %v5082_v28, %v5031_v33  ;;  %v5584_v28 = vpop.permute.xlu0 %5583 }
 0xa7e   : > { %v5084_v52 = vpop.f32.mrf.mxu1  ;;  %v5033_v22 = vpop.f32.mrf.mxu0 }
 0xa7f   : > { %v5085_v56 = vadd.f32 %v5084_v52, %v5033_v22 }
 0xa80   : > { %v5238_v37 = vpop.f32.mrf.mxu1  ;;  %v5150_v54 = vpop.f32.mrf.mxu0 }
 0xa81   : > { %v5159_v53 = vadd.f32 %v5150_v54, %v5079_v39 }
 0xa82   : > { %v5240_v62 = vpop.f32.mrf.mxu1  ;;  %v5152_v14 = vpop.f32.mrf.mxu0 }
 0xa83   : > { %v5247_v47 = vadd.f32 %v5238_v37, %v5159_v53  ;;  %v5160_v38 = vadd.f32 %v5152_v14, %v5081_v26 }
 0xa84   : > { %v5242_v35 = vpop.f32.mrf.mxu1  ;;  %v5154_v40 = vpop.f32.mrf.mxu0 }
 0xa85   : > { %v5263_v8 = vadd.f32 %v5256_v63, %v5247_v47  ;;  %v5248_v17 = vadd.f32 %v5240_v62, %v5160_v38  ;;  %v5161_v59 = vadd.f32 %v5154_v40, %v5083_v50 }
 0xa86   : > { %v5244_v11 = vpop.f32.mrf.mxu1  ;;  %v5156_v55 = vpop.f32.mrf.mxu0 }
 0xa87   : > { %6247 = vst [vmem:[%s8481_s27 + $0x20] sm:$0xff] %v5263_v8  ;;  %v5264_v19 = vadd.f32 %v5256_v63, %v5248_v17  ;;  %v5249_v34 = vadd.f32 %v5242_v35, %v5161_v59  ;;  %v5162_v0 = vadd.f32 %v5156_v55, %v5085_v56 }
 0xa88   : > { %v5389_v10 = vpop.f32.mrf.mxu1 }
 0xa89   : > { %v5338_v44 = vpop.f32.mrf.mxu0  ;;  %6248 = vst [vmem:[%s8481_s27 + $0x28] sm:$0xff] %v5264_v19  ;;  %v5265_v25 = vadd.f32 %v5261_v2, %v5249_v34  ;;  %v5250_v31 = vadd.f32 %v5244_v11, %v5162_v0  ;;  %v5890_v11 = vpop.permute.xlu1 %5889 }
 0xa8a   : > { %v5391_v49 = vpop.f32.mrf.mxu1  ;;  %v5390_v20 = vadd.f32 %v5389_v10, %v5338_v44  ;;  %v5895_v44 = vpop.permute.xlu0 %5894 }
 0xa8b   : > { %v5340_v12 = vpop.f32.mrf.mxu0  ;;  %6249 = vst [vmem:[%s8481_s27 + $0x30] sm:$0xff] %v5265_v25  ;;  %v5266_v3 = vadd.f32 %v5261_v2, %v5250_v31 }
 0xa8c   : > { %v5393_v30 = vpop.f32.mrf.mxu1  ;;  %v5392_v32 = vadd.f32 %v5391_v49, %v5340_v12 }
 0xa8d   : > { %v5342_v7 = vpop.f32.mrf.mxu0  ;;  %6250 = vst [vmem:[%s8481_s27 + $0x38] sm:$0xff] %v5266_v3 }
 0xa8e   : > { %v5395_v6 = vpop.f32.mrf.mxu1  ;;  %v5394_v13 = vadd.f32 %v5393_v30, %v5342_v7 }
 0xa8f   : > { %v5344_v36 = vpop.f32.mrf.mxu0 }
 0xa90   : > { %v5561_v60 = vpop.f32.mrf.mxu1  ;;  %v5396_v18 = vadd.f32 %v5395_v6, %v5344_v36 }
 0xa92   : > { %v5563_v9 = vpop.f32.mrf.mxu1  ;;  %v5473_v5 = vpop.f32.mrf.mxu0 }
 0xa93   : > { %v5482_v46 = vadd.f32 %v5473_v5, %v5390_v20 }
 0xa94   : > { %v5565_v16 = vpop.f32.mrf.mxu1  ;;  %v5475_v24 = vpop.f32.mrf.mxu0 }
 0xa95   : > { %v5570_v21 = vadd.f32 %v5561_v60, %v5482_v46  ;;  %v5483_v29 = vadd.f32 %v5475_v24, %v5392_v32 }
 0xa96   : > { %v5567_v61 = vpop.f32.mrf.mxu1  ;;  %v5477_v41 = vpop.f32.mrf.mxu0 }
 0xa97   : > { %v5586_v15 = vadd.f32 %v5579_v1, %v5570_v21  ;;  %v5571_v45 = vadd.f32 %v5563_v9, %v5483_v29  ;;  %v5484_v48 = vadd.f32 %v5477_v41, %v5394_v13 }
 0xa98   : > { %v5712_v4 = vpop.f32.mrf.mxu1  ;;  %v5479_v27 = vpop.f32.mrf.mxu0 }
 0xa99   : > { %6270 = vst [vmem:[%s8481_s27 + $0x40] sm:$0xff] %v5586_v15  ;;  %v5587_v57 = vadd.f32 %v5579_v1, %v5571_v45  ;;  %v5572_v51 = vadd.f32 %v5565_v16, %v5484_v48  ;;  %v5485_v42 = vadd.f32 %v5479_v27, %v5396_v18 }
 0xa9a   : > { %v5714_v23 = vpop.f32.mrf.mxu1  ;;  %v5661_v58 = vpop.f32.mrf.mxu0 }
 0xa9b   : > { %6271 = vst [vmem:[%s8481_s27 + $0x48] sm:$0xff] %v5587_v57  ;;  %v5588_v43 = vadd.f32 %v5584_v28, %v5572_v51  ;;  %v5573_v52 = vadd.f32 %v5567_v61, %v5485_v42  ;;  %v5713_v53 = vadd.f32 %v5712_v4, %v5661_v58 }
 0xa9c   : > { %v5716_v33 = vpop.f32.mrf.mxu1  ;;  %v5663_v37 = vpop.f32.mrf.mxu0 }
 0xa9d   : > { %6272 = vst [vmem:[%s8481_s27 + $0x50] sm:$0xff] %v5588_v43  ;;  %v5589_v22 = vadd.f32 %v5584_v28, %v5573_v52  ;;  %v5715_v50 = vadd.f32 %v5714_v23, %v5663_v37 }
 0xa9e   : > { %v5718_v39 = vpop.f32.mrf.mxu1  ;;  %v5665_v62 = vpop.f32.mrf.mxu0 }
 0xa9f   : > { %6273 = vst [vmem:[%s8481_s27 + $0x58] sm:$0xff] %v5589_v22  ;;  %v5717_v63 = vadd.f32 %v5716_v33, %v5665_v62 }
 0xaa0   : > { %v5872_v54 = vpop.f32.mrf.mxu1  ;;  %v5667_v26 = vpop.f32.mrf.mxu0 }
 0xaa1   : > { %v5719_v59 = vadd.f32 %v5718_v39, %v5667_v26 }
 0xaa2   : > { %v5784_v35 = vpop.f32.mrf.mxu0  ;;  %v5874_v14 = vpop.f32.mrf.mxu1 }
 0xaa3   : > { %v5793_v47 = vadd.f32 %v5784_v35, %v5713_v53 }
 0xaa4   : > { %v5786_v38 = vpop.f32.mrf.mxu0  ;;  %v5876_v17 = vpop.f32.mrf.mxu1 }
 0xaa5   : > { %v5881_v40 = vadd.f32 %v5872_v54, %v5793_v47  ;;  %v5794_v56 = vadd.f32 %v5786_v38, %v5715_v50 }
 0xaa6   : > { %v5788_v8 = vpop.f32.mrf.mxu0  ;;  %v5878_v25 = vpop.f32.mrf.mxu1 }
 0xaa7   : > { %v5897_v10 = vadd.f32 %v5890_v11, %v5881_v40  ;;  %v5882_v55 = vadd.f32 %v5874_v14, %v5794_v56  ;;  %v5795_v19 = vadd.f32 %v5788_v8, %v5717_v63 }
 0xaa8   : > { %v5790_v34 = vpop.f32.mrf.mxu0 }
 0xaa9   : > { %6293 = vst [vmem:[%s8481_s27 + $0x60] sm:$0xff] %v5897_v10  ;;  %v5898_v0 = vadd.f32 %v5890_v11, %v5882_v55  ;;  %v5883_v49 = vadd.f32 %v5876_v17, %v5795_v19  ;;  %v5796_v2 = vadd.f32 %v5790_v34, %v5719_v59 }
 0xaab   : > { %6294 = vst [vmem:[%s8481_s27 + $0x68] sm:$0xff] %v5898_v0  ;;  %v5899_v31 = vadd.f32 %v5895_v44, %v5883_v49  ;;  %v5884_v30 = vadd.f32 %v5878_v25, %v5796_v2 }
 0xaad   : > { %6295 = vst [vmem:[%s8481_s27 + $0x70] sm:$0xff] %v5899_v31  ;;  %v5900_v12 = vadd.f32 %v5895_v44, %v5884_v30 }
 0xaaf   : > { %6296 = vst [vmem:[%s8481_s27 + $0x78] sm:$0xff] %v5900_v12 }
 0xab0 PF: > { %s17_s24 = sadd.s32 1, %s6479_s24  }
 0xab1   : > { %p14_p4 = scmp.ge.s32.totalorder %s17_s24, 4  }
 0xab3   :  { %16 = sbr.rel (!%p14_p4) target bundleno = 1 (0x1), region = 166 }

</bundles_post_ra>
